<compile_context>
chip_gen: v7x
topology: tpu7x:2x2x1
jax: 0.10.0
libtpu: 0.0.40
codegen_flags: <defaults>
</compile_context>

<pallas_src>
import functools
import math

import jax
import jax.numpy as jnp
from jax import lax
from jax.experimental import pallas as pl
from jax.experimental.pallas import tpu as pltpu

_LANE = 128     # lane width: feature dims padded to this for dense stores
_SUBLANE = 8    # f32 sublane tile


def _round_up(x, m):
    return (x + m - 1) // m * m


# ---------------------------------------------------------------------------
# Kernel 1: fused 3x3 conv (single im2col MXU matmul) + bias + ReLU + GAP
# ---------------------------------------------------------------------------

def _conv_relu_gap_kernel(x_ref, w_ref, b_ref, o_ref, *, H, W):
    """One group of GB images -> pooled backbone features.

    x_ref: (GB, H+2, W+2, Cp)  halo/channel-padded NHWC images, bf16
    w_ref: (K_pad, Cm_pad)     conv weight, 9 taps flattened along K, bf16
    b_ref: (1, Cm_pad)         conv bias, f32
    o_ref: (GB, Cm_pad)        global-average-pooled features, f32
    """
    gb, _, _, cp = x_ref.shape
    k_pad, cm_pad = w_ref.shape
    hw = H * W

    # Build the lane-dense (GB*H*W, K_pad) bf16 im2col in VMEM: the 9 shifted
    # 'same'-conv windows concatenated along channels, zero-padded to K_pad.
    cols = []
    for tap in range(9):                                   # statically unrolled
        dy, dx = divmod(tap, 3)
        cols.append(x_ref[:, dy:dy + H, dx:dx + W, :])     # (GB, H, W, Cp) bf16
    if k_pad > 9 * cp:
        cols.append(jnp.zeros((gb, H, W, k_pad - 9 * cp), jnp.bfloat16))
    im2col = jnp.concatenate(cols, axis=-1).reshape(gb * hw, k_pad)

    # ONE K=128 MXU matmul with f32 accumulation (vs. 9 K=8 matmuls before).
    y = jnp.dot(im2col, w_ref[...], preferred_element_type=jnp.float32)
    y = jnp.maximum(y + b_ref[...], 0.0)                   # bias + ReLU (f32)

    # Global average pool over the spatial axis, one dense (GB, Cm_pad) store.
    pooled = jnp.sum(y.reshape(gb, hw, cm_pad), axis=1) * (1.0 / hw)
    o_ref[...] = pooled


def conv_relu_gap(x_pad, conv_w, conv_b, *, H, W, gb):
    B, Hp, Wp, Cp = x_pad.shape
    K_p, Cm_p = conv_w.shape
    assert B % gb == 0
    flops = 2 * B * H * W * K_p * Cm_p
    bytes_accessed = (x_pad.size * 2 + conv_w.size * 2 + conv_b.size * 4
                      + B * Cm_p * 4)
    return pl.pallas_call(
        functools.partial(_conv_relu_gap_kernel, H=H, W=W),
        out_shape=jax.ShapeDtypeStruct((B, Cm_p), jnp.float32),
        grid=(B // gb,),
        in_specs=[
            pl.BlockSpec((gb, Hp, Wp, Cp), lambda g: (g, 0, 0, 0)),
            pl.BlockSpec((K_p, Cm_p), lambda g: (0, 0)),
            pl.BlockSpec((1, Cm_p), lambda g: (0, 0)),
        ],
        out_specs=pl.BlockSpec((gb, Cm_p), lambda g: (g, 0)),
        compiler_params=pltpu.CompilerParams(
            dimension_semantics=("parallel",),      # batch groups independent
            vmem_limit_bytes=32 * 1024 * 1024),
        cost_estimate=pl.CostEstimate(flops=flops, transcendentals=0,
                                      bytes_accessed=bytes_accessed),
    )(x_pad, conv_w, conv_b)


# ---------------------------------------------------------------------------
# Kernel 2: fused fc -> ReLU -> mapping Linear -> L2 normalize (dim=1)
# ---------------------------------------------------------------------------

def _encode_head_kernel(p_ref, fcw_ref, fcb_ref, mw_ref, mb_ref, o_ref):
    pooled = p_ref[...]                                        # (B, Cm_pad) f32
    feats = jnp.dot(pooled.astype(jnp.bfloat16), fcw_ref[...],
                    preferred_element_type=jnp.float32) + fcb_ref[...]
    x = jnp.maximum(feats, 0.0)                                # ReLU (f32, VPU)
    y = jnp.dot(x.astype(jnp.bfloat16), mw_ref[...],
                preferred_element_type=jnp.float32) + mb_ref[...]
    # Padded lanes of y are exactly 0 (zero-padded weights/bias), so the full
    # lane reduction equals the norm over the real embed_size columns.
    sq = jnp.sum(y * y, axis=-1, keepdims=True)
    inv = lax.rsqrt(jnp.maximum(sq, 1e-24))    # == 1/max(||y||, 1e-12)   (EUP)
    o_ref[...] = y * inv


def encode_head(pooled, fc_w, fc_b, map_w, map_b):
    B, Cm_p = pooled.shape
    F_p = fc_w.shape[-1]
    E_p = map_w.shape[-1]
    flops = 2 * B * Cm_p * F_p + 2 * B * F_p * E_p
    bytes_accessed = (pooled.size * 4 + fc_w.size * 2 + fc_b.size * 4
                      + map_w.size * 2 + map_b.size * 4 + B * E_p * 4)
    # No grid: every operand fits VMEM at these sizes; whole-array blocks.
    return pl.pallas_call(
        _encode_head_kernel,
        out_shape=jax.ShapeDtypeStruct((B, E_p), jnp.float32),
        compiler_params=pltpu.CompilerParams(
            vmem_limit_bytes=32 * 1024 * 1024),
        cost_estimate=pl.CostEstimate(flops=flops, transcendentals=B,
                                      bytes_accessed=bytes_accessed),
    )(pooled, fc_w, fc_b, map_w, map_b)


# ---------------------------------------------------------------------------
# One-time parameter packing (padding to lane-dense 128, bf16 matmul weights)
# ---------------------------------------------------------------------------

def prepare_params(conv_w, conv_b, fc_w, fc_b, map_w, map_b):
    _, C, Cm = conv_w.shape
    F = fc_w.shape[1]
    E = map_w.shape[1]
    Cp = _round_up(C, _SUBLANE)
    Cm_p = _round_up(Cm, _LANE)
    F_p = _round_up(F, _LANE)
    E_p = _round_up(E, _LANE)
    K = 9 * Cp
    K_p = _round_up(K, _LANE)

    def pad2(a, rows, cols):
        return jnp.pad(a, ((0, rows - a.shape[0]), (0, cols - a.shape[1])))

    # Flatten the 3x3 taps along the contraction dim, matching the in-kernel
    # im2col order (tap-major, then channel), then zero-pad K to 128.
    w_flat = jnp.pad(conv_w, ((0, 0), (0, Cp - C), (0, Cm_p - Cm)))  # (9,Cp,Cm_p)
    w_flat = w_flat.reshape(K, Cm_p)
    w_flat = jnp.pad(w_flat, ((0, K_p - K), (0, 0)))                 # (K_p,Cm_p)

    return {
        "conv_w": w_flat.astype(jnp.bfloat16),
        "conv_b": jnp.pad(conv_b, (0, Cm_p - Cm)).reshape(1, Cm_p
                          ).astype(jnp.float32),
        "fc_w": pad2(fc_w, Cm_p, F_p).astype(jnp.bfloat16),
        "fc_b": jnp.pad(fc_b, (0, F_p - F)).reshape(1, F_p).astype(jnp.float32),
        "map_w": pad2(map_w, F_p, E_p).astype(jnp.bfloat16),
        "map_b": jnp.pad(map_b, (0, E_p - E)).reshape(1, E_p).astype(jnp.float32),
    }


# ---------------------------------------------------------------------------
# Full forward (stand-in backbone + the ImageEncoder head)
# ---------------------------------------------------------------------------

def image_encoder_forward(images, pparams, *, embed_size):
    B, C, H, W = images.shape
    Cp = _round_up(C, _SUBLANE)
    # TODO(synk): H*W is assumed to be a multiple of 8 (sublane tile); pad the
    # spatial dims and tile H*W (with a +1 halo) for real image sizes.
    assert (H * W) % _SUBLANE == 0
    # Layout prep on the raw image only (no HBM im2col): NCHW -> NHWC, +1
    # spatial halo for the 3x3 'same' conv, channel pad to Cp, ONE bf16 cast.
    x = jnp.transpose(images, (0, 2, 3, 1))
    x = jnp.pad(x, ((0, 0), (1, 1), (1, 1), (0, Cp - C))).astype(jnp.bfloat16)
    gb = 8 if B % 8 == 0 else B              # images per conv grid step
    pooled = conv_relu_gap(x, pparams["conv_w"], pparams["conv_b"],
                           H=H, W=W, gb=gb)
    out_pad = encode_head(pooled, pparams["fc_w"], pparams["fc_b"],
                          pparams["map_w"], pparams["map_b"])
    return out_pad[:, :embed_size]


# ---------------------------------------------------------------------------
# Plain-JAX references
# ---------------------------------------------------------------------------

def reference_forward(images, pparams, *, embed_size):
    """Mirror of the Pallas math (same padding / bf16 dot operands / f32 acc)."""
    B, C, H, W = images.shape
    w_flat = pparams["conv_w"]
    K_p, Cm_p = w_flat.shape
    Cp = _round_up(C, _SUBLANE)
    x = jnp.transpose(images, (0, 2, 3, 1))
    x = jnp.pad(x, ((0, 0), (1, 1), (1, 1), (0, Cp - C))).astype(jnp.bfloat16)
    cols = []
    for tap in range(9):
        dy, dx = divmod(tap, 3)
        cols.append(x[:, dy:dy + H, dx:dx + W, :])
    if K_p > 9 * Cp:
        cols.append(jnp.zeros((B, H, W, K_p - 9 * Cp), jnp.bfloat16))
    im2col = jnp.concatenate(cols, axis=-1).reshape(B * H * W, K_p)
    y = jnp.dot(im2col, w_flat, preferred_element_type=jnp.float32)
    conv = jnp.maximum(y + pparams["conv_b"], 0.0).reshape(B, H * W, Cm_p)
    pooled = jnp.sum(conv, axis=1) * (1.0 / (H * W))
    feats = jnp.dot(pooled.astype(jnp.bfloat16), pparams["fc_w"],
                    preferred_element_type=jnp.float32) + pparams["fc_b"]
    xh = jnp.maximum(feats, 0.0)
    yy = jnp.dot(xh.astype(jnp.bfloat16), pparams["map_w"],
                 preferred_element_type=jnp.float32) + pparams["map_b"]
    sq = jnp.sum(yy * yy, axis=1, keepdims=True)
    return (yy * lax.rsqrt(jnp.maximum(sq, 1e-24)))[:, :embed_size]


def reference_forward_f32(images, conv_w, conv_b, fc_w, fc_b, map_w, map_b):
    """Pure-f32, unpadded PyTorch-semantics reference (exact F.normalize eps)."""
    B, C, H, W = images.shape
    Cm = conv_w.shape[-1]
    hp = lax.Precision.HIGHEST
    x = jnp.transpose(images, (0, 2, 3, 1))
    xp = jnp.pad(x, ((0, 0), (1, 1), (1, 1), (0, 0)))
    acc = jnp.zeros((B * H * W, Cm), jnp.float32)
    for tap in range(9):
        dy, dx = divmod(tap, 3)
        win = xp[:, dy:dy + H, dx:dx + W, :].reshape(B * H * W, C)
        acc = acc + jnp.dot(win, conv_w[tap], precision=hp)
    conv = jnp.maximum(acc + conv_b, 0.0).reshape(B, H * W, Cm)
    pooled = jnp.mean(conv, axis=1)
    feats = jnp.dot(pooled, fc_w, precision=hp) + fc_b
    xh = jnp.maximum(feats, 0.0)
    y = jnp.dot(xh, map_w, precision=hp) + map_b
    nrm = jnp.sqrt(jnp.sum(y * y, axis=1, keepdims=True))
    return y / jnp.maximum(nrm, 1e-12)


# ---------------------------------------------------------------------------
# Main
# ---------------------------------------------------------------------------

if __name__ == "__main__":
    # Small shapes consistent with the forward pass (images are NCHW like PyTorch).
    B, C, H, W = 2, 3, 16, 16
    C_MID = 8        # stand-in backbone conv channels
    CNN_OUT = 32     # stand-in for the VGG/ResNet 1000-d classifier output
    EMBED = 16       # embed_size

    key = jax.random.PRNGKey(0)
    k_img, k_cw, k_cb, k_fw, k_fb, k_mw = jax.random.split(key, 6)

    images = jax.random.normal(k_img, (B, C, H, W), dtype=jnp.float32)

    # Deterministic synthetic backbone weights (pretrained weights unavailable).
    conv_w = (jax.random.normal(k_cw, (9, C, C_MID), dtype=jnp.float32)
              * (1.0 / math.sqrt(C * 9)))
    conv_b = 0.1 * jax.random.normal(k_cb, (C_MID,), dtype=jnp.float32)
    fc_w = (jax.random.normal(k_fw, (C_MID, CNN_OUT), dtype=jnp.float32)
            * (1.0 / math.sqrt(C_MID)))
    fc_b = 0.1 * jax.random.normal(k_fb, (CNN_OUT,), dtype=jnp.float32)

    # mapping: Linear(CNN_OUT, EMBED), weight ~ U(-r, r), bias = 0 (as in __init__).
    r = math.sqrt(6.0) / math.sqrt(CNN_OUT + EMBED)
    map_w = jax.random.uniform(k_mw, (CNN_OUT, EMBED), dtype=jnp.float32,
                               minval=-r, maxval=r)
    map_b = jnp.zeros((EMBED,), dtype=jnp.float32)

    pparams = prepare_params(conv_w, conv_b, fc_w, fc_b, map_w, map_b)

    fwd = jax.jit(image_encoder_forward, static_argnames=("embed_size",))
    out = fwd(images, pparams, embed_size=EMBED)
    out = jax.block_until_ready(out)

    # Check vs. a plain-JAX mirror of the kernel math (bf16 dot operands, f32
    # accumulation), looser check vs. pure-f32 PyTorch semantics, and the
    # unit-norm property of F.normalize(dim=1).
    ref = reference_forward(images, pparams, embed_size=EMBED)
    ref32 = reference_forward_f32(images, conv_w, conv_b, fc_w, fc_b,
                                  map_w, map_b)
    assert out.shape == (B, EMBED)
    assert jnp.allclose(out, ref, atol=1e-3, rtol=1e-3), "mismatch vs bf16 reference"
    assert jnp.allclose(out, ref32, atol=5e-2, rtol=5e-2), "mismatch vs f32 reference"
    assert jnp.allclose(jnp.linalg.norm(out, axis=1), 1.0, atol=1e-4)

    print("KERNEL_OK")
</pallas_src>

<mosaic_0001>
module attributes {stable_mosaic.version = 11 : i64} {
  func.func @_conv_relu_gap_kernel(%arg0: i32, %arg1: memref<2x18x18x8xbf16, #tpu.memory_space<vmem>>, %arg2: memref<128x128xbf16, #tpu.memory_space<vmem>>, %arg3: memref<1x128xf32, #tpu.memory_space<vmem>>, %arg4: memref<2x128xf32, #tpu.memory_space<vmem>>) attributes {dimension_semantics = [#tpu.dimension_semantics<parallel>], iteration_bounds = array<i64: 1>, scalar_prefetch = 0 : i64, scratch_operands = 0 : i64, tpu.core_type = #tpu.core_type<tc>, window_params = [{transform_indices = @transform_0, window_bounds = array<i64: 2, 18, 18, 8>}, {pipeline_mode = #tpu.pipeline_mode<synchronous>, transform_indices = @transform_1, window_bounds = array<i64: 128, 128>}, {pipeline_mode = #tpu.pipeline_mode<synchronous>, transform_indices = @transform_2, window_bounds = array<i64: 1, 128>}, {transform_indices = @transform_3, window_bounds = array<i64: 2, 128>}]} {
    %c0 = arith.constant 0 : index
    %c0_0 = arith.constant 0 : index
    %c0_1 = arith.constant 0 : index
    %c0_2 = arith.constant 0 : index
    %0 = vector.load %arg1[%c0, %c0_0, %c0_1, %c0_2] : memref<2x18x18x8xbf16, #tpu.memory_space<vmem>>, vector<2x16x16x8xbf16>
    %c0_3 = arith.constant 0 : index
    %c0_4 = arith.constant 0 : index
    %c1 = arith.constant 1 : index
    %c0_5 = arith.constant 0 : index
    %1 = vector.load %arg1[%c0_3, %c0_4, %c1, %c0_5] : memref<2x18x18x8xbf16, #tpu.memory_space<vmem>>, vector<2x16x16x8xbf16>
    %c0_6 = arith.constant 0 : index
    %c0_7 = arith.constant 0 : index
    %c2 = arith.constant 2 : index
    %c0_8 = arith.constant 0 : index
    %2 = vector.load %arg1[%c0_6, %c0_7, %c2, %c0_8] : memref<2x18x18x8xbf16, #tpu.memory_space<vmem>>, vector<2x16x16x8xbf16>
    %c0_9 = arith.constant 0 : index
    %c1_10 = arith.constant 1 : index
    %c0_11 = arith.constant 0 : index
    %c0_12 = arith.constant 0 : index
    %3 = vector.load %arg1[%c0_9, %c1_10, %c0_11, %c0_12] : memref<2x18x18x8xbf16, #tpu.memory_space<vmem>>, vector<2x16x16x8xbf16>
    %c0_13 = arith.constant 0 : index
    %c1_14 = arith.constant 1 : index
    %c1_15 = arith.constant 1 : index
    %c0_16 = arith.constant 0 : index
    %4 = vector.load %arg1[%c0_13, %c1_14, %c1_15, %c0_16] : memref<2x18x18x8xbf16, #tpu.memory_space<vmem>>, vector<2x16x16x8xbf16>
    %c0_17 = arith.constant 0 : index
    %c1_18 = arith.constant 1 : index
    %c2_19 = arith.constant 2 : index
    %c0_20 = arith.constant 0 : index
    %5 = vector.load %arg1[%c0_17, %c1_18, %c2_19, %c0_20] : memref<2x18x18x8xbf16, #tpu.memory_space<vmem>>, vector<2x16x16x8xbf16>
    %c0_21 = arith.constant 0 : index
    %c2_22 = arith.constant 2 : index
    %c0_23 = arith.constant 0 : index
    %c0_24 = arith.constant 0 : index
    %6 = vector.load %arg1[%c0_21, %c2_22, %c0_23, %c0_24] : memref<2x18x18x8xbf16, #tpu.memory_space<vmem>>, vector<2x16x16x8xbf16>
    %c0_25 = arith.constant 0 : index
    %c2_26 = arith.constant 2 : index
    %c1_27 = arith.constant 1 : index
    %c0_28 = arith.constant 0 : index
    %7 = vector.load %arg1[%c0_25, %c2_26, %c1_27, %c0_28] : memref<2x18x18x8xbf16, #tpu.memory_space<vmem>>, vector<2x16x16x8xbf16>
    %c0_29 = arith.constant 0 : index
    %c2_30 = arith.constant 2 : index
    %c2_31 = arith.constant 2 : index
    %c0_32 = arith.constant 0 : index
    %8 = vector.load %arg1[%c0_29, %c2_30, %c2_31, %c0_32] : memref<2x18x18x8xbf16, #tpu.memory_space<vmem>>, vector<2x16x16x8xbf16>
    %cst = arith.constant 0.000000e+00 : bf16
    %9 = vector.broadcast %cst : bf16 to vector<2x16x16x56xbf16>
    %10 = tpu.concatenate %0, %1, %2, %3, %4, %5, %6, %7, %8, %9 in 3 : vector<2x16x16x8xbf16>, vector<2x16x16x8xbf16>, vector<2x16x16x8xbf16>, vector<2x16x16x8xbf16>, vector<2x16x16x8xbf16>, vector<2x16x16x8xbf16>, vector<2x16x16x8xbf16>, vector<2x16x16x8xbf16>, vector<2x16x16x8xbf16>, vector<2x16x16x56xbf16> -> vector<2x16x16x128xbf16>
    %11 = vector.shape_cast %10 : vector<2x16x16x128xbf16> to vector<512x128xbf16>
    %c0_33 = arith.constant 0 : index
    %c0_34 = arith.constant 0 : index
    %12 = vector.load %arg2[%c0_33, %c0_34] : memref<128x128xbf16, #tpu.memory_space<vmem>>, vector<128x128xbf16>
    %cst_35 = arith.constant dense<0.000000e+00> : vector<512x128xf32>
    %13 = tpu.matmul %11, %12, %cst_35 {dimension_numbers = #tpu.dot_dimension_numbers<[1], [0], [0], [1], [0, 0, 1, 1], [], []>} : vector<512x128xbf16>, vector<128x128xbf16>, vector<512x128xf32> -> vector<512x128xf32>
    %c0_36 = arith.constant 0 : index
    %c0_37 = arith.constant 0 : index
    %14 = vector.load %arg3[%c0_36, %c0_37] : memref<1x128xf32, #tpu.memory_space<vmem>>, vector<1x128xf32>
    %15 = vector.broadcast %14 : vector<1x128xf32> to vector<512x128xf32>
    %16 = arith.addf %13, %15 : vector<512x128xf32>
    %cst_38 = arith.constant 0.000000e+00 : f32
    %17 = vector.broadcast %cst_38 : f32 to vector<512x128xf32>
    %18 = arith.maximumf %16, %17 : vector<512x128xf32>
    %19 = vector.shape_cast %18 : vector<512x128xf32> to vector<2x256x128xf32>
    %cst_39 = arith.constant dense<0.000000e+00> : vector<2x128xf32>
    %20 = vector.multi_reduction <add>, %19, %cst_39 [1] : vector<2x256x128xf32> to vector<2x128xf32>
    %cst_40 = arith.constant 3.906250e-03 : f32
    %21 = vector.broadcast %cst_40 : f32 to vector<2x128xf32>
    %22 = arith.mulf %20, %21 : vector<2x128xf32>
    %c0_41 = arith.constant 0 : index
    %c0_42 = arith.constant 0 : index
    %23 = vector.load %arg4[%c0_41, %c0_42] : memref<2x128xf32, #tpu.memory_space<vmem>>, vector<2x128xf32>
    tpu.vector_store %arg4[%c0_41, %c0_42], %22 {strides = array<i32>} : memref<2x128xf32, #tpu.memory_space<vmem>>, vector<2x128xf32>,
    return
  }
  func.func @transform_0(%arg0: i32) -> (i32, i32, i32, i32) {
    %c0_i32 = arith.constant 0 : i32
    %c0_i32_0 = arith.constant 0 : i32
    %c0_i32_1 = arith.constant 0 : i32
    %c0_i32_2 = arith.constant 0 : i32
    return %arg0, %c0_i32, %c0_i32_0, %c0_i32_1 : i32, i32, i32, i32
  }
  func.func @transform_1(%arg0: i32) -> (i32, i32) {
    %c0_i32 = arith.constant 0 : i32
    %c0_i32_0 = arith.constant 0 : i32
    %c0_i32_1 = arith.constant 0 : i32
    return %c0_i32, %c0_i32_0 : i32, i32
  }
  func.func @transform_2(%arg0: i32) -> (i32, i32) {
    %c0_i32 = arith.constant 0 : i32
    %c0_i32_0 = arith.constant 0 : i32
    %c0_i32_1 = arith.constant 0 : i32
    return %c0_i32, %c0_i32_0 : i32, i32
  }
  func.func @transform_3(%arg0: i32) -> (i32, i32) {
    %c0_i32 = arith.constant 0 : i32
    %c0_i32_0 = arith.constant 0 : i32
    return %arg0, %c0_i32 : i32, i32
  }
}

module attributes {stable_mosaic.version = 11 : i64} {
  func.func @_encode_head_kernel(%arg0: memref<2x128xf32, #tpu.memory_space<vmem>>, %arg1: memref<128x128xbf16, #tpu.memory_space<vmem>>, %arg2: memref<1x128xf32, #tpu.memory_space<vmem>>, %arg3: memref<128x128xbf16, #tpu.memory_space<vmem>>, %arg4: memref<1x128xf32, #tpu.memory_space<vmem>>, %arg5: memref<2x128xf32, #tpu.memory_space<vmem>>) attributes {dimension_semantics = [], scalar_prefetch = 0 : i64, scratch_operands = 0 : i64, tpu.core_type = #tpu.core_type<tc>} {
    %c0 = arith.constant 0 : index
    %c0_0 = arith.constant 0 : index
    %0 = vector.load %arg0[%c0, %c0_0] : memref<2x128xf32, #tpu.memory_space<vmem>>, vector<2x128xf32>
    %1 = arith.truncf %0 : vector<2x128xf32> to vector<2x128xbf16>
    %c0_1 = arith.constant 0 : index
    %c0_2 = arith.constant 0 : index
    %2 = vector.load %arg1[%c0_1, %c0_2] : memref<128x128xbf16, #tpu.memory_space<vmem>>, vector<128x128xbf16>
    %cst = arith.constant dense<0.000000e+00> : vector<2x128xf32>
    %3 = tpu.matmul %1, %2, %cst {dimension_numbers = #tpu.dot_dimension_numbers<[1], [0], [0], [1], [0, 0, 1, 1], [], []>} : vector<2x128xbf16>, vector<128x128xbf16>, vector<2x128xf32> -> vector<2x128xf32>
    %c0_3 = arith.constant 0 : index
    %c0_4 = arith.constant 0 : index
    %4 = vector.load %arg2[%c0_3, %c0_4] : memref<1x128xf32, #tpu.memory_space<vmem>>, vector<1x128xf32>
    %5 = vector.broadcast %4 : vector<1x128xf32> to vector<2x128xf32>
    %6 = arith.addf %3, %5 : vector<2x128xf32>
    %cst_5 = arith.constant 0.000000e+00 : f32
    %7 = vector.broadcast %cst_5 : f32 to vector<2x128xf32>
    %8 = arith.maximumf %6, %7 : vector<2x128xf32>
    %9 = arith.truncf %8 : vector<2x128xf32> to vector<2x128xbf16>
    %c0_6 = arith.constant 0 : index
    %c0_7 = arith.constant 0 : index
    %10 = vector.load %arg3[%c0_6, %c0_7] : memref<128x128xbf16, #tpu.memory_space<vmem>>, vector<128x128xbf16>
    %cst_8 = arith.constant dense<0.000000e+00> : vector<2x128xf32>
    %11 = tpu.matmul %9, %10, %cst_8 {dimension_numbers = #tpu.dot_dimension_numbers<[1], [0], [0], [1], [0, 0, 1, 1], [], []>} : vector<2x128xbf16>, vector<128x128xbf16>, vector<2x128xf32> -> vector<2x128xf32>
    %c0_9 = arith.constant 0 : index
    %c0_10 = arith.constant 0 : index
    %12 = vector.load %arg4[%c0_9, %c0_10] : memref<1x128xf32, #tpu.memory_space<vmem>>, vector<1x128xf32>
    %13 = vector.broadcast %12 : vector<1x128xf32> to vector<2x128xf32>
    %14 = arith.addf %11, %13 : vector<2x128xf32>
    %15 = arith.mulf %14, %14 : vector<2x128xf32>
    %cst_11 = arith.constant dense<0.000000e+00> : vector<2xf32>
    %16 = vector.multi_reduction <add>, %15, %cst_11 [1] : vector<2x128xf32> to vector<2xf32>
    %17 = vector.shape_cast %16 : vector<2xf32> to vector<2x1xf32>
    %cst_12 = arith.constant 1.000000e-24 : f32
    %18 = vector.broadcast %cst_12 : f32 to vector<2x1xf32>
    %19 = arith.maximumf %17, %18 : vector<2x1xf32>
    %20 = math.rsqrt %19 : vector<2x1xf32>
    %21 = vector.broadcast %20 : vector<2x1xf32> to vector<2x128xf32>
    %22 = arith.mulf %14, %21 : vector<2x128xf32>
    %c0_13 = arith.constant 0 : index
    %c0_14 = arith.constant 0 : index
    %23 = vector.load %arg5[%c0_13, %c0_14] : memref<2x128xf32, #tpu.memory_space<vmem>>, vector<2x128xf32>
    tpu.vector_store %arg5[%c0_13, %c0_14], %22 {strides = array<i32>} : memref<2x128xf32, #tpu.memory_space<vmem>>, vector<2x128xf32>,
    return
  }
}

</mosaic_0001>

<bundles_post_ra>
// kernel: image_encoder_forward.3
= control target key start
LH: loop header
LB: loop body
LE: loop exit
PB: predicated region body
PF: predicated region fallthrough
CT: control target
= control target key end

     0   :  { %v392_v1 = vmov 0.0   ;;  %vm393_vm0 = vmmov 0   ;;  %s494_s0 = inlined_call_operand.vmem [shape: f32[2,128], index: 0, kind: input, shape index: {}]   ;;  %s495_s1 = inlined_call_operand.vmem [shape: bf16[128,128], index: 1, kind: input, shape index: {}]   ;;  %s496_s2 = inlined_call_operand.vmem [shape: f32[1,128], index: 2, kind: input, shape index: {}]   ;;  %s497_s3 = inlined_call_operand.vmem [shape: bf16[128,128], index: 3, kind: input, shape index: {}]   ;;  %s498_s4 = inlined_call_operand.vmem [shape: f32[1,128], index: 4, kind: input, shape index: {}]   ;;  %s499_s5 = inlined_call_operand.hbm [shape: f32[2,128], index: 5, kind: output, shape index: {}]  }
   0x1   :  { %v350_v0 = vld [vmem:[%s495_s1] sm:$0xff]   ;;  %307 = vmatprep.subr.bf16.mxu0 %v392_v1  ;;  %327 = vmatprep.subr.bf16.mxu1 %v392_v1  ;;  %v351_v2 = vld [vmem:[%s495_s1 + $0x8] sm:$0xff]   ;;  %v352_v3 = vld [vmem:[%s495_s1 + $0x10] sm:$0xff]  }
   0x2   :  { %308 = vmatpush3.bf16.msra.mxu0 %v350_v0  ;;  %323 = vmatprep.mubr.msk.bf16.mxu0 %vm393_vm0, %v392_v1  ;;  %v358_v4 = vld [vmem:[%s497_s3] sm:$0xff]   ;;  %v353_v5 = vld [vmem:[%s495_s1 + $0x18] sm:$0xff]   ;;  %v359_v6 = vld [vmem:[%s497_s3 + $0x8] sm:$0xff]  }
   0x3   :  { %309 = vmatprep.subr.bf16.mxu0 %v392_v1  ;;  %343 = vmatprep.mubr.msk.bf16.mxu1 %vm393_vm0, %v392_v1  ;;  %v354_v7 = vld [vmem:[%s495_s1 + $0x20] sm:$0xff]   ;;  %v360_v8 = vld [vmem:[%s497_s3 + $0x10] sm:$0xff]  }
   0x4   :  { %328 = vmatpush3.bf16.msra.mxu1 %v358_v4 }
   0x5   :  { %329 = vmatprep.subr.bf16.mxu1 %v392_v1 }
   0x6   :  { %310 = vmatpush3.bf16.msra.mxu0 %v351_v2 }
   0x7   :  { %311 = vmatprep.subr.bf16.mxu0 %v392_v1 }
   0x8   :  { %330 = vmatpush3.bf16.msra.mxu1 %v359_v6 }
   0x9   :  { %331 = vmatprep.subr.bf16.mxu1 %v392_v1 }
   0xa   :  { %312 = vmatpush3.bf16.msra.mxu0 %v352_v3 }
   0xb   :  { %313 = vmatprep.subr.bf16.mxu0 %v392_v1 }
   0xe   :  { %314 = vmatpush3.bf16.msra.mxu0 %v353_v5 }
   0xf   :  { %315 = vmatprep.subr.bf16.mxu0 %v392_v1 }
  0x10   :  { %10 = vsyncpa [#allocation3], 0  ;;  %v355_v9 = vld [vmem:[%s495_s1 + $0x28] sm:$0xff]   ;;  %332 = vmatpush3.bf16.msra.mxu1 %v360_v8  ;;  %v361_v10 = vld [vmem:[%s497_s3 + $0x18] sm:$0xff]   ;;  %vm249_vm1 = vcmask 1041408  }
  0x11   :  { %333 = vmatprep.subr.bf16.mxu1 %v392_v1  ;;  %v356_v11 = vld [vmem:[%s495_s1 + $0x30] sm:$0xff]   ;;  %v362_v12 = vld [vmem:[%s497_s3 + $0x20] sm:$0xff]   ;;  %v357_v13 = vld [vmem:[%s495_s1 + $0x38] sm:$0xff]  }
  0x12   :  { %316 = vmatpush3.bf16.msra.mxu0 %v354_v7  ;;  %v22_v14 = vld [vmem:[%s494_s0] sm:$0x3]  ;;  %v363_v15 = vld [vmem:[%s497_s3 + $0x28] sm:$0xff]   ;;  %v364_v17 = vld [vmem:[%s497_s3 + $0x30] sm:$0xff]  }
  0x13   :  { %317 = vmatprep.subr.bf16.mxu0 %v392_v1  ;;  %v23_v16 = vpack.c.bf16 %v22_v14, %v22_v14  ;;  %v365_v18 = vld [vmem:[%s497_s3 + $0x38] sm:$0xff]   ;;  %v271_v19 = vld [vmem:[%s496_s2] ss:$0 sm:$0xff]  ;;  %s394_s2 = smov [#allocation2]  }
  0x14   :  { %334 = vmatpush3.bf16.msra.mxu1 %v361_v10  ;;  %v280_v27 = vld [vmem:[%s498_s4] ss:$0 sm:$0xff]  ;;  %s263_s3 = sshll.u32 %s394_s2, 4  ;;  %s264_s3 = int_to_ptr.vmem [resolvable:$true] %s263_s3 }
  0x15   :  { %335 = vmatprep.subr.bf16.mxu1 %v392_v1  ;;  %s368_s29 = scalar_lea.vmem %s264_s3, 32  ;;  %p373_p1 = scmp.lt.s32.totalorder %s264_s3, %s264_s3 }
  0x16   :  { %318 = vmatpush3.bf16.msra.mxu0 %v355_v9  ;;  %p369_p0 = scmp.ne.s32.totalorder %s264_s3, %s368_s29  ;;  %p374_p2 = scmp.lt.s32.totalorder %s368_s29, %s368_s29 }
  0x17   :  { %319 = vmatprep.subr.bf16.mxu0 %v392_v1 }
  0x18   :  { %336 = vmatpush3.bf16.msra.mxu1 %v362_v12  ;;  %p375_p3 = por %p374_p2, %p373_p1 }
  0x19   :  { %337 = vmatprep.subr.bf16.mxu1 %v392_v1 }
  0x1a   :  { %320 = vmatpush3.bf16.msra.mxu0 %v356_v11  ;;  %p376_p4 = pnand %p375_p3, %p369_p0 }
  0x1b   :  { %321 = vmatprep.subr.bf16.mxu0 %v392_v1 }
  0x1c   :  { %338 = vmatpush3.bf16.msra.mxu1 %v363_v15 }
  0x1d   :  { %339 = vmatprep.subr.bf16.mxu1 %v392_v1 }
  0x1e   :  { %322 = vmatpush3.bf16.msra.mxu0 %v357_v13 }
  0x20   :  { %340 = vmatpush3.bf16.msra.mxu1 %v364_v17 }
  0x21   :  { %324 = vmatmul.mubr.bf16.vlgmr.msra.gmra.mrb[0].mxu0 %v23_v16  ;;  %341 = vmatprep.subr.bf16.mxu1 %v392_v1 }
  0x24   :  { %342 = vmatpush3.bf16.msra.mxu1 %v365_v18 }
  0xf4   :  { %v129_v20 = vpop.f32.mrb[0].mxu0 }
  0xf5   :  { %v130_v21 = vadd.f32 %v271_v19, %v129_v20  ;;  %v325_v22 = vpop.f32.mrb[1].mxu0 }
  0xf6   :  { %v132_v23 = vpop.f32.mrb[2].mxu0 }
  0xf7   :  { %v135_v24 = vmax.f32 %v130_v21, 0.0  ;;  %v326_v25 = vpop.f32.mrb[3].mxu0 }
  0xf9   :  { %v136_v26 = vpack.c.bf16 %v135_v24, %v135_v24 }
  0xfb   :  { %344 = vmatmul.mubr.bf16.vlgmr.msra.gmra.mrb[0].mxu1 %v136_v26 }
 0x1ce   :  { %v242_v28 = vpop.f32.mrb[0].mxu1 }
 0x1cf   :  { %v243_v29 = vadd.f32 %v280_v27, %v242_v28  ;;  %v345_v30 = vpop.f32.mrb[1].mxu1 }
 0x1d0   :  { %v245_v31 = vpop.f32.mrb[2].mxu1 }
 0x1d1   :  { %v346_v32 = vpop.f32.mrb[3].mxu1  ;;  %v248_v33 = vmul.f32 %v243_v29, %v243_v29 }
 0x1d3   :  { %v250_v34 = vsel %vm249_vm1, %v248_v33, 0.0 }
 0x1d4   :  { %251 = vadd.xlane.f32.xlu0 %v250_v34 }
 0x261   :  { %v252_v35 = vpop.xlane.xlu0 %251 }
 0x262   :  { %v253_v36 = vmax.f32 %v252_v35, 1e-24 }
 0x264   :  { %366 = vrsqrt.f32 %v253_v36 }
 0x26e   :  { %v367_v37 = vpop.eup %366 }
 0x26f   :  { %v255_v38 = vmul.f32 %v367_v37, %v243_v29 }
 0x271   :  { %256 = vst [vmem:[#allocation2] sm:$0x3] %v255_v38 }
 0x272   :  { %379 = shalt.err (!%p376_p4)
}
 0x273   :  { %s380_s6 = scalar_lea.hbm %s499_s5, 32 }
 0x274   :  { %p381_p5 = scmp.ne.s32.totalorder %s499_s5, %s380_s6  ;;  %p384_p6 = scmp.lt.u32.totalorder %s380_s6, %s499_s5 }
 0x276   :  { %p386_p7 = pnand %p384_p6, %p381_p5 }
 0x278   :  { %389 = shalt.err (!%p386_p7)
}
 0x279   :  { %266 = dma.vmem_to_hbm [thread:$0]  %s264_s3, 32, %s499_s5, [#allocation3]  }
 0x27a   :  { %390 = dma.done.wait [#allocation3], 32  }
 0x27b   :  { %391 = vsyncadd [#allocation3], 4294967264 }
 0x27c   :  { %270 = vsyncpa [#allocation3], 1 }

// kernel: image_encoder_forward.2
= control target key start
LH: loop header
LB: loop body
LE: loop exit
PB: predicated region body
PF: predicated region fallthrough
CT: control target
= control target key end

     0   :  { %vm657_vm0 = vsmask.f32 7424  ;;  %s5540_s15 = smov 8   ;;  %vm1202_vm1 = vcmask 1046528   ;;  %s5541_s22 = smov 16   ;;  %vm3411_vm2 = vcmask 64512   ;;  %s9176_s0 = inlined_call_operand.vmem [shape: bf16[2,18,18,8], index: 0, kind: input, shape index: {}]   ;;  %s9177_s1 = inlined_call_operand.vmem [shape: bf16[128,128], index: 1, kind: input, shape index: {}]   ;;  %s9178_s2 = inlined_call_operand.vmem [shape: f32[1,128], index: 2, kind: input, shape index: {}]   ;;  %s9179_s3 = inlined_call_operand.vmem [shape: f32[2,128], index: 3, kind: output, shape index: {}]  }
   0x1   :  { %v19_v0 = vld [vmem:[%s9176_s0 + $0x18] sm:$0xf]  ;;  %v5574_v1 = vld [vmem:[%s9176_s0 + $0x1c] sm:$0xf]  ;;  %v15_v4 = vld [vmem:[%s9176_s0] sm:$0xf] }
   0x2   :  { %v5577_v2 = vcombine.low %v19_v0, %v5574_v1  ;;  %v5582_v3 = vld [vmem:[%s9176_s0 + $0x20] ss:$0 sps:$4 sm:$0x11]   ;;  %v5590_v5 = vld [vmem:[%s9176_s0 + $0x4] sm:$0xf]  ;;  %s5542_s20 = smov 24  }
   0x3   :  { %v21_v6 = vld [vmem:[%s9176_s0 + $0x24] sm:$0xf]  ;;  %v690_v9 = vshll.u32 %v5582_v3, 16  ;;  %v5599_v10 = vcombine.low %v15_v4, %v5590_v5  ;;  %v5604_v11 = vld [vmem:[%s9176_s0 + $0x8] ss:$0 sps:$4 sm:$0x11]  }
   0x4   :  { %9233 = vst [vmem:[#allocation2_spill] sm:$0xff] %v5577_v2  ;;  %v683_v7 = vshrl.u32 %v5577_v2, 16  ;;  %v685_v8 = vshll.u32 %v5577_v2, 16  ;;  %v5609_v12 = vld [vmem:[%s9176_s0 + $0x28] sm:$0xf]  ;;  %v666_v19 = vshll.u32 %v5604_v11, 16 }
   0x5   :  { %9234 = vst [vmem:[#allocation3_spill] sm:$0xff] %v5599_v10  ;;  %v17_v13 = vld [vmem:[%s9176_s0 + $0xc] sm:$0xf]  ;;  %v692_v15 = vrot.slane %v690_v9, 1  ;;  %v659_v16 = vshrl.u32 %v5599_v10, 16  ;;  %v661_v17 = vshll.u32 %v5599_v10, 16  ;;  %v5623_v20 = vcombine.low %v21_v6, %v5609_v12 }
   0x6   :  { %v687_v14 = vrot.slane %v685_v8, 1  ;;  %v5619_v18 = vld [vmem:[%s9176_s0 + $0x10] sm:$0xf]  ;;  %v5628_v21 = vld [vmem:[%s9176_s0 + $0x2c] ss:$0 sps:$4 sm:$0x11]  }
   0x7   :  { %9235 = vst [vmem:[#allocation4_spill] sm:$0xff] %v5623_v20  ;;  %v5631_v22 = vcombine.low %v17_v13, %v5619_v18  ;;  %v663_v24 = vrot.slane %v661_v17, 1  ;;  %v5636_v25 = vld [vmem:[%s9176_s0 + $0x14] ss:$0 sps:$4 sm:$0x11]   ;;  %v668_v27 = vrot.slane %v666_v19, 1 }
   0x8   :  { %v688_v23 = vor.u32 %v687_v14, %v683_v7  ;;  %v25_v26 = vld [vmem:[%s9176_s0 + $0x3c] sm:$0xf]  ;;  %v695_v28 = vshrl.u32 %v5623_v20, 16  ;;  %v697_v29 = vshll.u32 %v5623_v20, 16  ;;  %v702_v30 = vshll.u32 %v5628_v21, 16  ;;  %s5543_s5 = smov 32  }
   0x9   :  { %9236 = vst [vmem:[#allocation5_spill] sm:$0xff] %v5631_v22  ;;  %v5647_v31 = vld [vmem:[%s9176_s0 + $0x40] sm:$0xf]  ;;  %v664_v33 = vor.u32 %v663_v24, %v659_v16  ;;  %v671_v34 = vshrl.u32 %v5631_v22, 16  ;;  %v673_v35 = vshll.u32 %v5631_v22, 16  ;;  %v678_v39 = vshll.u32 %v5636_v25, 16 }
   0xa   :  { %v693_v32 = vsel %vm657_vm0, %v688_v23, %v692_v15  ;;  %v23_v36 = vld [vmem:[%s9176_s0 + $0x30] sm:$0xf]  ;;  %v699_v37 = vrot.slane %v697_v29, 1  ;;  %v704_v38 = vrot.slane %v702_v30, 1  ;;  %v5658_v40 = vcombine.low %v25_v26, %v5647_v31  ;;  %v5669_v44 = vld [vmem:[%s9176_s0 + $0x34] sm:$0xf] }
   0xb   :  { %1046 = vrot.lane.b32.xlu1 %v693_v32, %s5540_s15  ;;  %v5663_v41 = vld [vmem:[%s9176_s0 + $0x44] ss:$0 sps:$4 sm:$0x11]   ;;  %v669_v42 = vsel %vm657_vm0, %v664_v33, %v668_v27  ;;  %v675_v43 = vrot.slane %v673_v35, 1  ;;  %v680_v47 = vrot.slane %v678_v39, 1  ;;  %v5682_v53 = vcombine.low %v23_v36, %v5669_v44  ;;  %s5545_s14 = smov 48  }
   0xc   :  { %9237 = vst [vmem:[#allocation6_spill] sm:$0xff] %v5658_v40  ;;  %1042 = vrot.lane.b32.xlu0 %v669_v42, %s5540_s15  ;;  %v700_v46 = vor.u32 %v699_v37, %v695_v28  ;;  %v719_v48 = vshrl.u32 %v5658_v40, 16  ;;  %v721_v49 = vshll.u32 %v5658_v40, 16  ;;  %v5678_v50 = vld [vmem:[%s9176_s0 + $0x38] ss:$0 sps:$4 sm:$0x11]  }
   0xd   :  { %v676_v51 = vor.u32 %v675_v43, %v671_v34  ;;  %v726_v52 = vshll.u32 %v5663_v41, 16  ;;  %9238 = vst [vmem:[#allocation7_spill] sm:$0xff] %v5682_v53  ;;  %v29_v54 = vld [vmem:[%s9176_s0 + $0x54] sm:$0xf]  ;;  %v5690_v55 = vld [vmem:[%s9176_s0 + $0x58] sm:$0xf] }
   0xe   :  { %v705_v57 = vsel %vm657_vm0, %v700_v46, %v704_v38  ;;  %v723_v58 = vrot.slane %v721_v49, 1  ;;  %v714_v59 = vshll.u32 %v5678_v50, 16  ;;  %v5696_v60 = vcombine.low %v29_v54, %v5690_v55  ;;  %v27_v61 = vld [vmem:[%s9176_s0 + $0x48] sm:$0xf]  ;;  %v5716_v14 = vld [vmem:[%s9176_s0 + $0x4c] sm:$0xf] }
   0xf   :  { %1048 = vrot.lane.b32.xlu1 %v705_v57, %s5540_s15  ;;  %v681_v62 = vsel %vm657_vm0, %v676_v51, %v680_v47  ;;  %v728_v63 = vrot.slane %v726_v52, 1  ;;  %v707_v0 = vshrl.u32 %v5682_v53, 16  ;;  %v709_v4 = vshll.u32 %v5682_v53, 16  ;;  %v5708_v6 = vld [vmem:[%s9176_s0 + $0x5c] ss:$0 sps:$4 sm:$0x11]  }
  0x10   :  { %9239 = vst [vmem:[#allocation8_spill] sm:$0xff] %v5696_v60  ;;  %1044 = vrot.lane.b32.xlu0 %v681_v62, %s5540_s15  ;;  %v724_v7 = vor.u32 %v723_v58, %v719_v48  ;;  %v716_v8 = vrot.slane %v714_v59, 1  ;;  %v743_v9 = vshrl.u32 %v5696_v60, 16  ;;  %v745_v13 = vshll.u32 %v5696_v60, 16  ;;  %v33_v19 = vld [vmem:[%s9176_s0 + $0x6c] sm:$0xf] }
  0x11   :  { %v711_v15 = vrot.slane %v709_v4, 1  ;;  %v750_v16 = vshll.u32 %v5708_v6, 16  ;;  %v5720_v17 = vcombine.low %v27_v61, %v5716_v14  ;;  %v5729_v26 = vld [vmem:[%s9176_s0 + $0x50] ss:$0 sps:$4 sm:$0x11]   ;;  %s5546_s7 = smov 56  }
  0x12   :  { %v729_v23 = vsel %vm657_vm0, %v724_v7, %v728_v63  ;;  %v747_v24 = vrot.slane %v745_v13, 1  ;;  %v5734_v27 = vld [vmem:[%s9176_s0 + $0x70] sm:$0xf]  ;;  %v738_v34 = vshll.u32 %v5729_v26, 16  ;;  %v31_v37 = vld [vmem:[%s9176_s0 + $0x60] sm:$0xf] }
  0x13   :  { %9240 = vst [vmem:[#allocation9_spill] sm:$0xff] %v5720_v17  ;;  %1052 = vrot.lane.b32.xlu1 %v729_v23, %s5540_s15  ;;  %v712_v28 = vor.u32 %v711_v15, %v707_v0  ;;  %v752_v29 = vrot.slane %v750_v16, 1  ;;  %v731_v30 = vshrl.u32 %v5720_v17, 16  ;;  %v733_v32 = vshll.u32 %v5720_v17, 16  ;;  %v5755_v42 = vld [vmem:[%s9176_s0 + $0x64] sm:$0xf] }
  0x14   :  { %v748_v33 = vor.u32 %v747_v24, %v743_v9  ;;  %v5741_v35 = vcombine.low %v33_v19, %v5734_v27  ;;  %v5746_v36 = vld [vmem:[%s9176_s0 + $0x74] ss:$0 sps:$4 sm:$0x11]   ;;  %v740_v47 = vrot.slane %v738_v34, 1  ;;  %v5770_v57 = vcombine.low %v31_v37, %v5755_v42  ;;  %v37_v58 = vld [vmem:[%s9176_s0 + $0x84] sm:$0xf] }
  0x15   :  { %v717_v38 = vsel %vm657_vm0, %v712_v28, %v716_v8  ;;  %v735_v39 = vrot.slane %v733_v32, 1  ;;  %v5765_v51 = vld [vmem:[%s9176_s0 + $0x68] ss:$0 sps:$4 sm:$0x11]   ;;  %v774_v54 = vshll.u32 %v5746_v36, 16  ;;  %s5547_s17 = smov 64  }
  0x16   :  { %9241 = vst [vmem:[#allocation10_spill] sm:$0xff] %v5741_v35  ;;  %1050 = vrot.lane.b32.xlu0 %v717_v38, %s5540_s15  ;;  %v753_v46 = vsel %vm657_vm0, %v748_v33, %v752_v29  ;;  %v767_v48 = vshrl.u32 %v5741_v35, 16  ;;  %v769_v49 = vshll.u32 %v5741_v35, 16  ;;  %9242 = vst [vmem:[#allocation11_spill] sm:$0xff] %v5770_v57  ;;  %v5778_v59 = vld [vmem:[%s9176_s0 + $0x88] sm:$0xf] }
  0x17   :  { %1056 = vrot.lane.b32.xlu1 %v753_v46, %s5540_s15  ;;  %v736_v52 = vor.u32 %v735_v39, %v731_v30  ;;  %v762_v63 = vshll.u32 %v5765_v51, 16  ;;  %v5783_v0 = vcombine.low %v37_v58, %v5778_v59  ;;  %v35_v4 = vld [vmem:[%s9176_s0 + $0x78] sm:$0xf]  ;;  %v776_v8 = vrot.slane %v774_v54, 1  ;;  %v5802_v28 = vld [vmem:[%s9176_s0 + $0x7c] sm:$0xf] }
  0x18   :  { %v771_v62 = vrot.slane %v769_v49, 1  ;;  %v755_v9 = vshrl.u32 %v5770_v57, 16  ;;  %v757_v13 = vshll.u32 %v5770_v57, 16  ;;  %v5794_v15 = vld [vmem:[%s9176_s0 + $0x8c] ss:$0 sps:$4 sm:$0x11]   ;;  %v5806_v32 = vcombine.low %v35_v4, %v5802_v28 }
  0x19   :  { %9243 = vst [vmem:[#allocation12_spill] sm:$0xff] %v5783_v0  ;;  %v741_v7 = vsel %vm657_vm0, %v736_v52, %v740_v47  ;;  %v764_v19 = vrot.slane %v762_v63, 1  ;;  %v791_v23 = vshrl.u32 %v5783_v0, 16  ;;  %v793_v24 = vshll.u32 %v5783_v0, 16  ;;  %v41_v33 = vld [vmem:[%s9176_s0 + $0x9c] sm:$0xf] }
  0x1a   :  { %1054 = vrot.lane.b32.xlu0 %v741_v7, %s5540_s15  ;;  %v772_v16 = vor.u32 %v771_v62, %v767_v48  ;;  %v759_v29 = vrot.slane %v757_v13, 1  ;;  %v798_v30 = vshll.u32 %v5794_v15, 16  ;;  %9244 = vst [vmem:[#allocation13_spill] sm:$0xff] %v5806_v32  ;;  %v5815_v38 = vld [vmem:[%s9176_s0 + $0x80] ss:$0 sps:$4 sm:$0x11]  }
  0x1b   :  { %v795_v37 = vrot.slane %v793_v24, 1  ;;  %v5820_v39 = vld [vmem:[%s9176_s0 + $0xa0] sm:$0xf]  ;;  %v779_v48 = vshrl.u32 %v5806_v32, 16  ;;  %v781_v49 = vshll.u32 %v5806_v32, 16  ;;  %v786_v54 = vshll.u32 %v5815_v38, 16 }
  0x1c   :  { %v777_v34 = vsel %vm657_vm0, %v772_v16, %v776_v8  ;;  %v760_v46 = vor.u32 %v759_v29, %v755_v9  ;;  %v800_v47 = vrot.slane %v798_v30, 1  ;;  %v5827_v58 = vcombine.low %v41_v33, %v5820_v39  ;;  %v5832_v62 = vld [vmem:[%s9176_s0 + $0xa4] ss:$0 sps:$4 sm:$0x11]   ;;  %v39_v63 = vld [vmem:[%s9176_s0 + $0x90] sm:$0xf] }
  0x1d   :  { %1060 = vrot.lane.b32.xlu1 %v777_v34, %s5540_s15  ;;  %v796_v52 = vor.u32 %v795_v37, %v791_v23  ;;  %v783_v7 = vrot.slane %v781_v49, 1  ;;  %v5841_v8 = vld [vmem:[%s9176_s0 + $0x94] sm:$0xf]  ;;  %v788_v16 = vrot.slane %v786_v54, 1  ;;  %v822_v30 = vshll.u32 %v5832_v62, 16 }
  0x1e   :  { %9245 = vst [vmem:[#allocation14_spill] sm:$0xff] %v5827_v58  ;;  %v765_v4 = vsel %vm657_vm0, %v760_v46, %v764_v19  ;;  %v815_v23 = vshrl.u32 %v5827_v58, 16  ;;  %v817_v24 = vshll.u32 %v5827_v58, 16  ;;  %v5851_v19 = vld [vmem:[%s9176_s0 + $0x98] ss:$0 sps:$4 sm:$0x11]   ;;  %v5856_v33 = vcombine.low %v39_v63, %v5841_v8 }
  0x1f   :  { %1058 = vrot.lane.b32.xlu0 %v765_v4, %s5540_s15  ;;  %v801_v13 = vsel %vm657_vm0, %v796_v52, %v800_v47  ;;  %v784_v29 = vor.u32 %v783_v7, %v779_v48  ;;  %v45_v34 = vld [vmem:[%s9176_s0 + $0xb4] sm:$0xf]  ;;  %v5864_v37 = vld [vmem:[%s9176_s0 + $0xb8] sm:$0xf]  ;;  %v810_v49 = vshll.u32 %v5851_v19, 16  ;;  %v824_v63 = vrot.slane %v822_v30, 1 }
  0x20   :  { %9246 = vst [vmem:[#allocation15_spill] sm:$0xff] %v5856_v33  ;;  %v819_v47 = vrot.slane %v817_v24, 1  ;;  %v5869_v48 = vcombine.low %v45_v34, %v5864_v37  ;;  %v43_v52 = vld [vmem:[%s9176_s0 + $0xa8] sm:$0xf]  ;;  %v803_v4 = vshrl.u32 %v5856_v33, 16  ;;  %v805_v7 = vshll.u32 %v5856_v33, 16 }
  0x21   :  { %1064 = vrot.lane.b32.xlu1 %v801_v13, %s5540_s15  ;;  %v789_v54 = vsel %vm657_vm0, %v784_v29, %v788_v16  ;;  %v5880_v13 = vld [vmem:[%s9176_s0 + $0xbc] ss:$0 sps:$4 sm:$0x11]   ;;  %v812_v34 = vrot.slane %v810_v49, 1  ;;  %v5888_v16 = vld [vmem:[%s9176_s0 + $0xac] sm:$0xf] }
  0x22   :  { %9247 = vst [vmem:[#allocation16_spill] sm:$0xff] %v5869_v48  ;;  %v820_v24 = vor.u32 %v819_v47, %v815_v23  ;;  %v839_v46 = vshrl.u32 %v5869_v48, 16  ;;  %v841_v9 = vshll.u32 %v5869_v48, 16  ;;  %v807_v29 = vrot.slane %v805_v7, 1  ;;  %v49_v23 = vld [vmem:[%s9176_s0 + $0xe4] sm:$0xf] }
  0x23   :  { %1062 = vrot.lane.b32.xlu0 %v789_v54, %s5540_s15  ;;  %v846_v30 = vshll.u32 %v5880_v13, 16  ;;  %v5892_v61 = vcombine.low %v43_v52, %v5888_v16  ;;  %v5901_v54 = vld [vmem:[%s9176_s0 + $0xb0] ss:$0 sps:$4 sm:$0x11]   ;;  %v5906_v7 = vld [vmem:[%s9176_s0 + $0xe8] sm:$0xf] }
  0x24   :  { %v825_v47 = vsel %vm657_vm0, %v820_v24, %v824_v63  ;;  %v843_v49 = vrot.slane %v841_v9, 1  ;;  %v808_v52 = vor.u32 %v807_v29, %v803_v4  ;;  %v834_v9 = vshll.u32 %v5901_v54, 16  ;;  %v5918_v48 = vld [vmem:[%s9176_s0 + $0xec] ss:$0 sps:$4 sm:$0x11]  }
  0x25   :  { %9248 = vst [vmem:[#allocation17_spill] sm:$0xff] %v5892_v61  ;;  %1068 = vrot.lane.b32.xlu1 %v825_v47, %s5540_s15  ;;  %v848_v43 = vrot.slane %v846_v30, 1  ;;  %v827_v56 = vshrl.u32 %v5892_v61, 16  ;;  %v829_v45 = vshll.u32 %v5892_v61, 16  ;;  %v5913_v24 = vcombine.low %v49_v23, %v5906_v7  ;;  %v47_v4 = vld [vmem:[%s9176_s0 + $0xd8] sm:$0xf] }
  0x26   :  { %v844_v63 = vor.u32 %v843_v49, %v839_v46  ;;  %v813_v29 = vsel %vm657_vm0, %v808_v52, %v812_v34  ;;  %v5927_v46 = vld [vmem:[%s9176_s0 + $0xdc] sm:$0xf]  ;;  %v836_v49 = vrot.slane %v834_v9, 1  ;;  %v870_v52 = vshll.u32 %v5918_v48, 16 }
  0x27   :  { %9249 = vst [vmem:[#allocation18_spill] sm:$0xff] %v5913_v24  ;;  %v831_v30 = vrot.slane %v829_v45, 1  ;;  %1066 = vrot.lane.b32.xlu0 %v813_v29, %s5540_s15  ;;  %v863_v61 = vshrl.u32 %v5913_v24, 16  ;;  %v865_v33 = vshll.u32 %v5913_v24, 16  ;;  %v5942_v23 = vcombine.low %v47_v4, %v5927_v46  ;;  %v51_v4 = vld [vmem:[%s9176_s0 + $0xf0] sm:$0xf] }
  0x28   :  { %v849_v47 = vsel %vm657_vm0, %v844_v63, %v848_v43  ;;  %v5937_v45 = vld [vmem:[%s9176_s0 + $0xe0] ss:$0 sps:$4 sm:$0x11]   ;;  %v53_v43 = vld [vmem:[%s9176_s0 + $0xfc] sm:$0xf]  ;;  %v872_v58 = vrot.slane %v870_v52, 1 }
  0x29   :  { %1072 = vrot.lane.b32.xlu1 %v849_v47, %s5540_s15  ;;  %v832_v34 = vor.u32 %v831_v30, %v827_v56  ;;  %9250 = vst [vmem:[#allocation19_spill] sm:$0xff] %v5942_v23  ;;  %v5950_v63 = vld [vmem:[%s9176_s0 + $0x100] sm:$0xf]  ;;  %v867_v29 = vrot.slane %v865_v33, 1  ;;  %v858_v47 = vshll.u32 %v5937_v45, 16  ;;  %v851_v0 = vshrl.u32 %v5942_v23, 16 }
  0x2a   :  { %v5955_v56 = vcombine.low %v53_v43, %v5950_v63  ;;  %v853_v32 = vshll.u32 %v5942_v23, 16  ;;  %v5966_v33 = vld [vmem:[%s9176_s0 + $0x104] ss:$0 sps:$4 sm:$0x11]   ;;  %vm3476_vm3 = vcmask 130048   ;;  %vm3541_vm4 = vcmask 195584  }
  0x2b   :  { %v837_v30 = vsel %vm657_vm0, %v832_v34, %v836_v49  ;;  %v868_v43 = vor.u32 %v867_v29, %v863_v61  ;;  %v860_v9 = vrot.slane %v858_v47, 1  ;;  %v5974_v49 = vld [vmem:[%s9176_s0 + $0xf4] sm:$0xf]  ;;  %v894_v52 = vshll.u32 %v5966_v33, 16 }
  0x2c   :  { %9251 = vst [vmem:[#allocation20_spill] sm:$0xff] %v5955_v56  ;;  %1070 = vrot.lane.b32.xlu0 %v837_v30, %s5540_s15  ;;  %v887_v57 = vshrl.u32 %v5955_v56, 16  ;;  %v889_v35 = vshll.u32 %v5955_v56, 16  ;;  %v855_v34 = vrot.slane %v853_v32, 1  ;;  %v5978_v17 = vcombine.low %v51_v4, %v5974_v49  ;;  %v57_v61 = vld [vmem:[%s9176_s0 + $0x114] sm:$0xf] }
  0x2d   :  { %v873_v29 = vsel %vm657_vm0, %v868_v43, %v872_v58  ;;  %v5987_v30 = vld [vmem:[%s9176_s0 + $0xf8] ss:$0 sps:$4 sm:$0x11]   ;;  %v896_v60 = vrot.slane %v894_v52, 1  ;;  %vm3606_vm5 = vcmask 261120   ;;  %vm3671_vm6 = vcmask 326656  }
  0x2e   :  { %9252 = vst [vmem:[#allocation21_spill] sm:$0xff] %v5978_v17  ;;  %v891_v47 = vrot.slane %v889_v35, 1  ;;  %v5992_v32 = vld [vmem:[%s9176_s0 + $0x118] sm:$0xf]  ;;  %1076 = vrot.lane.b32.xlu1 %v873_v29, %s5540_s15  ;;  %v856_v4 = vor.u32 %v855_v34, %v851_v0  ;;  %v875_v53 = vshrl.u32 %v5978_v17, 16  ;;  %v877_v40 = vshll.u32 %v5978_v17, 16 }
  0x2f   :  { %v882_v35 = vshll.u32 %v5987_v30, 16  ;;  %v5999_v43 = vcombine.low %v57_v61, %v5992_v32  ;;  %v6004_v56 = vld [vmem:[%s9176_s0 + $0x11c] ss:$0 sps:$4 sm:$0x11]   ;;  %v55_v0 = vld [vmem:[%s9176_s0 + $0x108] sm:$0xf] }
  0x30   :  { %v892_v58 = vor.u32 %v891_v47, %v887_v57  ;;  %v861_v34 = vsel %vm657_vm0, %v856_v4, %v860_v9  ;;  %v879_v52 = vrot.slane %v877_v40, 1  ;;  %v6013_v57 = vld [vmem:[%s9176_s0 + $0x10c] sm:$0xf]  ;;  %v6023_v40 = vld [vmem:[%s9176_s0 + $0x110] ss:$0 sps:$4 sm:$0x11]  }
  0x31   :  { %9253 = vst [vmem:[#allocation22_spill] sm:$0xff] %v5999_v43  ;;  %1074 = vrot.lane.b32.xlu0 %v861_v34, %s5540_s15  ;;  %v884_v47 = vrot.slane %v882_v35, 1  ;;  %v911_v17 = vshrl.u32 %v5999_v43, 16  ;;  %v913_v20 = vshll.u32 %v5999_v43, 16  ;;  %v918_v4 = vshll.u32 %v6004_v56, 16 }
  0x32   :  { %v897_v29 = vsel %vm657_vm0, %v892_v58, %v896_v60  ;;  %v880_v9 = vor.u32 %v879_v52, %v875_v53  ;;  %v6028_v61 = vcombine.low %v55_v0, %v6013_v57  ;;  %v61_v60 = vld [vmem:[%s9176_s0 + $0x12c] sm:$0xf]  ;;  %v6036_v58 = vld [vmem:[%s9176_s0 + $0x130] sm:$0xf]  ;;  %v59_v0 = vld [vmem:[%s9176_s0 + $0x120] sm:$0xf] }
  0x33   :  { %1080 = vrot.lane.b32.xlu1 %v897_v29, %s5540_s15  ;;  %v915_v34 = vrot.slane %v913_v20, 1  ;;  %v906_v29 = vshll.u32 %v6023_v40, 16  ;;  %v6041_v53 = vcombine.low %v61_v60, %v6036_v58  ;;  %v920_v43 = vrot.slane %v918_v4, 1  ;;  %v6052_v20 = vld [vmem:[%s9176_s0 + $0x134] ss:$0 sps:$4 sm:$0x11]  }
  0x34   :  { %9254 = vst [vmem:[#allocation23_spill] sm:$0xff] %v6028_v61  ;;  %v885_v52 = vsel %vm657_vm0, %v880_v9, %v884_v47  ;;  %v899_v2 = vshrl.u32 %v6028_v61, 16  ;;  %v901_v23 = vshll.u32 %v6028_v61, 16  ;;  %9256 = vst [vmem:[#allocation25_spill] sm:$0xff] %v6052_v20  ;;  %v6060_v47 = vld [vmem:[%s9176_s0 + $0x124] sm:$0xf] }
  0x35   :  { %9255 = vst [vmem:[#allocation24_spill] sm:$0xff] %v6041_v53  ;;  %1078 = vrot.lane.b32.xlu0 %v885_v52, %s5540_s15  ;;  %v916_v60 = vor.u32 %v915_v34, %v911_v17  ;;  %v908_v35 = vrot.slane %v906_v29, 1  ;;  %v935_v24 = vshrl.u32 %v6041_v53, 16  ;;  %v937_v22 = vshll.u32 %v6041_v53, 16  ;;  %9257 = vst [vmem:[#allocation26_spill] sm:$0xff] %v6060_v47 }
  0x36   :  { %v903_v9 = vrot.slane %v901_v23, 1  ;;  %v942_v4 = vshll.u32 %v6052_v20, 16  ;;  %v6064_v61 = vcombine.low %v59_v0, %v6060_v47  ;;  %v65_v17 = vld [vmem:[%s9176_s0 + $0x144] sm:$0xf]  ;;  %v6078_v23 = vld [vmem:[%s9176_s0 + $0x148] sm:$0xf] }
  0x37   :  { %v921_v34 = vsel %vm657_vm0, %v916_v60, %v920_v43  ;;  %v939_v29 = vrot.slane %v937_v22, 1  ;;  %v6073_v52 = vld [vmem:[%s9176_s0 + $0x128] ss:$0 sps:$4 sm:$0x11]   ;;  %9260 = vst [vmem:[#allocation29_spill] sm:$0xff] %v6078_v23  ;;  %v6085_v60 = vcombine.low %v65_v17, %v6078_v23  ;;  %vm3736_vm7 = vcmask 392192  }
  0x38   :  { %9258 = vst [vmem:[#allocation27_spill] sm:$0xff] %v6064_v61  ;;  %9259 = vst [vmem:[#allocation28_spill] sm:$0xff] %v6073_v52  ;;  %1084 = vrot.lane.b32.xlu1 %v921_v34, %s5540_s15  ;;  %v904_v0 = vor.u32 %v903_v9, %v899_v2  ;;  %v944_v53 = vrot.slane %v942_v4, 1  ;;  %v923_v10 = vshrl.u32 %v6064_v61, 16  ;;  %v925_v47 = vshll.u32 %v6064_v61, 16 }
  0x39   :  { %v940_v43 = vor.u32 %v939_v29, %v935_v24  ;;  %v930_v22 = vshll.u32 %v6073_v52, 16  ;;  %9261 = vst [vmem:[#allocation30_spill] sm:$0xff] %v6085_v60  ;;  %v6090_v20 = vld [vmem:[%s9176_s0 + $0x14c] ss:$0 sps:$4 sm:$0x11]   ;;  %v959_v61 = vshrl.u32 %v6085_v60, 16 }
  0x3a   :  { %9262 = vst [vmem:[#allocation31_spill] sm:$0xff] %v6090_v20  ;;  %v63_v2 = vld [vmem:[%s9176_s0 + $0x138] sm:$0xf]  ;;  %v909_v9 = vsel %vm657_vm0, %v904_v0, %v908_v35  ;;  %v927_v4 = vrot.slane %v925_v47, 1  ;;  %v6099_v24 = vld [vmem:[%s9176_s0 + $0x13c] sm:$0xf] }
  0x3b   :  { %9263 = vst [vmem:[#allocation32_spill] sm:$0xff] %v6099_v24  ;;  %1082 = vrot.lane.b32.xlu0 %v909_v9, %s5540_s15  ;;  %v945_v34 = vsel %vm657_vm0, %v940_v43, %v944_v53  ;;  %v932_v29 = vrot.slane %v930_v22, 1  ;;  %v961_v23 = vshll.u32 %v6085_v60, 16  ;;  %v6109_v35 = vld [vmem:[%s9176_s0 + $0x140] ss:$0 sps:$4 sm:$0x11]   ;;  %v6114_v17 = vcombine.low %v63_v2, %v6099_v24 }
  0x3c   :  { %9264 = vst [vmem:[#allocation33_spill] sm:$0xff] %v6109_v35  ;;  %1088 = vrot.lane.b32.xlu1 %v945_v34, %s5540_s15  ;;  %v928_v47 = vor.u32 %v927_v4, %v923_v10  ;;  %v966_v0 = vshll.u32 %v6090_v20, 16  ;;  %v69_v53 = vld [vmem:[%s9176_s0 + $0x15c] sm:$0xf]  ;;  %v6122_v43 = vld [vmem:[%s9176_s0 + $0x160] sm:$0xf] }
  0x3d   :  { %9265 = vst [vmem:[#allocation34_spill] sm:$0xff] %v6114_v17  ;;  %9266 = vst [vmem:[#allocation35_spill] sm:$0xff] %v6122_v43  ;;  %v963_v9 = vrot.slane %v961_v23, 1  ;;  %v954_v34 = vshll.u32 %v6109_v35, 16  ;;  %v6127_v10 = vcombine.low %v69_v53, %v6122_v43  ;;  %v67_v2 = vld [vmem:[%s9176_s0 + $0x150] sm:$0xf] }
  0x3e   :  { %v933_v4 = vsel %vm657_vm0, %v928_v47, %v932_v29  ;;  %v968_v60 = vrot.slane %v966_v0, 1  ;;  %v947_v24 = vshrl.u32 %v6114_v17, 16  ;;  %v949_v20 = vshll.u32 %v6114_v17, 16  ;;  %v6138_v23 = vld [vmem:[%s9176_s0 + $0x164] ss:$0 sps:$4 sm:$0x11]  }
  0x3f   :  { %9267 = vst [vmem:[#allocation36_spill] sm:$0xff] %v6127_v10  ;;  %9268 = vst [vmem:[#allocation37_spill] sm:$0xff] %v6138_v23  ;;  %1086 = vrot.lane.b32.xlu0 %v933_v4, %s5540_s15  ;;  %v964_v53 = vor.u32 %v963_v9, %v959_v61  ;;  %v956_v22 = vrot.slane %v954_v34, 1  ;;  %v983_v43 = vshrl.u32 %v6127_v10, 16  ;;  %v985_v35 = vshll.u32 %v6127_v10, 16 }
  0x40   :  { %v6146_v29 = vld [vmem:[%s9176_s0 + $0x154] sm:$0xf]  ;;  %v951_v47 = vrot.slane %v949_v20, 1  ;;  %v990_v0 = vshll.u32 %v6138_v23, 16  ;;  %v6164_v20 = vld [vmem:[%s9176_s0 + $0x178] sm:$0xf] }
  0x41   :  { %9269 = vst [vmem:[#allocation38_spill] sm:$0xff] %v6146_v29  ;;  %v6150_v17 = vcombine.low %v67_v2, %v6146_v29  ;;  %v73_v61 = vld [vmem:[%s9176_s0 + $0x174] sm:$0xf]  ;;  %v969_v9 = vsel %vm657_vm0, %v964_v53, %v968_v60  ;;  %v987_v34 = vrot.slane %v985_v35, 1  ;;  %9272 = vst [vmem:[#allocation41_spill] sm:$0xff] %v6164_v20  ;;  %vm3801_vm8 = vcmask 457728  }
  0x42   :  { %v6159_v4 = vld [vmem:[%s9176_s0 + $0x158] ss:$0 sps:$4 sm:$0x11]   ;;  %1092 = vrot.lane.b32.xlu1 %v969_v9, %s5540_s15  ;;  %v952_v2 = vor.u32 %v951_v47, %v947_v24  ;;  %v992_v10 = vrot.slane %v990_v0, 1  ;;  %v6171_v53 = vcombine.low %v73_v61, %v6164_v20  ;;  %v71_v24 = vld [vmem:[%s9176_s0 + $0x168] sm:$0xf] }
  0x43   :  { %9270 = vst [vmem:[#allocation39_spill] sm:$0xff] %v6150_v17  ;;  %9271 = vst [vmem:[#allocation40_spill] sm:$0xff] %v6159_v4  ;;  %v971_v29 = vshrl.u32 %v6150_v17, 16  ;;  %v973_v23 = vshll.u32 %v6150_v17, 16  ;;  %v988_v60 = vor.u32 %v987_v34, %v983_v43  ;;  %v978_v35 = vshll.u32 %v6159_v4, 16 }
  0x44   :  { %9273 = vst [vmem:[#allocation42_spill] sm:$0xff] %v6171_v53  ;;  %v6176_v52 = vld [vmem:[%s9176_s0 + $0x17c] ss:$0 sps:$4 sm:$0x11]   ;;  %v957_v47 = vsel %vm657_vm0, %v952_v2, %v956_v22  ;;  %v6185_v43 = vld [vmem:[%s9176_s0 + $0x16c] sm:$0xf] }
  0x45   :  { %9274 = vst [vmem:[#allocation43_spill] sm:$0xff] %v6176_v52  ;;  %v975_v0 = vrot.slane %v973_v23, 1  ;;  %9275 = vst [vmem:[#allocation44_spill] sm:$0xff] %v6185_v43  ;;  %1090 = vrot.lane.b32.xlu0 %v957_v47, %s5540_s15  ;;  %v993_v9 = vsel %vm657_vm0, %v988_v60, %v992_v10  ;;  %v980_v34 = vrot.slane %v978_v35, 1  ;;  %v1007_v17 = vshrl.u32 %v6171_v53, 16 }
  0x46   :  { %v1009_v20 = vshll.u32 %v6171_v53, 16  ;;  %v6195_v22 = vld [vmem:[%s9176_s0 + $0x170] ss:$0 sps:$4 sm:$0x11]   ;;  %1096 = vrot.lane.b32.xlu1 %v993_v9, %s5540_s15  ;;  %v1014_v2 = vshll.u32 %v6176_v52, 16  ;;  %v6200_v61 = vcombine.low %v71_v24, %v6185_v43  ;;  %vm3866_vm9 = vcmask 523264  }
  0x47   :  { %9276 = vst [vmem:[#allocation45_spill] sm:$0xff] %v6195_v22  ;;  %v976_v23 = vor.u32 %v975_v0, %v971_v29  ;;  %v77_v10 = vld [vmem:[%s9176_s0 + $0x18c] sm:$0xf]  ;;  %v6208_v60 = vld [vmem:[%s9176_s0 + $0x190] sm:$0xf]  ;;  %v1002_v9 = vshll.u32 %v6195_v22, 16 }
  0x48   :  { %9277 = vst [vmem:[#allocation46_spill] sm:$0xff] %v6200_v61  ;;  %9278 = vst [vmem:[#allocation47_spill] sm:$0xff] %v6208_v60  ;;  %v1011_v47 = vrot.slane %v1009_v20, 1  ;;  %v6213_v29 = vcombine.low %v77_v10, %v6208_v60  ;;  %v75_v24 = vld [vmem:[%s9176_s0 + $0x180] sm:$0xf]  ;;  %v1016_v53 = vrot.slane %v1014_v2, 1 }
  0x49   :  { %v981_v0 = vsel %vm657_vm0, %v976_v23, %v980_v34  ;;  %v995_v43 = vshrl.u32 %v6200_v61, 16  ;;  %v997_v52 = vshll.u32 %v6200_v61, 16  ;;  %v6224_v20 = vld [vmem:[%s9176_s0 + $0x194] ss:$0 sps:$4 sm:$0x11]   ;;  %v1004_v35 = vrot.slane %v1002_v9, 1 }
  0x4a   :  { %9279 = vst [vmem:[#allocation48_spill] sm:$0xff] %v6213_v29  ;;  %9280 = vst [vmem:[#allocation49_spill] sm:$0xff] %v6224_v20  ;;  %1094 = vrot.lane.b32.xlu0 %v981_v0, %s5540_s15  ;;  %v1012_v10 = vor.u32 %v1011_v47, %v1007_v17  ;;  %v1031_v60 = vshrl.u32 %v6213_v29, 16  ;;  %v1033_v22 = vshll.u32 %v6213_v29, 16  ;;  %v6232_v34 = vld [vmem:[%s9176_s0 + $0x184] sm:$0xf] }
  0x4b   :  { %9281 = vst [vmem:[#allocation50_spill] sm:$0xff] %v6232_v34  ;;  %v999_v23 = vrot.slane %v997_v52, 1  ;;  %v1038_v2 = vshll.u32 %v6224_v20, 16  ;;  %v6236_v61 = vcombine.low %v75_v24, %v6232_v34  ;;  %v112_v17 = vld [vmem:[%s9176_s0 + $0xc] sm:$0xe]  ;;  %vm3931_vm10 = vcmask 588800  }
  0x4c   :  { %v1017_v47 = vsel %vm657_vm0, %v1012_v10, %v1016_v53  ;;  %v1035_v9 = vrot.slane %v1033_v22, 1  ;;  %v6245_v0 = vld [vmem:[%s9176_s0 + $0x188] ss:$0 sps:$4 sm:$0x11]   ;;  %v4828_v29 = vcombine.low %v112_v17, %v5619_v18  ;;  %v111_v52 = vld [vmem:[%s9176_s0] sm:$0xe] }
  0x4d   :  { %9282 = vst [vmem:[#allocation51_spill] sm:$0xff] %v6236_v61  ;;  %9283 = vst [vmem:[#allocation52_spill] sm:$0xff] %v6245_v0  ;;  %1100 = vrot.lane.b32.xlu1 %v1017_v47, %s5540_s15  ;;  %v1000_v24 = vor.u32 %v999_v23, %v995_v43  ;;  %v1040_v34 = vrot.slane %v1038_v2, 1  ;;  %v1019_v20 = vshrl.u32 %v6236_v61, 16  ;;  %v1021_v53 = vshll.u32 %v6236_v61, 16 }
  0x4e   :  { %v114_v22 = vld [vmem:[%s9176_s0 + $0x24] sm:$0xe]  ;;  %v1036_v10 = vor.u32 %v1035_v9, %v1031_v60  ;;  %v1026_v4 = vshll.u32 %v6245_v0, 16  ;;  %v1206_v18 = vrot.slane %v4828_v29, 1  ;;  %v4827_v17 = vcombine.low %v111_v52, %v5590_v5  ;;  %v113_v47 = vld [vmem:[%s9176_s0 + $0x18] sm:$0xe] }
  0x4f   :  { %v116_v43 = vld [vmem:[%s9176_s0 + $0x3c] sm:$0xe]  ;;  %v1005_v23 = vsel %vm657_vm0, %v1000_v24, %v1004_v35  ;;  %v1023_v2 = vrot.slane %v1021_v53, 1  ;;  %v4830_v61 = vcombine.low %v114_v22, %v5609_v12  ;;  %v4829_v60 = vcombine.low %v113_v47, %v5574_v1  ;;  %v115_v29 = vld [vmem:[%s9176_s0 + $0x30] sm:$0xe] }
  0x50   :  { %v118_v5 = vld [vmem:[%s9176_s0 + $0x54] sm:$0xe]  ;;  %1098 = vrot.lane.b32.xlu0 %v1005_v23, %s5540_s15  ;;  %v1041_v9 = vsel %vm657_vm0, %v1036_v10, %v1040_v34  ;;  %v1028_v52 = vrot.slane %v1026_v4, 1  ;;  %v9284_v35 = vrot.slane %v5636_v25, 1  ;;  %v1203_v12 = vrot.slane %v4827_v17, 1 }
  0x51   :  { %v117_v1 = vld [vmem:[%s9176_s0 + $0x48] sm:$0xe]  ;;  %1104 = vrot.lane.b32.xlu1 %v1041_v9, %s5540_s15  ;;  %v1024_v53 = vor.u32 %v1023_v2, %v1019_v20  ;;  %v1212_v22 = vrot.slane %v4830_v61, 1  ;;  %v1209_v47 = vrot.slane %v4829_v60, 1  ;;  %v4832_v0 = vcombine.low %v116_v43, %v5647_v31  ;;  %v120_v4 = vld [vmem:[%s9176_s0 + $0x6c] sm:$0xe] }
  0x52   :  { %v1208_v24 = vsel %vm1202_vm1, %v1206_v18, %v9284_v35  ;;  %v9285_v25 = vrot.slane %v5604_v11, 1  ;;  %v4831_v10 = vcombine.low %v115_v29, %v5669_v44  ;;  %v4834_v18 = vcombine.low %v118_v5, %v5690_v55  ;;  %v119_v61 = vld [vmem:[%s9176_s0 + $0x60] sm:$0xe]  ;;  %v122_v31 = vld [vmem:[%s9176_s0 + $0x84] sm:$0xe] }
  0x53   :  { %v4833_v17 = vcombine.low %v117_v1, %v5716_v14  ;;  %v121_v11 = vld [vmem:[%s9176_s0 + $0x78] sm:$0xe]  ;;  %v1029_v20 = vsel %vm657_vm0, %v1024_v53, %v1028_v52  ;;  %v9286_v44 = vrot.slane %v5628_v21, 1  ;;  %v9287_v14 = vrot.slane %v5582_v3, 1  ;;  %v124_v9 = vld [vmem:[%s9176_s0 + $0x9c] sm:$0xe] }
  0x54   :  { %v1205_v34 = vsel %vm1202_vm1, %v1203_v12, %v9285_v25  ;;  %v1218_v23 = vrot.slane %v4832_v0, 1  ;;  %1102 = vrot.lane.b32.xlu0 %v1029_v20, %s5540_s15  ;;  %v1215_v2 = vrot.slane %v4831_v10, 1  ;;  %v1224_v60 = vrot.slane %v4834_v18, 1  ;;  %v126_v12 = vld [vmem:[%s9176_s0 + $0xb4] sm:$0xe]  ;;  %s5544_s15 = smov 40  }
  0x55   :  { %v1214_v55 = vsel %vm1202_vm1, %v1212_v22, %v9286_v44  ;;  %v1211_v43 = vsel %vm1202_vm1, %v1209_v47, %v9287_v14  ;;  %v1221_v29 = vrot.slane %v4833_v17, 1  ;;  %v4836_v5 = vcombine.low %v120_v4, %v5734_v27  ;;  %1301 = vrot.lane.b32.xlu1 %v1208_v24, %s5541_s22  ;;  %v123_v27 = vld [vmem:[%s9176_s0 + $0x90] sm:$0xe]  ;;  %v130_v14 = vld [vmem:[%s9176_s0 + $0xfc] sm:$0xe] }
  0x56   :  { %v9288_v21 = vrot.slane %v5663_v41, 1  ;;  %v4835_v0 = vcombine.low %v119_v61, %v5755_v42  ;;  %v4838_v52 = vcombine.low %v122_v31, %v5778_v59  ;;  %v4837_v35 = vcombine.low %v121_v11, %v5802_v28  ;;  %v127_v61 = vld [vmem:[%s9176_s0 + $0xd8] sm:$0xe] }
  0x57   :  { %v9289_v24 = vrot.slane %v5678_v50, 1  ;;  %v9290_v1 = vrot.slane %v5708_v6, 1  ;;  %v9291_v59 = vrot.slane %v5729_v26, 1  ;;  %v1230_v53 = vrot.slane %v4836_v5, 1  ;;  %v125_v50 = vld [vmem:[%s9176_s0 + $0xa8] sm:$0xe] }
  0x58   :  { %v1220_v3 = vsel %vm1202_vm1, %v1218_v23, %v9288_v21  ;;  %v1227_v22 = vrot.slane %v4835_v0, 1  ;;  %v1236_v47 = vrot.slane %v4838_v52, 1  ;;  %v1233_v4 = vrot.slane %v4837_v35, 1  ;;  %1299 = vrot.lane.b32.xlu0 %v1205_v34, %s5541_s22 }
  0x59   :  { %v1217_v41 = vsel %vm1202_vm1, %v1215_v2, %v9289_v24  ;;  %v1226_v42 = vsel %vm1202_vm1, %v1224_v60, %v9290_v1  ;;  %v6336_v28 = vsel %vm1202_vm1, %v1221_v29, %v9291_v59  ;;  %v4840_v25 = vcombine.low %v124_v9, %v5820_v39  ;;  %v128_v39 = vld [vmem:[%s9176_s0 + $0xe4] sm:$0xe]  ;;  %1305 = vrot.lane.b32.xlu1 %v1214_v55, %s5541_s22 }
  0x5a   :  { %v9292_v6 = vrot.slane %v5746_v36, 1  ;;  %v4839_v26 = vcombine.low %v123_v27, %v5841_v8  ;;  %v4842_v18 = vcombine.low %v126_v12, %v5864_v37  ;;  %v1249_v17 = vrot.slane %v5880_v13, 1  ;;  %v136_v59 = vld [vmem:[%s9176_s0 + $0x144] sm:$0xe] }
  0x5b   :  { %v9293_v36 = vrot.slane %v5765_v51, 1  ;;  %v9294_v8 = vrot.slane %v5794_v15, 1  ;;  %v9295_v13 = vrot.slane %v5815_v38, 1  ;;  %v1242_v11 = vrot.slane %v4840_v25, 1 }
  0x5c   :  { %v6346_v10 = vsel %vm1202_vm1, %v1230_v53, %v9292_v6  ;;  %v1239_v20 = vrot.slane %v4839_v26, 1  ;;  %v1248_v44 = vrot.slane %v4842_v18, 1  ;;  %v4841_v55 = vcombine.low %v125_v50, %v5888_v16  ;;  %v129_v16 = vld [vmem:[%s9176_s0 + $0xf0] sm:$0xe]  ;;  %1303 = vrot.lane.b32.xlu0 %v1211_v43, %s5541_s22 }
  0x5d   :  { %v6361_v34 = vsel %vm1202_vm1, %v1227_v22, %v9293_v36  ;;  %v6366_v37 = vsel %vm1202_vm1, %v1236_v47, %v9294_v8  ;;  %v6371_v31 = vsel %vm1202_vm1, %v1233_v4, %v9295_v13  ;;  %v1246_v51 = vrot.slane %v5901_v54, 1  ;;  %v132_v54 = vld [vmem:[%s9176_s0 + $0x114] sm:$0xe]  ;;  %1309 = vrot.lane.b32.xlu1 %v1220_v3, %s5541_s22  ;;  %v134_v3 = vld [vmem:[%s9176_s0 + $0x12c] sm:$0xe]  ;;  %v9298_v47 = vld [vmem:[#allocation25_spill] sm:$0xff] }
  0x5e   :  { %v9296_v15 = vrot.slane %v5832_v62, 1  ;;  %v4844_v38 = vcombine.low %v128_v39, %v5906_v7  ;;  %v1255_v2 = vrot.slane %v5918_v48, 1  ;;  %v4843_v60 = vcombine.low %v127_v61, %v5927_v46  ;;  %v9299_v4 = vld [vmem:[#allocation26_spill] sm:$0xff]  ;;  %v9300_v6 = vld [vmem:[#allocation28_spill] sm:$0xff]  ;;  %v9302_v61 = vld [vmem:[#allocation31_spill] sm:$0xff] }
  0x5f   :  { %v9297_v62 = vrot.slane %v5851_v19, 1  ;;  %v6399_v7 = vsel %vm1202_vm1, %v1248_v44, %v1249_v17  ;;  %v1245_v48 = vrot.slane %v4841_v55, 1  ;;  %v1252_v46 = vrot.slane %v5937_v45, 1  ;;  %v131_v19 = vld [vmem:[%s9176_s0 + $0x108] sm:$0xe]  ;;  %v9301_v17 = vld [vmem:[#allocation29_spill] sm:$0xff] }
  0x60   :  { %v6381_v23 = vsel %vm1202_vm1, %v1242_v11, %v9296_v15  ;;  %v1254_v5 = vrot.slane %v4844_v38, 1  ;;  %v1251_v9 = vrot.slane %v4843_v60, 1  ;;  %v4846_v21 = vcombine.low %v130_v14, %v5950_v63  ;;  %v133_v63 = vld [vmem:[%s9176_s0 + $0x120] sm:$0xe]  ;;  %1307 = vrot.lane.b32.xlu0 %v1217_v41, %s5541_s22  ;;  %v137_v8 = vld [vmem:[%s9176_s0 + $0x150] sm:$0xe] }
  0x61   :  { %v6396_v29 = vsel %vm1202_vm1, %v1239_v20, %v9297_v62  ;;  %v1261_v0 = vrot.slane %v5966_v33, 1  ;;  %v6409_v43 = vsel %vm1202_vm1, %v1245_v48, %v1246_v51  ;;  %v4845_v52 = vcombine.low %v129_v16, %v5974_v49  ;;  %1313 = vrot.lane.b32.xlu1 %v1226_v42, %s5541_s22  ;;  %v138_v42 = vld [vmem:[%s9176_s0 + $0x15c] sm:$0xe]  ;;  %v9303_v11 = vld [vmem:[#allocation32_spill] sm:$0xff]  ;;  %v139_v60 = vld [vmem:[%s9176_s0 + $0x168] sm:$0xe] }
  0x62   :  { %v1258_v35 = vrot.slane %v5987_v30, 1  ;;  %v4848_v45 = vcombine.low %v132_v54, %v5992_v32  ;;  %v6421_v33 = vsel %vm1202_vm1, %v1254_v5, %v1255_v2  ;;  %v6424_v27 = vsel %vm1202_vm1, %v1251_v9, %v1252_v46  ;;  %v9304_v44 = vld [vmem:[#allocation33_spill] sm:$0xff]  ;;  %v140_v51 = vld [vmem:[%s9176_s0 + $0x174] sm:$0xe]  ;;  %v9305_v2 = vld [vmem:[#allocation35_spill] sm:$0xff] }
  0x63   :  { %v1260_v12 = vrot.slane %v4846_v21, 1  ;;  %v1267_v49 = vrot.slane %v6004_v56, 1  ;;  %v1257_v30 = vrot.slane %v4845_v52, 1  ;;  %v4847_v24 = vcombine.low %v131_v19, %v6013_v57  ;;  %v135_v57 = vld [vmem:[%s9176_s0 + $0x138] sm:$0xe]  ;;  %v9307_v48 = vld [vmem:[#allocation38_spill] sm:$0xff] }
  0x64   :  { %v1266_v32 = vrot.slane %v4848_v45, 1  ;;  %v1264_v1 = vrot.slane %v6023_v40, 1  ;;  %v4850_v22 = vcombine.low %v134_v3, %v6036_v58  ;;  %v1273_v56 = vrot.slane %v9298_v47, 1  ;;  %1311 = vrot.lane.b32.xlu0 %v6336_v28, %s5541_s22  ;;  %v9306_v54 = vld [vmem:[#allocation37_spill] sm:$0xff]  ;;  %v9308_v5 = vld [vmem:[#allocation40_spill] sm:$0xff] }
  0x65   :  { %v1262_v53 = vsel %vm1202_vm1, %v1260_v12, %v1261_v0  ;;  %v4849_v41 = vcombine.low %v133_v63, %v9299_v4  ;;  %v1259_v40 = vsel %vm1202_vm1, %v1257_v30, %v1258_v35  ;;  %v1263_v50 = vrot.slane %v4847_v24, 1  ;;  %1317 = vrot.lane.b32.xlu1 %v6346_v10, %s5541_s22  ;;  %v142_v10 = vld [vmem:[%s9176_s0 + $0x18c] sm:$0xe]  ;;  %v9309_v19 = vld [vmem:[#allocation41_spill] sm:$0xff]  ;;  %v141_v3 = vld [vmem:[%s9176_s0 + $0x180] sm:$0xe] }
  0x66   :  { %v1268_v25 = vsel %vm1202_vm1, %v1266_v32, %v1267_v49  ;;  %v1270_v26 = vrot.slane %v9300_v6, 1  ;;  %v1272_v58 = vrot.slane %v4850_v22, 1  ;;  %v4852_v39 = vcombine.low %v136_v59, %v9301_v17  ;;  %v9310_v35 = vld [vmem:[#allocation43_spill] sm:$0xff]  ;;  %v9311_v49 = vld [vmem:[#allocation44_spill] sm:$0xff]  ;;  %v9312_v32 = vld [vmem:[#allocation45_spill] sm:$0xff] }
  0x67   :  { %v1269_v18 = vrot.slane %v4849_v41, 1  ;;  %v1279_v36 = vrot.slane %v9302_v61, 1  ;;  %v1265_v13 = vsel %vm1202_vm1, %v1263_v50, %v1264_v1  ;;  %v4851_v20 = vcombine.low %v135_v57, %v9303_v11  ;;  %v9313_v22 = vld [vmem:[#allocation47_spill] sm:$0xff]  ;;  %v9315_v57 = vld [vmem:[#allocation50_spill] sm:$0xff]  ;;  %v9316_v6 = vld [vmem:[#allocation52_spill] sm:$0xff] }
  0x68   :  { %v1276_v55 = vrot.slane %v9304_v44, 1  ;;  %v1274_v14 = vsel %vm1202_vm1, %v1272_v58, %v1273_v56  ;;  %v1278_v38 = vrot.slane %v4852_v39, 1  ;;  %v4854_v28 = vcombine.low %v138_v42, %v9305_v2  ;;  %1315 = vrot.lane.b32.xlu0 %v6361_v34, %s5541_s22  ;;  %v9314_v56 = vld [vmem:[#allocation49_spill] sm:$0xff]  ;;  %v6561_v11 = vld [vmem:[%s9176_s0 + $0x10] sm:$0xf] }
  0x69   :  { %v1271_v15 = vsel %vm1202_vm1, %v1269_v18, %v1270_v26  ;;  %v1275_v16 = vrot.slane %v4851_v20, 1  ;;  %v1285_v62 = vrot.slane %v9306_v54, 1  ;;  %v4853_v46 = vcombine.low %v137_v8, %v9307_v48  ;;  %1321 = vrot.lane.b32.xlu1 %v6366_v37, %s5541_s22  ;;  %v6546_v61 = vld [vmem:[%s9176_s0 + $0x1c] sm:$0xf]  ;;  %v4513_v44 = vld [vmem:[%s9176_s0 + $0x30] sm:$0xf] }
  0x6a   :  { %v1282_v9 = vrot.slane %v9308_v5, 1  ;;  %v1280_v21 = vsel %vm1202_vm1, %v1278_v38, %v1279_v36  ;;  %v1284_v0 = vrot.slane %v4854_v28, 1  ;;  %v4856_v52 = vcombine.low %v140_v51, %v9309_v19  ;;  %v4511_v38 = vld [vmem:[%s9176_s0 + $0x24] sm:$0xf]  ;;  %v6590_v2 = vld [vmem:[%s9176_s0 + $0x28] sm:$0xf] }
  0x6b   :  { %v1291_v45 = vrot.slane %v9310_v35, 1  ;;  %v1277_v63 = vsel %vm1202_vm1, %v1275_v16, %v1276_v55  ;;  %v1281_v12 = vrot.slane %v4853_v46, 1  ;;  %v4855_v30 = vcombine.low %v139_v60, %v9311_v49  ;;  %v6571_v55 = vld [vmem:[%s9176_s0 + $0x34] sm:$0xf]  ;;  %v4517_v28 = vld [vmem:[%s9176_s0 + $0x48] sm:$0xf] }
  0x6c   :  { %v1288_v24 = vrot.slane %v9312_v32, 1  ;;  %v1286_v1 = vsel %vm1202_vm1, %v1284_v0, %v1285_v62  ;;  %v1290_v59 = vrot.slane %v4856_v52, 1  ;;  %v4858_v47 = vcombine.low %v142_v10, %v9313_v22  ;;  %1319 = vrot.lane.b32.xlu0 %v6371_v31, %s5541_s22  ;;  %v4518_v60 = vld [vmem:[%s9176_s0 + $0x4c] sm:$0xf]  ;;  %v4515_v48 = vld [vmem:[%s9176_s0 + $0x3c] sm:$0xf] }
  0x6d   :  { %v1297_v4 = vrot.slane %v9314_v56, 1  ;;  %v1283_v41 = vsel %vm1202_vm1, %v1281_v12, %v1282_v9  ;;  %v1287_v34 = vrot.slane %v4855_v30, 1  ;;  %v4857_v50 = vcombine.low %v141_v3, %v9315_v57  ;;  %1325 = vrot.lane.b32.xlu1 %v6381_v23, %s5541_s22  ;;  %v4516_v46 = vld [vmem:[%s9176_s0 + $0x40] sm:$0xf]  ;;  %v4522_v10 = vld [vmem:[%s9176_s0 + $0x64] sm:$0xf] }
  0x6e   :  { %v1294_v26 = vrot.slane %v9316_v6, 1  ;;  %v1292_v42 = vsel %vm1202_vm1, %v1290_v59, %v1291_v45  ;;  %v1296_v58 = vrot.slane %v4858_v47, 1  ;;  %v6603_v54 = vcombine.low %v4511_v38, %v6590_v2  ;;  %v4521_v9 = vld [vmem:[%s9176_s0 + $0x60] sm:$0xf]  ;;  %v6631_v19 = vld [vmem:[%s9176_s0 + $0xe8] sm:$0xf] }
  0x6f   :  { %v1289_v37 = vsel %vm1202_vm1, %v1287_v34, %v1288_v24  ;;  %v1293_v18 = vrot.slane %v4857_v50, 1  ;;  %v6607_v62 = vcombine.low %v4517_v28, %v4518_v60  ;;  %v6635_v52 = vcombine.low %v4515_v48, %v4516_v46  ;;  %v4519_v45 = vld [vmem:[%s9176_s0 + $0x54] sm:$0xf]  ;;  %v4520_v3 = vld [vmem:[%s9176_s0 + $0x58] sm:$0xf] }
  0x70   :  { %v1298_v17 = vsel %vm1202_vm1, %v1296_v58, %v1297_v4  ;;  %1323 = vrot.lane.b32.xlu0 %v6396_v29, %s5541_s22  ;;  %v6639_v35 = vcombine.low %v4521_v9, %v4522_v10  ;;  %v4525_v12 = vld [vmem:[%s9176_s0 + $0x78] sm:$0xf]  ;;  %v4526_v49 = vld [vmem:[%s9176_s0 + $0x7c] sm:$0xf]  ;;  %v4541_v32 = vld [vmem:[%s9176_s0 + $0xf0] sm:$0xf] }
  0x71   :  { %v1295_v39 = vsel %vm1202_vm1, %v1293_v18, %v1294_v26  ;;  %1329 = vrot.lane.b32.xlu1 %v6399_v7, %s5541_s22  ;;  %v6664_v24 = vld [vmem:[%s9176_s0 + $0xf4] sm:$0xf]  ;;  %v4523_v59 = vld [vmem:[%s9176_s0 + $0x6c] sm:$0xf]  ;;  %v6675_v22 = vcombine.low %v4525_v12, %v4526_v49  ;;  %v4524_v47 = vld [vmem:[%s9176_s0 + $0x70] sm:$0xf] }
  0x72   :  { %v6685_v4 = vld [vmem:[%s9176_s0 + $0xec] ss:$0 sps:$4 sm:$0x11]   ;;  %v4530_v34 = vld [vmem:[%s9176_s0 + $0x94] sm:$0xf]  ;;  %v4876_v57 = vcombine.low %v4541_v32, %v6664_v24  ;;  %v6698_v26 = vcombine.low %v4523_v59, %v4524_v47  ;;  %vm4499_vm11 = vcmask 1041409  }
  0x73   :  { %v4527_v58 = vld [vmem:[%s9176_s0 + $0x84] sm:$0xf]  ;;  %v4528_v18 = vld [vmem:[%s9176_s0 + $0x88] sm:$0xf] }
  0x74   :  { %1327 = vrot.lane.b32.xlu0 %v6409_v43, %s5541_s22  ;;  %v6724_v28 = vld [vmem:[%s9176_s0 + $0xf8] ss:$0 sps:$4 sm:$0x11]   ;;  %v6728_v60 = vcombine.low %v4527_v58, %v4528_v18  ;;  %v1888_v49 = vshrl.u32 %v4876_v57, 16  ;;  %v4619_v47 = vld [vmem:[%s9176_s0 + $0xe4] sm:$0xe] }
  0x75   :  { %1333 = vrot.lane.b32.xlu1 %v6421_v33, %s5541_s22  ;;  %v1895_v59 = vshll.u32 %v6724_v28, 16 }
  0x78   :  { %1331 = vrot.lane.b32.xlu0 %v6424_v27, %s5541_s22 }
  0x79   :  { %1337 = vrot.lane.b32.xlu1 %v1262_v53, %s5541_s22 }
  0x7c   :  { %1335 = vrot.lane.b32.xlu0 %v1259_v40, %s5541_s22 }
  0x7d   :  { %v6512_v31 = vpop.permute.xlu1 %1046  ;;  %1341 = vrot.lane.b32.xlu1 %v1268_v25, %s5541_s22  ;;  %v4509_v25 = vld [vmem:[%s9176_s0 + $0x18] sm:$0xf] }
  0x7e   :  { %v6515_v23 = vpop.permute.xlu0 %1042  ;;  %v6553_v8 = vcombine.low %v4509_v25, %v6546_v61  ;;  %v6718_v25 = vld [vmem:[%s9176_s0 + $0x14] ss:$0 sps:$4 sm:$0x11]  }
  0x80   :  { %1339 = vrot.lane.b32.xlu0 %v1265_v13, %s5541_s22  ;;  %v4507_v13 = vld [vmem:[%s9176_s0 + $0xc] sm:$0xf]  ;;  %v1698_v10 = vshll.u32 %v6553_v8, 16 }
  0x81   :  { %v6518_v29 = vpop.permute.xlu1 %1048  ;;  %1345 = vrot.lane.b32.xlu1 %v1274_v14, %s5541_s22  ;;  %v6575_v51 = vcombine.low %v4507_v13, %v6561_v11  ;;  %v1890_v13 = vshll.u32 %v4876_v57, 16 }
  0x82   :  { %v6521_v7 = vpop.permute.xlu0 %1044  ;;  %v1700_v58 = vrot.slane %v1698_v10, 1 }
  0x83   :  { %v1686_v6 = vshll.u32 %v6575_v51, 16  ;;  %v1684_v46 = vshrl.u32 %v6575_v51, 16  ;;  %v1892_v32 = vrot.slane %v1890_v13, 1  ;;  %v4939_v13 = vcombine.low %v4619_v47, %v6631_v19 }
  0x84   :  { %1343 = vrot.lane.b32.xlu0 %v1271_v15, %s5541_s22  ;;  %v6582_v15 = vcombine.low %v4513_v44, %v6571_v55  ;;  %v2276_v47 = vrot.slane %v6685_v4, 1 }
  0x85   :  { %v6524_v43 = vpop.permute.xlu1 %1052  ;;  %1349 = vrot.lane.b32.xlu1 %v1280_v21, %s5541_s22  ;;  %v4539_v21 = vld [vmem:[%s9176_s0 + $0xe4] sm:$0xf]  ;;  %v1688_v9 = vrot.slane %v1686_v6, 1  ;;  %v1696_v6 = vshrl.u32 %v6553_v8, 16 }
  0x86   :  { %9317 = vst [vmem:[#allocation25_spill] sm:$0xff] %v6524_v43  ;;  %v6656_v30 = vcombine.low %v4539_v21, %v6631_v19  ;;  %v4604_v19 = vld [vmem:[%s9176_s0 + $0x18] sm:$0xe] }
  0x88   :  { %v6528_v33 = vpop.permute.xlu0 %1050  ;;  %1347 = vrot.lane.b32.xlu0 %v1277_v63, %s5541_s22  ;;  %v1878_v50 = vshll.u32 %v6656_v30, 16  ;;  %v1876_v44 = vshrl.u32 %v6656_v30, 16 }
  0x89   :  { %9318 = vst [vmem:[#allocation26_spill] sm:$0xff] %v6528_v33  ;;  %v6530_v27 = vpop.permute.xlu1 %1056  ;;  %1353 = vrot.lane.b32.xlu1 %v1286_v1, %s5541_s22  ;;  %v6668_v1 = vcombine.low %v4519_v45, %v4520_v3  ;;  %v1691_v45 = vshll.u32 %v6718_v25, 16  ;;  %v6740_v3 = vld [vmem:[%s9176_s0 + $0x20] ss:$0 sps:$4 sm:$0x11]  }
  0x8a   :  { %9319 = vst [vmem:[#allocation28_spill] sm:$0xff] %v6530_v27  ;;  %v1880_v38 = vrot.slane %v1878_v50, 1  ;;  %v1703_v18 = vshll.u32 %v6740_v3, 16 }
  0x8b   :  { %v1693_v50 = vrot.slane %v1691_v45, 1 }
  0x8c   :  { %v6534_v53 = vpop.permute.xlu0 %1054  ;;  %1351 = vrot.lane.b32.xlu0 %v1283_v41, %s5541_s22  ;;  %v4529_v41 = vld [vmem:[%s9176_s0 + $0x90] sm:$0xf]  ;;  %v1881_v12 = vor.u32 %v1880_v38, %v1876_v44 }
  0x8d   :  { %9320 = vst [vmem:[#allocation29_spill] sm:$0xff] %v6534_v53  ;;  %1357 = vrot.lane.b32.xlu1 %v1292_v42, %s5541_s22 }
  0x8f   :  { %v6538_v40 = vpop.permute.xlu1 %1060 }
  0x90   :  { %9321 = vst [vmem:[#allocation31_spill] sm:$0xff] %v6538_v40  ;;  %1355 = vrot.lane.b32.xlu0 %v1289_v37, %s5541_s22  ;;  %v6707_v37 = vcombine.low %v4529_v41, %v4530_v34  ;;  %v1689_v34 = vor.u32 %v1688_v9, %v1684_v46  ;;  %v1893_v46 = vor.u32 %v1892_v32, %v1888_v49  ;;  %v1897_v9 = vrot.slane %v1895_v59, 1 }
  0x91   :  { %v6549_v36 = vpop.permute.xlu0 %1058  ;;  %1361 = vrot.lane.b32.xlu1 %v1298_v17, %s5541_s22  ;;  %v1705_v49 = vrot.slane %v1703_v18, 1 }
  0x92   :  { %9322 = vst [vmem:[#allocation32_spill] sm:$0xff] %v6549_v36  ;;  %9329 = vst [vmem:[#allocation43_spill] sm:$0xff] %v6707_v37  ;;  %v1694_v45 = vsel %vm657_vm0, %v1689_v34, %v1693_v50  ;;  %v6790_v34 = vld [vmem:[%s9176_s0 + $0xf4] sm:$0xf]  ;;  %v4669_v50 = vld [vmem:[%s9176_s0 + $0xfc] sm:$0xf] }
  0x93   :  { %v6563_v20 = vpop.permute.xlu1 %1064 }
  0x94   :  { %9323 = vst [vmem:[#allocation33_spill] sm:$0xff] %v6563_v20  ;;  %1359 = vrot.lane.b32.xlu0 %v1295_v39, %s5541_s22  ;;  %v1883_v39 = vshll.u32 %v6685_v4, 16  ;;  %v6799_v4 = vld [vmem:[%s9176_s0 + $0x1c] sm:$0xf] }
  0x95   :  { %v6577_v14 = vpop.permute.xlu0 %1062  ;;  %1525 = vrot.lane.b32.xlu1 %v6553_v8, %s5542_s20  ;;  %v5415_v8 = vld [vmem:[%s9177_s1 + $0x8] sm:$0xff]  }
  0x96   :  { %9324 = vst [vmem:[#allocation35_spill] sm:$0xff] %v6577_v14  ;;  %v1885_v21 = vrot.slane %v1883_v39, 1  ;;  %v4603_v39 = vld [vmem:[%s9176_s0 + $0xc] sm:$0xe] }
  0x97   :  { %v6598_v16 = vpop.permute.xlu1 %1068 }
  0x98   :  { %9325 = vst [vmem:[#allocation37_spill] sm:$0xff] %v6598_v16  ;;  %1523 = vrot.lane.b32.xlu0 %v6575_v51, %s5542_s20  ;;  %v5412_v51 = vld [vmem:[%s9177_s1] sm:$0xff]   ;;  %v1886_v38 = vsel %vm657_vm0, %v1881_v12, %v1885_v21  ;;  %v4923_v21 = vcombine.low %v4603_v39, %v6561_v11  ;;  %v1701_v12 = vor.u32 %v1700_v58, %v1696_v6  ;;  %v4667_v11 = vld [vmem:[%s9176_s0 + $0xf0] sm:$0xf] }
  0x99   :  { %1529 = vrot.lane.b32.xlu1 %v6582_v15, %s5542_s20  ;;  %v6615_v5 = vpop.permute.xlu0 %1066  ;;  %5132 = vmatprep.subr.bf16.mxu0 %v5412_v51  ;;  %v4924_v6 = vcombine.low %v4604_v19, %v6546_v61  ;;  %v6816_v61 = vld [vmem:[%s9176_s0 + $0x100] sm:$0xf] }
  0x9a   :  { %9326 = vst [vmem:[#allocation38_spill] sm:$0xff] %v6615_v5  ;;  %5212 = vmatprep.subr.bf16.mxu1 %v5412_v51  ;;  %5133 = vmatpush3.bf16.msra.mxu0 %v5412_v51  ;;  %v1706_v58 = vsel %vm657_vm0, %v1701_v12, %v1705_v49  ;;  %v2227_v39 = vrot.slane %v4923_v21, 1  ;;  %v2231_v12 = vrot.slane %v6740_v3, 1  ;;  %v6831_v49 = vcombine.low %v4669_v50, %v6816_v61  ;;  %v6845_v3 = vld [vmem:[%s9176_s0 + $0xf8] ss:$0 sps:$4 sm:$0x11]  }
  0x9b   :  { %v6626_v0 = vpop.permute.xlu1 %1072  ;;  %5220 = vmatpush3.bf16.msra.mxu1 %v5412_v51  ;;  %5134 = vmatprep.subr.bf16.mxu0 %v5415_v8  ;;  %v2275_v51 = vrot.slane %v4939_v13, 1  ;;  %v2228_v13 = vrot.slane %v6718_v25, 1 }
  0x9c   :  { %9327 = vst [vmem:[#allocation40_spill] sm:$0xff] %v6626_v0  ;;  %1527 = vrot.lane.b32.xlu0 %v6603_v54, %s5542_s20  ;;  %5213 = vmatprep.subr.bf16.mxu1 %v5415_v8 }
  0x9d   :  { %1533 = vrot.lane.b32.xlu1 %v6607_v62, %s5542_s20 }
  0x9e   :  { %v6647_v63 = vpop.permute.xlu0 %1070  ;;  %5135 = vmatpush3.bf16.msra.mxu0 %v5415_v8 }
  0x9f   :  { %9328 = vst [vmem:[#allocation41_spill] sm:$0xff] %v6647_v63  ;;  %5221 = vmatpush3.bf16.msra.mxu1 %v5415_v8  ;;  %v4971_v8 = vcombine.low %v4667_v11, %v6790_v34  ;;  %v5421_v11 = vld [vmem:[%s9177_s1 + $0x18] sm:$0xff]  }
  0xa0   :  { %1531 = vrot.lane.b32.xlu0 %v6635_v52, %s5542_s20  ;;  %v6680_v56 = vpop.permute.xlu1 %1076 }
  0xa1   :  { %1537 = vrot.lane.b32.xlu1 %v6639_v35, %s5542_s20 }
  0xa3   :  { %v6700_v42 = vpop.permute.xlu0 %1074 }
  0xa4   :  { %1535 = vrot.lane.b32.xlu0 %v6668_v1, %s5542_s20 }
  0xa5   :  { %1541 = vrot.lane.b32.xlu1 %v6675_v22, %s5542_s20  ;;  %v6712_v17 = vpop.permute.xlu1 %1080 }
  0xa7   :  { %v6730_v48 = vpop.permute.xlu0 %1078 }
  0xa8   :  { %1539 = vrot.lane.b32.xlu0 %v6698_v26, %s5542_s20 }
  0xa9   :  { %1545 = vrot.lane.b32.xlu1 %v6707_v37, %s5542_s20  ;;  %v5534_v37 = vld [vmem:[%s9176_s0 + $0x64] sm:$0xf] }
  0xaa   :  { %v6749_v41 = vpop.permute.xlu1 %1084 }
  0xab   :  { %9330 = vst [vmem:[#allocation44_spill] sm:$0xff] %v6749_v41 }
  0xac   :  { %1543 = vrot.lane.b32.xlu0 %v6728_v60, %s5542_s20 }
  0xad   :  { %1557 = vrot.lane.b32.xlu1 %v4876_v57, %s5542_s20  ;;  %v6760_v44 = vpop.permute.xlu0 %1082  ;;  %v4620_v57 = vld [vmem:[%s9176_s0 + $0xf0] sm:$0xe] }
  0xae   :  { %9331 = vst [vmem:[#allocation45_spill] sm:$0xff] %v6760_v44  ;;  %v6769_v10 = vpop.permute.xlu1 %1088  ;;  %v4940_v32 = vcombine.low %v4620_v57, %v6664_v24  ;;  %v4635_v24 = vld [vmem:[%s9176_s0 + $0x18] sm:$0xf]  ;;  %v5418_v57 = vld [vmem:[%s9177_s1 + $0x10] sm:$0xff]  }
  0xaf   :  { %9332 = vst [vmem:[#allocation47_spill] sm:$0xff] %v6769_v10  ;;  %v4955_v25 = vcombine.low %v4635_v24, %v6799_v4  ;;  %5136 = vmatprep.subr.bf16.mxu0 %v5418_v57  ;;  %5214 = vmatprep.subr.bf16.mxu1 %v5418_v57  ;;  %v6853_v24 = vld [vmem:[%s9176_s0 + $0x20] ss:$0 sps:$4 sm:$0x11]  }
  0xb0   :  { %1555 = vrot.lane.b32.xlu0 %v6656_v30, %s5542_s20  ;;  %v1898_v30 = vsel %vm657_vm0, %v1893_v46, %v1897_v9  ;;  %v2278_v46 = vrot.slane %v4940_v32, 1  ;;  %v2279_v9 = vrot.slane %v6724_v28, 1  ;;  %v2229_v28 = vsel %vm1202_vm1, %v2227_v39, %v2228_v13  ;;  %v4637_v32 = vld [vmem:[%s9176_s0 + $0x24] sm:$0xf]  ;;  %5137 = vmatpush3.bf16.msra.mxu0 %v5418_v57 }
  0xb1   :  { %2099 = vrot.lane.b32.xlu1 %v1886_v38, %s5543_s5  ;;  %v6780_v59 = vpop.permute.xlu0 %1086  ;;  %v2277_v38 = vsel %vm1202_vm1, %v2275_v51, %v2276_v47  ;;  %v2902_v47 = vshll.u32 %v4971_v8, 16  ;;  %5222 = vmatpush3.bf16.msra.mxu1 %v5418_v57  ;;  %v6864_v39 = vld [vmem:[%s9176_s0 + $0x104] ss:$0 sps:$4 sm:$0x11]   ;;  %v2715_v63 = vshll.u32 %v6853_v24, 16 }
  0xb2   :  { %9333 = vst [vmem:[#allocation49_spill] sm:$0xff] %v6780_v59  ;;  %v2280_v51 = vsel %vm1202_vm1, %v2278_v46, %v2279_v9  ;;  %5138 = vmatprep.subr.bf16.mxu0 %v5421_v11  ;;  %5215 = vmatprep.subr.bf16.mxu1 %v5421_v11  ;;  %v5424_v46 = vld [vmem:[%s9177_s1 + $0x20] sm:$0xff]   ;;  %v2900_v9 = vshrl.u32 %v4971_v8, 16 }
  0xb3   :  { %v2904_v57 = vrot.slane %v2902_v47, 1  ;;  %v2708_v47 = vshrl.u32 %v4955_v25, 16  ;;  %v4751_v59 = vld [vmem:[%s9176_s0 + $0x120] sm:$0xe] }
  0xb4   :  { %2067 = vrot.lane.b32.xlu0 %v1694_v45, %s5543_s5  ;;  %v6807_v18 = vpop.permute.xlu1 %1092  ;;  %v2230_v45 = vrot.slane %v4924_v6, 1  ;;  %v2710_v6 = vshll.u32 %v4955_v25, 16  ;;  %5139 = vmatpush3.bf16.msra.mxu0 %v5421_v11 }
  0xb5   :  { %2101 = vrot.lane.b32.xlu1 %v1898_v30, %s5543_s5  ;;  %9334 = vst [vmem:[#allocation50_spill] sm:$0xff] %v6807_v18  ;;  %v6839_v30 = vld [vmem:[%s9176_s0 + $0x28] sm:$0xf]  ;;  %5223 = vmatpush3.bf16.msra.mxu1 %v5421_v11  ;;  %v2905_v16 = vor.u32 %v2904_v57, %v2900_v9  ;;  %v5429_v57 = vld [vmem:[%s9177_s1 + $0x30] sm:$0xff]   ;;  %v4543_v18 = vld [vmem:[%s9176_s0 + $0xfc] sm:$0xf] }
  0xb6   :  { %v2232_v13 = vsel %vm1202_vm1, %v2230_v45, %v2231_v12  ;;  %5140 = vmatprep.subr.bf16.mxu0 %v5424_v46  ;;  %v5427_v45 = vld [vmem:[%s9177_s1 + $0x28] sm:$0xff]   ;;  %v2712_v0 = vrot.slane %v2710_v6, 1  ;;  %5216 = vmatprep.subr.bf16.mxu1 %v5424_v46  ;;  %v4747_v6 = vld [vmem:[%s9176_s0 + $0xf0] sm:$0xe] }
  0xb7   :  { %v6822_v19 = vpop.permute.xlu0 %1090 }
  0xb8   :  { %2069 = vrot.lane.b32.xlu0 %v1706_v58, %s5543_s5  ;;  %9335 = vst [vmem:[#allocation52_spill] sm:$0xff] %v6822_v19  ;;  %v6827_v21 = vpop.permute.xlu1 %1096  ;;  %v6859_v58 = vcombine.low %v4637_v32, %v6839_v30  ;;  %5141 = vmatpush3.bf16.msra.mxu0 %v5424_v46  ;;  %v2713_v9 = vor.u32 %v2712_v0, %v2708_v47 }
  0xb9   :  { %2355 = vrot.lane.b32.xlu1 %v2277_v38, %s5544_s15  ;;  %9336 = vst [vmem:[#allocation53_spill] sm:$0xff] %v6827_v21  ;;  %v2914_v38 = vshll.u32 %v6831_v49, 16  ;;  %v2919_v21 = vshll.u32 %v6864_v39, 16  ;;  %5224 = vmatpush3.bf16.msra.mxu1 %v5424_v46  ;;  %v2717_v46 = vrot.slane %v2715_v63, 1  ;;  %v6922_v63 = vld [vmem:[%s9176_s0 + $0x100] sm:$0xf] }
  0xba   :  { %v2722_v12 = vshll.u32 %v6859_v58, 16  ;;  %5142 = vmatprep.subr.bf16.mxu0 %v5427_v45  ;;  %5217 = vmatprep.subr.bf16.mxu1 %v5427_v45 }
  0xbb   :  { %v2916_v11 = vrot.slane %v2914_v38, 1  ;;  %v4748_v38 = vld [vmem:[%s9176_s0 + $0xfc] sm:$0xe] }
  0xbc   :  { %2323 = vrot.lane.b32.xlu0 %v2229_v28, %s5544_s15  ;;  %v6856_v50 = vpop.permute.xlu0 %1094  ;;  %v2907_v28 = vshll.u32 %v6845_v3, 16  ;;  %5143 = vmatpush3.bf16.msra.mxu0 %v5427_v45 }
  0xbd   :  { %9337 = vst [vmem:[#allocation54_spill] sm:$0xff] %v6856_v50  ;;  %2357 = vrot.lane.b32.xlu1 %v2280_v51, %s5544_s15  ;;  %v6878_v51 = vld [vmem:[%s9176_s0 + $0x2c] ss:$0 sps:$4 sm:$0x11]   ;;  %v2921_v50 = vrot.slane %v2919_v21, 1  ;;  %5225 = vmatpush3.bf16.msra.mxu1 %v5427_v45 }
  0xbe   :  { %v2909_v20 = vrot.slane %v2907_v28, 1  ;;  %v2720_v28 = vshrl.u32 %v6859_v58, 16  ;;  %5144 = vmatprep.subr.bf16.mxu0 %v5429_v57  ;;  %5218 = vmatprep.subr.bf16.mxu1 %v5429_v57  ;;  %v4732_v21 = vld [vmem:[%s9176_s0 + $0x24] sm:$0xe] }
  0xbf   :  { %v6873_v32 = vpop.permute.xlu1 %1100 }
  0xc0   :  { %9338 = vst [vmem:[#allocation55_spill] sm:$0xff] %v6873_v32  ;;  %2325 = vrot.lane.b32.xlu0 %v2232_v13, %s5544_s15  ;;  %v2912_v32 = vshrl.u32 %v6831_v49, 16  ;;  %v2910_v0 = vsel %vm657_vm0, %v2905_v16, %v2909_v20  ;;  %v5431_v20 = vld [vmem:[%s9177_s1 + $0x38] sm:$0xff]   ;;  %5145 = vmatpush3.bf16.msra.mxu0 %v5429_v57 }
  0xc1   :  { %2579 = vrot.lane.b32.xlu1 %v4971_v8, %s5545_s14  ;;  %v4731_v8 = vld [vmem:[%s9176_s0 + $0x18] sm:$0xe]  ;;  %5226 = vmatpush3.bf16.msra.mxu1 %v5429_v57  ;;  %v6962_v57 = vld [vmem:[%s9176_s0 + $0x104] ss:$0 sps:$4 sm:$0x11]  }
  0xc2   :  { %v6888_v5 = vpop.permute.xlu0 %1098  ;;  %v2917_v47 = vor.u32 %v2916_v11, %v2912_v32  ;;  %v5019_v16 = vcombine.low %v4731_v8, %v6799_v4  ;;  %v2718_v32 = vsel %vm657_vm0, %v2713_v9, %v2717_v46  ;;  %5146 = vmatprep.subr.bf16.mxu0 %v5431_v20  ;;  %5219 = vmatprep.subr.bf16.mxu1 %v5431_v20  ;;  %v3303_v46 = vrot.slane %v6864_v39, 1  ;;  %v6976_v39 = vld [vmem:[%s9176_s0 + $0x2c] ss:$0 sps:$4 sm:$0x11]  }
  0xc3   :  { %9339 = vst [vmem:[#allocation56_spill] sm:$0xff] %v6888_v5  ;;  %v6894_v13 = vpop.permute.xlu1 %1104  ;;  %v2727_v5 = vshll.u32 %v6878_v51, 16 }
  0xc4   :  { %9340 = vst [vmem:[#allocation57_spill] sm:$0xff] %v6894_v13  ;;  %2547 = vrot.lane.b32.xlu0 %v4955_v25, %s5545_s14  ;;  %v2724_v13 = vrot.slane %v2722_v12, 1  ;;  %v5035_v25 = vcombine.low %v4747_v6, %v6790_v34  ;;  %v5036_v34 = vcombine.low %v4748_v38, %v6816_v61  ;;  %v2922_v4 = vsel %vm657_vm0, %v2917_v47, %v2921_v50  ;;  %v4545_v38 = vld [vmem:[%s9176_s0 + $0x108] sm:$0xf] }
  0xc5   :  { %2581 = vrot.lane.b32.xlu1 %v6831_v49, %s5545_s14  ;;  %v2729_v12 = vrot.slane %v2727_v5, 1  ;;  %v6941_v61 = vcombine.low %v4543_v18, %v6922_v63  ;;  %v6951_v5 = vld [vmem:[%s9176_s0 + $0x10c] sm:$0xf]  ;;  %v5020_v50 = vcombine.low %v4732_v21, %v6839_v30  ;;  %v3251_v18 = vrot.slane %v5019_v16, 1  ;;  %5147 = vmatpush3.bf16.msra.mxu0 %v5431_v20 }
  0xc6   :  { %v6911_v14 = vpop.permute.xlu0 %1102  ;;  %v2725_v45 = vor.u32 %v2724_v13, %v2720_v28  ;;  %v3299_v6 = vrot.slane %v5035_v25, 1  ;;  %v3252_v13 = vrot.slane %v6853_v24, 1  ;;  %v3302_v9 = vrot.slane %v5036_v34, 1  ;;  %5227 = vmatpush3.bf16.msra.mxu1 %v5431_v20  ;;  %v6985_v20 = vld [vmem:[%s9176_s0 + $0x110] ss:$0 sps:$4 sm:$0x11]  }
  0xc7   :  { %9341 = vst [vmem:[#allocation58_spill] sm:$0xff] %v6911_v14  ;;  %v6917_v49 = vpop.permute.xlu1 %1301  ;;  %v4878_v25 = vcombine.low %v4545_v38, %v6951_v5  ;;  %v1710_v24 = vshll.u32 %v6603_v54, 16  ;;  %v3254_v21 = vrot.slane %v5020_v50, 1  ;;  %v1722_v38 = vshll.u32 %v6582_v15, 16 }
  0xc8   :  { %2549 = vrot.lane.b32.xlu0 %v6859_v58, %s5545_s14  ;;  %v3300_v58 = vrot.slane %v6845_v3, 1  ;;  %v2730_v3 = vsel %vm657_vm0, %v2725_v45, %v2729_v12  ;;  %v3253_v16 = vsel %vm1202_vm1, %v3251_v18, %v3252_v13  ;;  %v3304_v34 = vsel %vm1202_vm1, %v3302_v9, %v3303_v46 }
  0xc9   :  { %3123 = vrot.lane.b32.xlu1 %v2910_v0, %s5546_s7  ;;  %v1902_v0 = vshll.u32 %v6941_v61, 16  ;;  %v1900_v12 = vshrl.u32 %v6941_v61, 16  ;;  %v1708_v50 = vshrl.u32 %v6603_v54, 16  ;;  %v1715_v9 = vshll.u32 %v6976_v39, 16 }
  0xca   :  { %v6936_v11 = vpop.permute.xlu0 %1299  ;;  %v3301_v30 = vsel %vm1202_vm1, %v3299_v6, %v3300_v58  ;;  %v1907_v6 = vshll.u32 %v6962_v57, 16  ;;  %v1914_v58 = vshll.u32 %v4878_v25, 16  ;;  %v1912_v46 = vshrl.u32 %v4878_v25, 16 }
  0xcb   :  { %v6943_v8 = vpop.permute.xlu1 %1305  ;;  %v1724_v36 = vrot.slane %v1722_v38, 1 }
  0xcc   :  { %3091 = vrot.lane.b32.xlu0 %v2718_v32, %s5546_s7  ;;  %v3255_v32 = vrot.slane %v6878_v51, 1  ;;  %v6999_v51 = vld [vmem:[%s9176_s0 + $0x38] ss:$0 sps:$4 sm:$0x11]   ;;  %v1909_v14 = vrot.slane %v1907_v6, 1  ;;  %v1916_v54 = vrot.slane %v1914_v58, 1 }
  0xcd   :  { %3125 = vrot.lane.b32.xlu1 %v2922_v4, %s5546_s7  ;;  %v1904_v4 = vrot.slane %v1902_v0, 1 }
  0xce   :  { %v6964_v28 = vpop.permute.xlu0 %1303  ;;  %v3256_v13 = vsel %vm1202_vm1, %v3254_v21, %v3255_v32  ;;  %v1717_v32 = vrot.slane %v1715_v9, 1 }
  0xcf   :  { %v6969_v47 = vpop.permute.xlu1 %1309  ;;  %v1905_v0 = vor.u32 %v1904_v4, %v1900_v12  ;;  %v1727_v12 = vshll.u32 %v6999_v51, 16  ;;  %v4605_v4 = vld [vmem:[%s9176_s0 + $0x24] sm:$0xe] }
  0xd0   :  { %9342 = vst [vmem:[#allocation59_spill] sm:$0xff] %v6969_v47  ;;  %3093 = vrot.lane.b32.xlu0 %v2730_v3, %s5546_s7  ;;  %v1712_v3 = vrot.slane %v1710_v24, 1  ;;  %v4621_v24 = vld [vmem:[%s9176_s0 + $0xfc] sm:$0xe] }
  0xd1   :  { %3379 = vrot.lane.b32.xlu1 %v3301_v30, %s5547_s17  ;;  %v1910_v58 = vsel %vm657_vm0, %v1905_v0, %v1909_v14 }
  0xd2   :  { %v6987_v45 = vpop.permute.xlu0 %1307  ;;  %v1713_v21 = vor.u32 %v1712_v3, %v1708_v50  ;;  %v4606_v50 = vld [vmem:[%s9176_s0 + $0x30] sm:$0xe]  ;;  %v4925_v3 = vcombine.low %v4605_v4, %v6590_v2  ;;  %v4671_v2 = vld [vmem:[%s9176_s0 + $0x108] sm:$0xf] }
  0xd3   :  { %9343 = vst [vmem:[#allocation60_spill] sm:$0xff] %v6987_v45  ;;  %v6992_v18 = vpop.permute.xlu1 %1313 }
  0xd4   :  { %9344 = vst [vmem:[#allocation61_spill] sm:$0xff] %v6992_v18  ;;  %3347 = vrot.lane.b32.xlu0 %v3253_v16, %s5547_s17  ;;  %v1919_v16 = vshll.u32 %v6985_v20, 16  ;;  %v1718_v14 = vsel %vm657_vm0, %v1713_v21, %v1717_v32 }
  0xd5   :  { %3381 = vrot.lane.b32.xlu1 %v3304_v34, %s5547_s17  ;;  %v1720_v34 = vshrl.u32 %v6582_v15, 16  ;;  %v4941_v15 = vcombine.low %v4621_v24, %v6922_v63  ;;  %v4926_v24 = vcombine.low %v4606_v50, %v6571_v55 }
  0xd6   :  { %v7004_v30 = vpop.permute.xlu0 %1311  ;;  %v1921_v40 = vrot.slane %v1919_v16, 1 }
  0xd7   :  { %9345 = vst [vmem:[#allocation62_spill] sm:$0xff] %v7004_v30  ;;  %v7007_v19 = vpop.permute.xlu1 %1317  ;;  %v1725_v63 = vor.u32 %v1724_v36, %v1720_v34  ;;  %v2281_v0 = vrot.slane %v4941_v15, 1  ;;  %v7049_v36 = vld [vmem:[%s9176_s0 + $0x10c] sm:$0xf]  ;;  %v7062_v34 = vld [vmem:[%s9176_s0 + $0x34] sm:$0xf] }
  0xd8   :  { %9346 = vst [vmem:[#allocation63_spill] sm:$0xff] %v7007_v19  ;;  %3349 = vrot.lane.b32.xlu0 %v3256_v13, %s5547_s17  ;;  %v1917_v19 = vor.u32 %v1916_v54, %v1912_v46  ;;  %v1729_v13 = vrot.slane %v1727_v12, 1  ;;  %v2282_v54 = vrot.slane %v6962_v57, 1  ;;  %v4639_v57 = vld [vmem:[%s9176_s0 + $0x30] sm:$0xf]  ;;  %v2285_v12 = vrot.slane %v6985_v20, 1 }
  0xd9   :  { %1561 = vrot.lane.b32.xlu1 %v4878_v25, %s5542_s20  ;;  %v4622_v25 = vld [vmem:[%s9176_s0 + $0x108] sm:$0xe]  ;;  %v4973_v4 = vcombine.low %v4671_v2, %v7049_v36  ;;  %v2236_v50 = vrot.slane %v4926_v24, 1  ;;  %v2237_v20 = vrot.slane %v6999_v51, 1 }
  0xda   :  { %v7019_v6 = vpop.permute.xlu0 %1315  ;;  %v1922_v46 = vsel %vm657_vm0, %v1917_v19, %v1921_v40  ;;  %v2233_v40 = vrot.slane %v4925_v3, 1  ;;  %v1730_v19 = vsel %vm657_vm0, %v1725_v63, %v1729_v13  ;;  %v2283_v55 = vsel %vm1202_vm1, %v2281_v0, %v2282_v54  ;;  %v4641_v3 = vld [vmem:[%s9176_s0 + $0x3c] sm:$0xf]  ;;  %v7095_v13 = vld [vmem:[%s9176_s0 + $0x40] sm:$0xf] }
  0xdb   :  { %9347 = vst [vmem:[#allocation64_spill] sm:$0xff] %v7019_v6  ;;  %v7023_v38 = vpop.permute.xlu1 %1321  ;;  %v4957_v63 = vcombine.low %v4639_v57, %v7062_v34  ;;  %v2926_v54 = vshll.u32 %v4973_v4, 16  ;;  %v2238_v24 = vsel %vm1202_vm1, %v2236_v50, %v2237_v20  ;;  %v7127_v20 = vld [vmem:[%s9176_s0 + $0x44] ss:$0 sps:$4 sm:$0x11]  }
  0xdc   :  { %9348 = vst [vmem:[#allocation65_spill] sm:$0xff] %v7023_v38  ;;  %1559 = vrot.lane.b32.xlu0 %v6941_v61, %s5542_s20  ;;  %v4942_v61 = vcombine.low %v4622_v25, %v6951_v5  ;;  %v2234_v5 = vrot.slane %v6976_v39, 1  ;;  %v4673_v39 = vld [vmem:[%s9176_s0 + $0x114] sm:$0xf]  ;;  %v4749_v6 = vld [vmem:[%s9176_s0 + $0x108] sm:$0xe] }
  0xdd   :  { %2103 = vrot.lane.b32.xlu1 %v1910_v58, %s5543_s5  ;;  %v7075_v58 = vld [vmem:[%s9176_s0 + $0x118] sm:$0xf]  ;;  %v7082_v25 = vld [vmem:[%s9176_s0 + $0x110] ss:$0 sps:$4 sm:$0x11]  }
  0xde   :  { %v7036_v9 = vpop.permute.xlu0 %1319  ;;  %v2284_v32 = vrot.slane %v4942_v61, 1  ;;  %v4974_v51 = vcombine.low %v4673_v39, %v7075_v58  ;;  %v7104_v61 = vld [vmem:[%s9176_s0 + $0x38] ss:$0 sps:$4 sm:$0x11]   ;;  %v2931_v57 = vshll.u32 %v7082_v25, 16 }
  0xdf   :  { %9349 = vst [vmem:[#allocation66_spill] sm:$0xff] %v7036_v9  ;;  %v7041_v16 = vpop.permute.xlu1 %1325  ;;  %v2739_v50 = vshll.u32 %v7104_v61, 16 }
  0xe0   :  { %9350 = vst [vmem:[#allocation67_spill] sm:$0xff] %v7041_v16  ;;  %2071 = vrot.lane.b32.xlu0 %v1718_v14, %s5543_s5  ;;  %v2235_v14 = vsel %vm1202_vm1, %v2233_v40, %v2234_v5  ;;  %v2286_v0 = vsel %vm1202_vm1, %v2284_v32, %v2285_v12  ;;  %v7113_v40 = vld [vmem:[%s9176_s0 + $0x11c] ss:$0 sps:$4 sm:$0x11]   ;;  %v2924_v5 = vshrl.u32 %v4973_v4, 16  ;;  %v2928_v12 = vrot.slane %v2926_v54, 1 }
  0xe1   :  { %2105 = vrot.lane.b32.xlu1 %v1922_v46, %s5543_s5  ;;  %v2938_v39 = vshll.u32 %v4974_v51, 16  ;;  %v2936_v16 = vshrl.u32 %v4974_v51, 16 }
  0xe2   :  { %v7064_v21 = vpop.permute.xlu0 %1323  ;;  %v2929_v54 = vor.u32 %v2928_v12, %v2924_v5  ;;  %v2751_v5 = vshll.u32 %v7127_v20, 16  ;;  %v4733_v12 = vld [vmem:[%s9176_s0 + $0x30] sm:$0xe] }
  0xe3   :  { %9351 = vst [vmem:[#allocation68_spill] sm:$0xff] %v7064_v21  ;;  %v7077_v15 = vpop.permute.xlu1 %1329  ;;  %v2940_v38 = vrot.slane %v2938_v39, 1 }
  0xe4   :  { %9352 = vst [vmem:[#allocation69_spill] sm:$0xff] %v7077_v15  ;;  %2073 = vrot.lane.b32.xlu0 %v1730_v19, %s5543_s5  ;;  %v4958_v19 = vcombine.low %v4641_v3, %v7095_v13  ;;  %v2933_v3 = vrot.slane %v2931_v57, 1 }
  0xe5   :  { %2359 = vrot.lane.b32.xlu1 %v2283_v55, %s5544_s15  ;;  %v2734_v55 = vshll.u32 %v4957_v63, 16  ;;  %v2941_v10 = vor.u32 %v2940_v38, %v2936_v16  ;;  %v5021_v38 = vcombine.low %v4733_v12, %v7062_v34 }
  0xe6   :  { %v7097_v46 = vpop.permute.xlu0 %1327  ;;  %v2934_v18 = vsel %vm657_vm0, %v2929_v54, %v2933_v3  ;;  %v3306_v3 = vrot.slane %v7082_v25, 1  ;;  %v3258_v25 = vrot.slane %v7104_v61, 1  ;;  %v1734_v61 = vshll.u32 %v6635_v52, 16 }
  0xe7   :  { %9353 = vst [vmem:[#allocation70_spill] sm:$0xff] %v7097_v46  ;;  %v7106_v2 = vpop.permute.xlu1 %1333  ;;  %v2736_v15 = vrot.slane %v2734_v55, 1  ;;  %v2746_v46 = vshll.u32 %v4958_v19, 16  ;;  %v2744_v55 = vshrl.u32 %v4958_v19, 16 }
  0xe8   :  { %2327 = vrot.lane.b32.xlu0 %v2235_v14, %s5544_s15 }
  0xe9   :  { %2361 = vrot.lane.b32.xlu1 %v2286_v0, %s5544_s15  ;;  %v2732_v0 = vshrl.u32 %v4957_v63, 16  ;;  %v2748_v30 = vrot.slane %v2746_v46, 1  ;;  %v4547_v46 = vld [vmem:[%s9176_s0 + $0x114] sm:$0xf] }
  0xea   :  { %v7118_v32 = vpop.permute.xlu0 %1331 }
  0xeb   :  { %v7120_v14 = vpop.permute.xlu1 %1337  ;;  %v2737_v57 = vor.u32 %v2736_v15, %v2732_v0  ;;  %v4750_v15 = vld [vmem:[%s9176_s0 + $0x114] sm:$0xe]  ;;  %v2749_v16 = vor.u32 %v2748_v30, %v2744_v55  ;;  %v4549_v30 = vld [vmem:[%s9176_s0 + $0x120] sm:$0xf] }
  0xec   :  { %2329 = vrot.lane.b32.xlu0 %v2238_v24, %s5544_s15  ;;  %v2943_v24 = vshll.u32 %v7113_v40, 16  ;;  %v7195_v55 = vld [vmem:[%s9176_s0 + $0x11c] ss:$0 sps:$4 sm:$0x11]  }
  0xed   :  { %2583 = vrot.lane.b32.xlu1 %v4973_v4, %s5545_s14  ;;  %v2741_v4 = vrot.slane %v2739_v50, 1 }
  0xee   :  { %v7130_v21 = vpop.permute.xlu0 %1335  ;;  %v2945_v53 = vrot.slane %v2943_v24, 1 }
  0xef   :  { %v7133_v9 = vpop.permute.xlu1 %1341 }
  0xf0   :  { %9354 = vst [vmem:[#allocation71_spill] sm:$0xff] %v7133_v9  ;;  %2551 = vrot.lane.b32.xlu0 %v4957_v63, %s5545_s14  ;;  %v5037_v63 = vcombine.low %v4749_v6, %v7049_v36  ;;  %v2742_v6 = vsel %vm657_vm0, %v2737_v57, %v2741_v4  ;;  %v2753_v36 = vrot.slane %v2751_v5, 1  ;;  %v2946_v54 = vsel %vm657_vm0, %v2941_v10, %v2945_v53  ;;  %v7184_v53 = vld [vmem:[%s9176_s0 + $0x124] sm:$0xf] }
  0xf1   :  { %2585 = vrot.lane.b32.xlu1 %v4974_v51, %s5545_s14  ;;  %v7159_v51 = vld [vmem:[%s9176_s0 + $0x118] sm:$0xf]  ;;  %v3257_v10 = vrot.slane %v5021_v38, 1  ;;  %v3309_v4 = vrot.slane %v7113_v40, 1 }
  0xf2   :  { %v7144_v39 = vpop.permute.xlu0 %1339  ;;  %v3305_v24 = vrot.slane %v5037_v63, 1  ;;  %v7174_v34 = vcombine.low %v4547_v46, %v7159_v51 }
  0xf3   :  { %9355 = vst [vmem:[#allocation72_spill] sm:$0xff] %v7144_v39  ;;  %v7148_v50 = vpop.permute.xlu1 %1345 }
  0xf4   :  { %9356 = vst [vmem:[#allocation73_spill] sm:$0xff] %v7148_v50  ;;  %2553 = vrot.lane.b32.xlu0 %v4958_v19, %s5545_s14  ;;  %v5038_v50 = vcombine.low %v4750_v15, %v7075_v58  ;;  %v4734_v19 = vld [vmem:[%s9176_s0 + $0x3c] sm:$0xe]  ;;  %v2754_v58 = vsel %vm657_vm0, %v2749_v16, %v2753_v36  ;;  %v3307_v12 = vsel %vm1202_vm1, %v3305_v24, %v3306_v3  ;;  %v1926_v46 = vshll.u32 %v7174_v34, 16 }
  0xf5   :  { %3127 = vrot.lane.b32.xlu1 %v2934_v18, %s5546_s7  ;;  %v5022_v57 = vcombine.low %v4734_v19, %v7095_v13  ;;  %v4880_v15 = vcombine.low %v4549_v30, %v7184_v53  ;;  %v3259_v13 = vsel %vm1202_vm1, %v3257_v10, %v3258_v25  ;;  %v1931_v16 = vshll.u32 %v7195_v55, 16  ;;  %v7222_v19 = vld [vmem:[%s9176_s0 + $0x128] ss:$0 sps:$4 sm:$0x11]  }
  0xf6   :  { %v7166_v0 = vpop.permute.xlu0 %1343  ;;  %v3308_v63 = vrot.slane %v5038_v50, 1  ;;  %v7213_v50 = vld [vmem:[%s9176_s0 + $0x44] ss:$0 sps:$4 sm:$0x11]   ;;  %v1928_v24 = vrot.slane %v1926_v46, 1  ;;  %v1746_v10 = vshll.u32 %v6607_v62, 16 }
  0xf7   :  { %9357 = vst [vmem:[#allocation74_spill] sm:$0xff] %v7166_v0  ;;  %v7176_v18 = vpop.permute.xlu1 %1349  ;;  %v3260_v40 = vrot.slane %v5022_v57, 1  ;;  %v1736_v25 = vrot.slane %v1734_v61, 1  ;;  %v1933_v57 = vrot.slane %v1931_v16, 1 }
  0xf8   :  { %9358 = vst [vmem:[#allocation75_spill] sm:$0xff] %v7176_v18  ;;  %3095 = vrot.lane.b32.xlu0 %v2742_v6, %s5546_s7  ;;  %v3261_v6 = vrot.slane %v7127_v20, 1  ;;  %v3310_v3 = vsel %vm1202_vm1, %v3308_v63, %v3309_v4  ;;  %v1938_v20 = vshll.u32 %v4880_v15, 16  ;;  %v7235_v63 = vld [vmem:[%s9176_s0 + $0x50] ss:$0 sps:$4 sm:$0x11]  }
  0xf9   :  { %3129 = vrot.lane.b32.xlu1 %v2946_v54, %s5546_s7  ;;  %v1924_v54 = vshrl.u32 %v7174_v34, 16  ;;  %v1748_v16 = vrot.slane %v1746_v10, 1  ;;  %v5532_v10 = vld [vmem:[%s9176_s0 + $0x40] sm:$0xf] }
  0xfa   :  { %v7197_v5 = vpop.permute.xlu0 %1347  ;;  %v3262_v4 = vsel %vm1202_vm1, %v3260_v40, %v3261_v6  ;;  %v4623_v40 = vld [vmem:[%s9176_s0 + $0x114] sm:$0xe]  ;;  %v1744_v6 = vshrl.u32 %v6607_v62, 16 }
  0xfb   :  { %9359 = vst [vmem:[#allocation76_spill] sm:$0xff] %v7197_v5  ;;  %v7202_v38 = vpop.permute.xlu1 %1353  ;;  %v4943_v62 = vcombine.low %v4623_v40, %v7159_v51 }
  0xfc   :  { %9360 = vst [vmem:[#allocation77_spill] sm:$0xff] %v7202_v38  ;;  %3097 = vrot.lane.b32.xlu0 %v2754_v58, %s5546_s7  ;;  %v1732_v58 = vshrl.u32 %v6635_v52, 16  ;;  %v1936_v38 = vshrl.u32 %v4880_v15, 16  ;;  %v1940_v52 = vrot.slane %v1938_v20, 1 }
  0xfd   :  { %3383 = vrot.lane.b32.xlu1 %v3307_v12, %s5547_s17  ;;  %v1739_v12 = vshll.u32 %v7213_v50, 16 }
  0xfe   :  { %v7215_v36 = vpop.permute.xlu0 %1351 }
  0xff   :  { %9361 = vst [vmem:[#allocation78_spill] sm:$0xff] %v7215_v36  ;;  %v7224_v30 = vpop.permute.xlu1 %1357  ;;  %v1941_v36 = vor.u32 %v1940_v52, %v1936_v38  ;;  %v2288_v52 = vrot.slane %v7195_v55, 1 }
 0x100   :  { %9362 = vst [vmem:[#allocation79_spill] sm:$0xff] %v7224_v30  ;;  %3351 = vrot.lane.b32.xlu0 %v3259_v13, %s5547_s17  ;;  %v1929_v30 = vor.u32 %v1928_v24, %v1924_v54  ;;  %v1943_v13 = vshll.u32 %v7222_v19, 16  ;;  %v1751_v54 = vshll.u32 %v7235_v63, 16  ;;  %v4607_v24 = vld [vmem:[%s9176_s0 + $0x3c] sm:$0xe] }
 0x101   :  { %3385 = vrot.lane.b32.xlu1 %v3310_v3, %s5547_s17  ;;  %v1737_v3 = vor.u32 %v1736_v25, %v1732_v58  ;;  %v4927_v58 = vcombine.low %v4607_v24, %v5532_v10  ;;  %v4608_v25 = vld [vmem:[%s9176_s0 + $0x48] sm:$0xe]  ;;  %v2291_v24 = vrot.slane %v7222_v19, 1  ;;  %v7304_v10 = vld [vmem:[%s9176_s0 + $0x4c] sm:$0xf] }
 0x102   :  { %v7237_v46 = vpop.permute.xlu0 %1355  ;;  %v1945_v18 = vrot.slane %v1943_v13, 1  ;;  %v1753_v51 = vrot.slane %v1751_v54, 1  ;;  %v7314_v19 = vld [vmem:[%s9176_s0 + $0x130] sm:$0xf] }
 0x103   :  { %9363 = vst [vmem:[#allocation80_spill] sm:$0xff] %v7237_v46  ;;  %v7240_v61 = vpop.permute.xlu1 %1361  ;;  %v1741_v46 = vrot.slane %v1739_v12, 1 }
 0x104   :  { %9364 = vst [vmem:[#allocation81_spill] sm:$0xff] %v7240_v61  ;;  %3353 = vrot.lane.b32.xlu0 %v3262_v4, %s5547_s17  ;;  %v1934_v61 = vsel %vm657_vm0, %v1929_v30, %v1933_v57  ;;  %v1749_v30 = vor.u32 %v1748_v16, %v1744_v6  ;;  %v1946_v12 = vsel %vm657_vm0, %v1941_v36, %v1945_v18  ;;  %v5533_v18 = vld [vmem:[%s9176_s0 + $0x4c] sm:$0xf]  ;;  %v2239_v36 = vrot.slane %v4927_v58, 1 }
 0x105   :  { %1565 = vrot.lane.b32.xlu1 %v4880_v15, %s5542_s20  ;;  %v4624_v15 = vld [vmem:[%s9176_s0 + $0x120] sm:$0xe]  ;;  %v1742_v38 = vsel %vm657_vm0, %v1737_v3, %v1741_v46  ;;  %v4928_v55 = vcombine.low %v4608_v25, %v5533_v18  ;;  %v2240_v6 = vrot.slane %v7213_v50, 1  ;;  %v4677_v50 = vld [vmem:[%s9176_s0 + $0x12c] sm:$0xf] }
 0x106   :  { %v7252_v20 = vpop.permute.xlu0 %1359  ;;  %v4944_v13 = vcombine.low %v4624_v15, %v7184_v53  ;;  %v4675_v46 = vld [vmem:[%s9176_s0 + $0x120] sm:$0xf]  ;;  %v1754_v53 = vsel %vm657_vm0, %v1749_v30, %v1753_v51  ;;  %v4643_v15 = vld [vmem:[%s9176_s0 + $0x48] sm:$0xf]  ;;  %v2243_v51 = vrot.slane %v7235_v63, 1 }
 0x107   :  { %9365 = vst [vmem:[#allocation82_spill] sm:$0xff] %v7252_v20  ;;  %v7256_v4 = vpop.permute.xlu1 %1525  ;;  %v2241_v30 = vsel %vm1202_vm1, %v2239_v36, %v2240_v6  ;;  %v4959_v25 = vcombine.low %v4643_v15, %v7304_v10  ;;  %v7336_v63 = vld [vmem:[%s9176_s0 + $0x58] sm:$0xf]  ;;  %v7344_v36 = vld [vmem:[%s9176_s0 + $0x50] ss:$0 sps:$4 sm:$0x11]  }
 0x108   :  { %1563 = vrot.lane.b32.xlu0 %v7174_v34, %s5542_s20  ;;  %v2287_v34 = vrot.slane %v4943_v62, 1  ;;  %v2290_v54 = vrot.slane %v4944_v13, 1  ;;  %v4976_v13 = vcombine.low %v4677_v50, %v7314_v19 }
 0x109   :  { %2107 = vrot.lane.b32.xlu1 %v1934_v61, %s5543_s5  ;;  %v7284_v61 = vld [vmem:[%s9176_s0 + $0x124] sm:$0xf] }
 0x10a   :  { %v7271_v57 = vpop.permute.xlu0 %1523  ;;  %v2289_v3 = vsel %vm1202_vm1, %v2287_v34, %v2288_v52  ;;  %v4975_v62 = vcombine.low %v4675_v46, %v7284_v61  ;;  %v2292_v52 = vsel %vm1202_vm1, %v2290_v54, %v2291_v24  ;;  %v4645_v46 = vld [vmem:[%s9176_s0 + $0x54] sm:$0xf]  ;;  %v2758_v54 = vshll.u32 %v4959_v25, 16 }
 0x10b   :  { %v7276_v40 = vpop.permute.xlu1 %1529  ;;  %v4960_v6 = vcombine.low %v4645_v46, %v7336_v63  ;;  %v2962_v20 = vshll.u32 %v4976_v13, 16  ;;  %v2756_v46 = vshrl.u32 %v4959_v25, 16  ;;  %v2960_v27 = vshrl.u32 %v4976_v13, 16 }
 0x10c   :  { %2075 = vrot.lane.b32.xlu0 %v1742_v38, %s5543_s5  ;;  %v2242_v38 = vrot.slane %v4928_v55, 1  ;;  %v2950_v18 = vshll.u32 %v4975_v62, 16  ;;  %v2948_v15 = vshrl.u32 %v4975_v62, 16 }
 0x10d   :  { %2109 = vrot.lane.b32.xlu1 %v1946_v12, %s5543_s5  ;;  %v7324_v12 = vld [vmem:[%s9176_s0 + $0x128] ss:$0 sps:$4 sm:$0x11]  }
 0x10e   :  { %v7293_v16 = vpop.permute.xlu0 %1527  ;;  %v2952_v50 = vrot.slane %v2950_v18, 1  ;;  %v2760_v18 = vrot.slane %v2758_v54, 1 }
 0x10f   :  { %v7306_v58 = vpop.permute.xlu1 %1533 }
 0x110   :  { %9366 = vst [vmem:[#allocation83_spill] sm:$0xff] %v7306_v58  ;;  %2077 = vrot.lane.b32.xlu0 %v1754_v53, %s5543_s5  ;;  %v2244_v53 = vsel %vm1202_vm1, %v2242_v38, %v2243_v51  ;;  %v2763_v38 = vshll.u32 %v7344_v36, 16  ;;  %v7364_v51 = vld [vmem:[%s9176_s0 + $0x5c] ss:$0 sps:$4 sm:$0x11]   ;;  %v2953_v0 = vor.u32 %v2952_v50, %v2948_v15  ;;  %v2761_v54 = vor.u32 %v2760_v18, %v2756_v46 }
 0x111   :  { %2363 = vrot.lane.b32.xlu1 %v2289_v3, %s5544_s15  ;;  %v2955_v3 = vshll.u32 %v7324_v12, 16 }
 0x112   :  { %v7326_v34 = vpop.permute.xlu0 %1531 }
 0x113   :  { %9367 = vst [vmem:[#allocation84_spill] sm:$0xff] %v7326_v34  ;;  %v7338_v55 = vpop.permute.xlu1 %1537 }
 0x114   :  { %9368 = vst [vmem:[#allocation85_spill] sm:$0xff] %v7338_v55  ;;  %2331 = vrot.lane.b32.xlu0 %v2241_v30, %s5544_s15  ;;  %v7355_v30 = vld [vmem:[%s9176_s0 + $0x134] ss:$0 sps:$4 sm:$0x11]   ;;  %v2770_v55 = vshll.u32 %v4960_v6, 16 }
 0x115   :  { %2365 = vrot.lane.b32.xlu1 %v2292_v52, %s5544_s15  ;;  %v2957_v52 = vrot.slane %v2955_v3, 1  ;;  %v2775_v3 = vshll.u32 %v7364_v51, 16 }
 0x116   :  { %v7350_v24 = vpop.permute.xlu0 %1535  ;;  %v2772_v15 = vrot.slane %v2770_v55, 1 }
 0x117   :  { %9369 = vst [vmem:[#allocation86_spill] sm:$0xff] %v7350_v24  ;;  %v7357_v5 = vpop.permute.xlu1 %1541  ;;  %v2958_v58 = vsel %vm657_vm0, %v2953_v0, %v2957_v52  ;;  %v7396_v0 = vld [vmem:[%s9176_s0 + $0x130] sm:$0xf] }
 0x118   :  { %9370 = vst [vmem:[#allocation87_spill] sm:$0xff] %v7357_v5  ;;  %2333 = vrot.lane.b32.xlu0 %v2244_v53, %s5544_s15  ;;  %v2964_v5 = vrot.slane %v2962_v20, 1  ;;  %v2967_v53 = vshll.u32 %v7355_v30, 16  ;;  %v5039_v20 = vcombine.low %v4751_v59, %v7284_v61  ;;  %v4551_v59 = vld [vmem:[%s9176_s0 + $0x12c] sm:$0xf] }
 0x119   :  { %2587 = vrot.lane.b32.xlu1 %v4975_v62, %s5545_s14  ;;  %v2765_v62 = vrot.slane %v2763_v38, 1 }
 0x11a   :  { %v7367_v24 = vpop.permute.xlu0 %1539  ;;  %v2965_v9 = vor.u32 %v2964_v5, %v2960_v27  ;;  %v2969_v45 = vrot.slane %v2967_v53, 1  ;;  %v2777_v27 = vrot.slane %v2775_v3, 1  ;;  %v3312_v5 = vrot.slane %v7324_v12, 1 }
 0x11b   :  { %9371 = vst [vmem:[#allocation88_spill] sm:$0xff] %v7367_v24  ;;  %v7373_v34 = vpop.permute.xlu1 %1545  ;;  %v2768_v24 = vshrl.u32 %v4960_v6, 16  ;;  %v2766_v61 = vsel %vm657_vm0, %v2761_v54, %v2765_v62  ;;  %v3311_v52 = vrot.slane %v5039_v20, 1  ;;  %v7411_v12 = vcombine.low %v4551_v59, %v7396_v0  ;;  %v7432_v54 = vld [vmem:[%s9176_s0 + $0x134] ss:$0 sps:$4 sm:$0x11]  }
 0x11c   :  { %9372 = vst [vmem:[#allocation89_spill] sm:$0xff] %v7373_v34  ;;  %2555 = vrot.lane.b32.xlu0 %v4959_v25, %s5545_s14  ;;  %v4735_v25 = vld [vmem:[%s9176_s0 + $0x48] sm:$0xe]  ;;  %v2970_v53 = vsel %vm657_vm0, %v2965_v9, %v2969_v45  ;;  %v3264_v45 = vrot.slane %v7344_v36, 1 }
 0x11d   :  { %2589 = vrot.lane.b32.xlu1 %v4976_v13, %s5545_s14  ;;  %v4752_v13 = vld [vmem:[%s9176_s0 + $0x12c] sm:$0xe]  ;;  %v2773_v55 = vor.u32 %v2772_v15, %v2768_v24  ;;  %v5023_v46 = vcombine.low %v4735_v25, %v7304_v10  ;;  %v4553_v24 = vld [vmem:[%s9176_s0 + $0x138] sm:$0xf]  ;;  %v7421_v10 = vld [vmem:[%s9176_s0 + $0x13c] sm:$0xf] }
 0x11e   :  { %v7379_v50 = vpop.permute.xlu0 %1543  ;;  %v5040_v34 = vcombine.low %v4752_v13, %v7314_v19  ;;  %v3313_v19 = vsel %vm1202_vm1, %v3311_v52, %v3312_v5  ;;  %v3315_v25 = vrot.slane %v7355_v30, 1  ;;  %v4882_v36 = vcombine.low %v4553_v24, %v7421_v10  ;;  %v7450_v30 = vld [vmem:[%s9176_s0 + $0x5c] ss:$0 sps:$4 sm:$0x11]  }
 0x11f   :  { %9373 = vst [vmem:[#allocation90_spill] sm:$0xff] %v7379_v50  ;;  %v7385_v38 = vpop.permute.xlu1 %1557  ;;  %v2778_v9 = vsel %vm657_vm0, %v2773_v55, %v2777_v27  ;;  %v3263_v62 = vrot.slane %v5023_v46, 1  ;;  %v1950_v13 = vshll.u32 %v7411_v12, 16  ;;  %v1758_v27 = vshll.u32 %v6668_v1, 16 }
 0x120   :  { %2557 = vrot.lane.b32.xlu0 %v4960_v6, %s5545_s14  ;;  %v4736_v6 = vld [vmem:[%s9176_s0 + $0x54] sm:$0xe]  ;;  %v3314_v20 = vrot.slane %v5040_v34, 1  ;;  %v1955_v34 = vshll.u32 %v7432_v54, 16  ;;  %v1948_v46 = vshrl.u32 %v7411_v12, 16  ;;  %v1960_v39 = vshrl.u32 %v4882_v36, 16 }
 0x121   :  { %3131 = vrot.lane.b32.xlu1 %v2958_v58, %s5546_s7  ;;  %v5024_v3 = vcombine.low %v4736_v6, %v7336_v63  ;;  %v3265_v63 = vsel %vm1202_vm1, %v3263_v62, %v3264_v45  ;;  %v7459_v6 = vld [vmem:[%s9176_s0 + $0x140] ss:$0 sps:$4 sm:$0x11]   ;;  %v1770_v45 = vshll.u32 %v6639_v35, 16 }
 0x122   :  { %v7403_v18 = vpop.permute.xlu0 %1555  ;;  %v3316_v52 = vsel %vm1202_vm1, %v3314_v20, %v3315_v25  ;;  %v1763_v20 = vshll.u32 %v7450_v30, 16  ;;  %v7472_v25 = vld [vmem:[%s9176_s0 + $0x68] ss:$0 sps:$4 sm:$0x11]  }
 0x123   :  { %v7413_v58 = vpop.permute.xlu1 %2099  ;;  %v3266_v5 = vrot.slane %v5024_v3, 1  ;;  %v1957_v3 = vrot.slane %v1955_v34, 1  ;;  %v1768_v34 = vshrl.u32 %v6639_v35, 16  ;;  %v1775_v47 = vshll.u32 %v7472_v25, 16 }
 0x124   :  { %3099 = vrot.lane.b32.xlu0 %v2766_v61, %s5546_s7  ;;  %v3267_v61 = vrot.slane %v7364_v51, 1  ;;  %v1962_v51 = vshll.u32 %v4882_v36, 16 }
 0x125   :  { %3133 = vrot.lane.b32.xlu1 %v2970_v53, %s5546_s7  ;;  %v1952_v53 = vrot.slane %v1950_v13, 1 }
 0x126   :  { %v7434_v15 = vpop.permute.xlu0 %2067  ;;  %v3268_v62 = vsel %vm1202_vm1, %v3266_v5, %v3267_v61  ;;  %v4625_v5 = vld [vmem:[%s9176_s0 + $0x12c] sm:$0xe]  ;;  %v4610_v61 = vld [vmem:[%s9176_s0 + $0x60] sm:$0xe] }
 0x127   :  { %v7439_v59 = vpop.permute.xlu1 %2101  ;;  %v1953_v50 = vor.u32 %v1952_v53, %v1948_v46  ;;  %v1772_v46 = vrot.slane %v1770_v45, 1  ;;  %v4945_v35 = vcombine.low %v4625_v5, %v7396_v0  ;;  %v1777_v0 = vrot.slane %v1775_v47, 1 }
 0x128   :  { %3101 = vrot.lane.b32.xlu0 %v2778_v9, %s5546_s7  ;;  %v1756_v9 = vshrl.u32 %v6668_v1, 16  ;;  %v1964_v1 = vrot.slane %v1962_v51, 1  ;;  %v1765_v51 = vrot.slane %v1763_v20, 1 }
 0x129   :  { %3387 = vrot.lane.b32.xlu1 %v3313_v19, %s5547_s17  ;;  %v1760_v19 = vrot.slane %v1758_v27, 1  ;;  %v1958_v41 = vsel %vm657_vm0, %v1953_v50, %v1957_v3  ;;  %v4626_v50 = vld [vmem:[%s9176_s0 + $0x138] sm:$0xe]  ;;  %v2293_v20 = vrot.slane %v4945_v35, 1 }
 0x12a   :  { %v7452_v55 = vpop.permute.xlu0 %2069  ;;  %v1965_v33 = vor.u32 %v1964_v1, %v1960_v39  ;;  %v2294_v1 = vrot.slane %v7432_v54, 1  ;;  %v2246_v54 = vrot.slane %v7450_v30, 1  ;;  %v9374_v30 = vld [vmem:[#allocation3_spill] sm:$0xff] }
 0x12b   :  { %v7461_v24 = vpop.permute.xlu1 %2355  ;;  %v1761_v53 = vor.u32 %v1760_v19, %v1756_v9 }
 0x12c   :  { %3355 = vrot.lane.b32.xlu0 %v3265_v63, %s5547_s17  ;;  %v1967_v63 = vshll.u32 %v7459_v6, 16 }
 0x12d   :  { %3389 = vrot.lane.b32.xlu1 %v3316_v52, %s5547_s17  ;;  %v4609_v52 = vld [vmem:[%s9176_s0 + $0x54] sm:$0xe]  ;;  %v1766_v39 = vsel %vm657_vm0, %v1761_v53, %v1765_v51  ;;  %v2295_v51 = vsel %vm1202_vm1, %v2293_v20, %v2294_v1  ;;  %v7585_v1 = vld [vmem:[%s9176_s0 + $0x70] sm:$0xf] }
 0x12e   :  { %v7474_v13 = vpop.permute.xlu0 %2323  ;;  %v1969_v43 = vrot.slane %v1967_v63, 1  ;;  %v4946_v63 = vcombine.low %v4626_v50, %v7421_v10  ;;  %v9376_v50 = vld [vmem:[#allocation18_spill] sm:$0xff] }
 0x12f   :  { %v7477_v27 = vpop.permute.xlu1 %2357 }
 0x130   :  { %3357 = vrot.lane.b32.xlu0 %v3268_v62, %s5547_s17  ;;  %v4930_v62 = vcombine.low %v4610_v61, %v5534_v37  ;;  %v1773_v37 = vor.u32 %v1772_v46, %v1768_v34  ;;  %v1970_v3 = vsel %vm657_vm0, %v1965_v33, %v1969_v43  ;;  %v4647_v43 = vld [vmem:[%s9176_s0 + $0x60] sm:$0xf]  ;;  %v7533_v33 = vld [vmem:[%s9176_s0 + $0x64] sm:$0xf]  ;;  %v2249_v34 = vrot.slane %v7472_v25, 1 }
 0x131   :  { %1569 = vrot.lane.b32.xlu1 %v4882_v36, %s5542_s20  ;;  %v5535_v36 = vld [vmem:[%s9176_s0 + $0x58] sm:$0xf]  ;;  %v7545_v46 = vld [vmem:[%s9176_s0 + $0x140] ss:$0 sps:$4 sm:$0x11]   ;;  %v2296_v35 = vrot.slane %v4946_v63, 1  ;;  %v3413_v25 = vsel %vm3411_vm2, %v9374_v30, %v6515_v23  ;;  %v7580_v20 = vcombine.low %v4647_v43, %v7533_v33 }
 0x132   :  { %v7492_v44 = vpop.permute.xlu0 %2325  ;;  %v4929_v45 = vcombine.low %v4609_v52, %v5535_v36  ;;  %v2248_v5 = vrot.slane %v4930_v62, 1  ;;  %v1778_v10 = vsel %vm657_vm0, %v1773_v37, %v1777_v0  ;;  %v2297_v62 = vrot.slane %v7459_v6, 1  ;;  %v9375_v36 = vld [vmem:[#allocation5_spill] sm:$0xff]  ;;  %v9377_v37 = vld [vmem:[#allocation19_spill] sm:$0xff]  ;;  %v4681_v6 = vld [vmem:[%s9176_s0 + $0x144] sm:$0xf] }
 0x133   :  { %v7502_v9 = vpop.permute.xlu1 %2579  ;;  %v3445_v0 = vsel %vm3411_vm2, %v9377_v37, %v6700_v42  ;;  %v7569_v23 = vld [vmem:[%s9176_s0 + $0x148] sm:$0xf]  ;;  %v3478_v42 = vsel %vm3476_vm3, %v3413_v25, %v6936_v11  ;;  %v2979_v43 = vshll.u32 %v7545_v46, 16 }
 0x134   :  { %1567 = vrot.lane.b32.xlu0 %v7411_v12, %s5542_s20  ;;  %v4679_v12 = vld [vmem:[%s9176_s0 + $0x138] sm:$0xf]  ;;  %v2245_v47 = vrot.slane %v4929_v45, 1  ;;  %v3415_v45 = vsel %vm3411_vm2, %v9375_v36, %v6521_v7  ;;  %v4649_v7 = vld [vmem:[%s9176_s0 + $0x6c] sm:$0xf]  ;;  %v2250_v11 = vsel %vm1202_vm1, %v2248_v5, %v2249_v34  ;;  %v2298_v25 = vsel %vm1202_vm1, %v2296_v35, %v2297_v62 }
 0x135   :  { %2111 = vrot.lane.b32.xlu1 %v1958_v41, %s5543_s5  ;;  %v7522_v41 = vld [vmem:[%s9176_s0 + $0x13c] sm:$0xf]  ;;  %v7590_v63 = vld [vmem:[%s9176_s0 + $0x68] ss:$0 sps:$4 sm:$0x11]   ;;  %v7601_v36 = vcombine.low %v4681_v6, %v7569_v23  ;;  %v7606_v5 = vcombine.low %v4649_v7, %v7585_v1  ;;  %v2780_v35 = vshrl.u32 %v7580_v20, 16  ;;  %v3543_v6 = vsel %vm3541_vm4, %v3478_v42, %v7271_v57 }
 0x136   :  { %v7511_v19 = vpop.permute.xlu0 %2547  ;;  %v7540_v52 = vcombine.low %v4679_v12, %v7522_v41  ;;  %v2787_v62 = vshll.u32 %v7590_v63, 16  ;;  %v2981_v37 = vrot.slane %v2979_v43, 1 }
 0x137   :  { %v7524_v61 = vpop.permute.xlu1 %2581 }
 0x138   :  { %2079 = vrot.lane.b32.xlu0 %v1766_v39, %s5543_s5  ;;  %v3447_v39 = vsel %vm3411_vm2, %v9376_v50, %v6680_v56  ;;  %v3480_v56 = vsel %vm3476_vm3, %v3415_v45, %v6917_v49  ;;  %v2247_v49 = vsel %vm1202_vm1, %v2245_v47, %v2246_v54  ;;  %v2974_v12 = vshll.u32 %v7540_v52, 16 }
 0x139   :  { %2113 = vrot.lane.b32.xlu1 %v1970_v3, %s5543_s5  ;;  %v2972_v54 = vshrl.u32 %v7540_v52, 16 }
 0x13a   :  { %v7547_v53 = vpop.permute.xlu0 %2549  ;;  %v2976_v50 = vrot.slane %v2974_v12, 1  ;;  %v3608_v12 = vsel %vm3606_vm5, %v3543_v6, %v7434_v15 }
 0x13b   :  { %v3124_v3 = vpop.permute.xlu1 %3123 }
 0x13c   :  { %2081 = vrot.lane.b32.xlu0 %v1778_v10, %s5543_s5  ;;  %v3510_v10 = vsel %vm3476_vm3, %v3445_v0, %v7118_v32  ;;  %v7612_v32 = vld [vmem:[%s9176_s0 + $0x14c] ss:$0 sps:$4 sm:$0x11]   ;;  %v2984_v0 = vshrl.u32 %v7601_v36, 16 }
 0x13d   :  { %2367 = vrot.lane.b32.xlu1 %v2295_v51, %s5544_s15  ;;  %v3575_v51 = vsel %vm3541_vm4, %v3510_v10, %v7403_v18  ;;  %v2782_v18 = vshll.u32 %v7580_v20, 16  ;;  %v2986_v10 = vshll.u32 %v7601_v36, 16 }
 0x13e   :  { %v3092_v30 = vpop.permute.xlu0 %3091  ;;  %v3640_v34 = vsel %vm3606_vm5, %v3575_v51, %v7413_v58  ;;  %v3512_v58 = vsel %vm3476_vm3, %v3447_v39, %v7106_v2  ;;  %v2991_v2 = vshll.u32 %v7612_v32, 16 }
 0x13f   :  { %v3126_v47 = vpop.permute.xlu1 %3125  ;;  %v3705_v45 = vsel %vm3671_vm6, %v3640_v34, %v7461_v24  ;;  %v3577_v24 = vsel %vm3541_vm4, %v3512_v58, %v7385_v38  ;;  %v2784_v42 = vrot.slane %v2782_v18, 1  ;;  %v2792_v58 = vshrl.u32 %v7606_v5, 16 }
 0x140   :  { %2335 = vrot.lane.b32.xlu0 %v2247_v49, %s5544_s15  ;;  %v3770_v7 = vsel %vm3736_vm7, %v3705_v45, %v7502_v9  ;;  %v3642_v57 = vsel %vm3606_vm5, %v3577_v24, %v7439_v59  ;;  %v3673_v9 = vsel %vm3671_vm6, %v3608_v12, %v7474_v13  ;;  %v2977_v59 = vor.u32 %v2976_v50, %v2972_v54  ;;  %v7653_v13 = vld [vmem:[%s9176_s0 + $0x74] ss:$0 sps:$4 sm:$0x11]   ;;  %v4753_v54 = vld [vmem:[%s9176_s0 + $0x138] sm:$0xe] }
 0x141   :  { %2369 = vrot.lane.b32.xlu1 %v2298_v25, %s5544_s15  ;;  %v3835_v43 = vsel %vm3801_vm8, %v3770_v7, %v3124_v3  ;;  %v3707_v38 = vsel %vm3671_vm6, %v3642_v57, %v7477_v27  ;;  %v3738_v15 = vsel %vm3736_vm7, %v3673_v9, %v7511_v19  ;;  %v2794_v3 = vshll.u32 %v7606_v5, 16  ;;  %v4754_v12 = vld [vmem:[%s9176_s0 + $0x144] sm:$0xe] }
 0x142   :  { %v3094_v49 = vpop.permute.xlu0 %3093  ;;  %v3772_v27 = vsel %vm3736_vm7, %v3707_v38, %v7524_v61  ;;  %v3803_v19 = vsel %vm3801_vm8, %v3738_v15, %v3092_v30  ;;  %v2785_v30 = vor.u32 %v2784_v42, %v2780_v35  ;;  %v2982_v35 = vsel %vm657_vm0, %v2977_v59, %v2981_v37  ;;  %v7699_v37 = vld [vmem:[%s9176_s0 + $0x148] sm:$0xf]  ;;  %v4557_v15 = vld [vmem:[%s9176_s0 + $0x150] sm:$0xf] }
 0x143   :  { %v3380_v25 = vpop.permute.xlu1 %3379  ;;  %v3837_v18 = vsel %vm3801_vm8, %v3772_v27, %v3126_v47  ;;  %v2796_v47 = vrot.slane %v2794_v3, 1  ;;  %v5042_v42 = vcombine.low %v4754_v12, %v7569_v23  ;;  %v3270_v23 = vrot.slane %v7590_v63, 1 }
 0x144   :  { %2337 = vrot.lane.b32.xlu0 %v2250_v11, %s5544_s15  ;;  %v3900_v39 = vsel %vm3866_vm9, %v3835_v43, %v3380_v25  ;;  %v3545_v11 = vsel %vm3541_vm4, %v3480_v56, %v7256_v4  ;;  %v2789_v4 = vrot.slane %v2787_v62, 1 }
 0x145   :  { %2591 = vrot.lane.b32.xlu1 %v7540_v52, %s5545_s14  ;;  %5180 = vmatprep.mubr.msk.bf16.mxu1 %vm3931_vm10, %v3900_v39  ;;  %v2988_v52 = vrot.slane %v2986_v10, 1  ;;  %v3610_v34 = vsel %vm3606_vm5, %v3545_v11, %v7452_v55  ;;  %v2993_v10 = vrot.slane %v2991_v2, 1  ;;  %v2797_v43 = vor.u32 %v2796_v47, %v2792_v58  ;;  %v7764_v47 = vld [vmem:[%s9176_s0 + $0x158] ss:$0 sps:$4 sm:$0x11]  }
 0x146   :  { %v3348_v51 = vpop.permute.xlu0 %3347  ;;  %v3675_v61 = vsel %vm3671_vm6, %v3610_v34, %v7492_v44  ;;  %v2799_v44 = vshll.u32 %v7653_v13, 16 }
 0x147   :  { %v3868_v45 = vsel %vm3866_vm9, %v3803_v19, %v3348_v51  ;;  %v3382_v50 = vpop.permute.xlu1 %3381  ;;  %v3740_v55 = vsel %vm3736_vm7, %v3675_v61, %v7547_v53  ;;  %v2989_v7 = vor.u32 %v2988_v52, %v2984_v0  ;;  %v4737_v53 = vld [vmem:[%s9176_s0 + $0x60] sm:$0xe]  ;;  %v2790_v0 = vsel %vm657_vm0, %v2785_v30, %v2789_v4  ;;  %v7737_v19 = vld [vmem:[%s9176_s0 + $0x14c] ss:$0 sps:$4 sm:$0x11]  }
 0x148   :  { %2559 = vrot.lane.b32.xlu0 %v7580_v20, %s5545_s14  ;;  %5148 = vmatprep.mubr.msk.bf16.mxu0 %vm3931_vm10, %v3868_v45  ;;  %v3902_v56 = vsel %vm3866_vm9, %v3837_v18, %v3382_v50  ;;  %v5041_v20 = vcombine.low %v4753_v54, %v7522_v41  ;;  %v3805_v62 = vsel %vm3801_vm8, %v3740_v55, %v3094_v49  ;;  %v4555_v41 = vld [vmem:[%s9176_s0 + $0x144] sm:$0xf]  ;;  %v3318_v49 = vrot.slane %v7545_v46, 1 }
 0x149   :  { %2593 = vrot.lane.b32.xlu1 %v7601_v36, %s5545_s14  ;;  %5181 = vmatmul.mubr.msk.bf16.vlgmr.msra.gmra.mrb[0].mxu1 %vm3931_vm10, %v3902_v56  ;;  %v2801_v25 = vrot.slane %v2799_v44, 1  ;;  %v5025_v57 = vcombine.low %v4737_v53, %v7533_v33  ;;  %v2994_v39 = vsel %vm657_vm0, %v2989_v7, %v2993_v10  ;;  %v7716_v38 = vcombine.low %v4555_v41, %v7699_v37  ;;  %v7726_v33 = vld [vmem:[%s9176_s0 + $0x154] sm:$0xf]  ;;  %v7777_v53 = vld [vmem:[%s9176_s0 + $0x80] ss:$0 sps:$4 sm:$0x11]  }
 0x14a   :  { %v3350_v6 = vpop.permute.xlu0 %3349  ;;  %v3317_v2 = vrot.slane %v5041_v20, 1  ;;  %v3320_v52 = vrot.slane %v5042_v42, 1  ;;  %v3321_v54 = vrot.slane %v7612_v32, 1  ;;  %v4884_v63 = vcombine.low %v4557_v15, %v7726_v33  ;;  %v7755_v32 = vld [vmem:[%s9176_s0 + $0x74] ss:$0 sps:$4 sm:$0x11]  }
 0x14b   :  { %v3870_v36 = vsel %vm3866_vm9, %v3805_v62, %v3350_v6  ;;  %v7688_v24 = vpop.permute.xlu1 %1561  ;;  %v2802_v59 = vsel %vm657_vm0, %v2797_v43, %v2801_v25  ;;  %v3269_v11 = vrot.slane %v5025_v57, 1  ;;  %v1974_v34 = vshll.u32 %v7716_v38, 16  ;;  %v4627_v43 = vld [vmem:[%s9176_s0 + $0x144] sm:$0xe]  ;;  %v4628_v15 = vld [vmem:[%s9176_s0 + $0x150] sm:$0xe] }
 0x14c   :  { %2561 = vrot.lane.b32.xlu0 %v7606_v5, %s5545_s14  ;;  %5149 = vmatmul.mubr.msk.bf16.vlgmr.msra.gmra.mrb[0].mxu0 %vm3931_vm10, %v3870_v36  ;;  %v4738_v5 = vld [vmem:[%s9176_s0 + $0x6c] sm:$0xe]  ;;  %v3319_v3 = vsel %vm1202_vm1, %v3317_v2, %v3318_v49  ;;  %v1782_v45 = vshll.u32 %v6698_v26, 16  ;;  %v3273_v4 = vrot.slane %v7653_v13, 1  ;;  %v1979_v61 = vshll.u32 %v7737_v19, 16 }
 0x14d   :  { %3135 = vrot.lane.b32.xlu1 %v2982_v35, %s5546_s7  ;;  %v5026_v27 = vcombine.low %v4738_v5, %v7585_v1  ;;  %v3271_v1 = vsel %vm1202_vm1, %v3269_v11, %v3270_v23  ;;  %v3322_v30 = vsel %vm1202_vm1, %v3320_v52, %v3321_v54  ;;  %v1972_v58 = vshrl.u32 %v7716_v38, 16  ;;  %v4611_v2 = vld [vmem:[%s9176_s0 + $0x6c] sm:$0xe]  ;;  %v4683_v52 = vld [vmem:[%s9176_s0 + $0x150] sm:$0xf] }
 0x14e   :  { %v7708_v9 = vpop.permute.xlu0 %1559  ;;  %v1976_v55 = vrot.slane %v1974_v34, 1  ;;  %v1986_v13 = vshll.u32 %v4884_v63, 16  ;;  %v1794_v20 = vshll.u32 %v6675_v22, 16  ;;  %v1780_v62 = vshrl.u32 %v6698_v26, 16  ;;  %v7809_v54 = vld [vmem:[%s9176_s0 + $0x154] sm:$0xf] }
 0x14f   :  { %v7718_v46 = vpop.permute.xlu1 %2103  ;;  %v3272_v50 = vrot.slane %v5026_v27, 1  ;;  %v1784_v6 = vrot.slane %v1782_v45, 1  ;;  %v1981_v7 = vrot.slane %v1979_v61, 1  ;;  %v1787_v10 = vshll.u32 %v7755_v32, 16  ;;  %v5536_v34 = vld [vmem:[%s9176_s0 + $0x70] sm:$0xf] }
 0x150   :  { %3103 = vrot.lane.b32.xlu0 %v2790_v0, %s5546_s7  ;;  %v1977_v12 = vor.u32 %v1976_v55, %v1972_v58  ;;  %v1984_v41 = vshrl.u32 %v4884_v63, 16  ;;  %v1988_v26 = vrot.slane %v1986_v13, 1  ;;  %v1991_v0 = vshll.u32 %v7764_v47, 16 }
 0x151   :  { %3137 = vrot.lane.b32.xlu1 %v2994_v39, %s5546_s7  ;;  %v3274_v35 = vsel %vm1202_vm1, %v3272_v50, %v3273_v4  ;;  %v1792_v25 = vshrl.u32 %v6675_v22, 16  ;;  %v1796_v57 = vrot.slane %v1794_v20, 1  ;;  %v1785_v39 = vor.u32 %v1784_v6, %v1780_v62 }
 0x152   :  { %v7739_v51 = vpop.permute.xlu0 %2071  ;;  %v1789_v42 = vrot.slane %v1787_v10, 1  ;;  %v1799_v5 = vshll.u32 %v7777_v53, 16  ;;  %v1982_v22 = vsel %vm657_vm0, %v1977_v12, %v1981_v7  ;;  %v4947_v11 = vcombine.low %v4627_v43, %v7699_v37  ;;  %v4651_v7 = vld [vmem:[%s9176_s0 + $0x78] sm:$0xf]  ;;  %v7844_v10 = vld [vmem:[%s9176_s0 + $0x7c] sm:$0xf] }
 0x153   :  { %v7744_v18 = vpop.permute.xlu1 %2105  ;;  %v4931_v37 = vcombine.low %v4611_v2, %v5536_v34  ;;  %v4948_v45 = vcombine.low %v4628_v15, %v7726_v33  ;;  %v1797_v50 = vor.u32 %v1796_v57, %v1792_v25  ;;  %v2300_v55 = vrot.slane %v7737_v19, 1  ;;  %v4685_v12 = vld [vmem:[%s9176_s0 + $0x15c] sm:$0xf]  ;;  %v4653_v43 = vld [vmem:[%s9176_s0 + $0x84] sm:$0xf]  ;;  %v9379_v15 = vld [vmem:[#allocation4_spill] sm:$0xff] }
 0x154   :  { %3105 = vrot.lane.b32.xlu0 %v2802_v59, %s5546_s7  ;;  %v1989_v59 = vor.u32 %v1988_v26, %v1984_v41  ;;  %v1801_v4 = vrot.slane %v1799_v5, 1  ;;  %v2299_v58 = vrot.slane %v4947_v11, 1  ;;  %v7827_v13 = vcombine.low %v4683_v52, %v7809_v54  ;;  %v9378_v2 = vld [vmem:[#allocation2_spill] sm:$0xff]  ;;  %v7873_v5 = vld [vmem:[%s9176_s0 + $0x158] ss:$0 sps:$4 sm:$0x11]  }
 0x155   :  { %3391 = vrot.lane.b32.xlu1 %v3319_v3, %s5547_s17  ;;  %v1993_v3 = vrot.slane %v1991_v0, 1  ;;  %v2251_v62 = vrot.slane %v4931_v37, 1  ;;  %v2252_v6 = vrot.slane %v7755_v32, 1  ;;  %v2303_v26 = vrot.slane %v7764_v47, 1  ;;  %v7856_v0 = vld [vmem:[%s9176_s0 + $0x160] sm:$0xf] }
 0x156   :  { %v7757_v56 = vpop.permute.xlu0 %2073  ;;  %v1802_v19 = vsel %vm657_vm0, %v1797_v50, %v1801_v4  ;;  %v2301_v32 = vsel %vm1202_vm1, %v2299_v58, %v2300_v55  ;;  %v2998_v25 = vshll.u32 %v7827_v13, 16  ;;  %v3417_v57 = vsel %vm3411_vm2, %v9378_v2, %v6512_v31  ;;  %v7868_v47 = vld [vmem:[%s9176_s0 + $0x88] sm:$0xf]  ;;  %v9381_v52 = vld [vmem:[#allocation20_spill] sm:$0xff] }
 0x157   :  { %v7766_v44 = vpop.permute.xlu1 %2359  ;;  %v7884_v11 = vcombine.low %v4651_v7, %v7844_v10  ;;  %v3482_v4 = vsel %vm3476_vm3, %v3417_v57, %v6964_v28  ;;  %v3003_v55 = vshll.u32 %v7873_v5, 16 }
 0x158   :  { %3359 = vrot.lane.b32.xlu0 %v3271_v1, %s5547_s17  ;;  %v1790_v1 = vsel %vm657_vm0, %v1785_v39, %v1789_v42 }
 0x159   :  { %3393 = vrot.lane.b32.xlu1 %v3322_v30, %s5547_s17  ;;  %v1994_v30 = vsel %vm657_vm0, %v1989_v59, %v1993_v3  ;;  %v9380_v59 = vld [vmem:[#allocation21_spill] sm:$0xff]  ;;  %v2255_v3 = vrot.slane %v7777_v53, 1  ;;  %v7899_v53 = vld [vmem:[%s9176_s0 + $0x80] ss:$0 sps:$4 sm:$0x11]  }
 0x15a   :  { %v7779_v36 = vpop.permute.xlu0 %2327  ;;  %v3449_v31 = vsel %vm3411_vm2, %v9380_v59, %v6730_v48  ;;  %v7894_v48 = vcombine.low %v4685_v12, %v7856_v0 }
 0x15b   :  { %v7782_v49 = vpop.permute.xlu1 %2361  ;;  %v3514_v34 = vsel %vm3476_vm3, %v3449_v31, %v7130_v21  ;;  %v2996_v21 = vshrl.u32 %v7827_v13, 16 }
 0x15c   :  { %3361 = vrot.lane.b32.xlu0 %v3274_v35, %s5547_s17  ;;  %v2302_v35 = vrot.slane %v4948_v45, 1 }
 0x15d   :  { %1573 = vrot.lane.b32.xlu1 %v4884_v63, %s5542_s20  ;;  %v4612_v63 = vld [vmem:[%s9176_s0 + $0x78] sm:$0xe] }
 0x15e   :  { %v7797_v23 = vpop.permute.xlu0 %2329  ;;  %v2304_v45 = vsel %vm1202_vm1, %v2302_v35, %v2303_v26 }
 0x15f   :  { %v7801_v27 = vpop.permute.xlu1 %2583 }
 0x160   :  { %1571 = vrot.lane.b32.xlu0 %v7716_v38, %s5542_s20  ;;  %v5537_v38 = vld [vmem:[%s9176_s0 + $0x7c] sm:$0xf] }
 0x161   :  { %2115 = vrot.lane.b32.xlu1 %v1982_v22, %s5543_s5  ;;  %v4932_v33 = vcombine.low %v4612_v63, %v5537_v38  ;;  %v3419_v22 = vsel %vm3411_vm2, %v9379_v15, %v6518_v29  ;;  %v3451_v63 = vsel %vm3411_vm2, %v9381_v52, %v6712_v17  ;;  %v2253_v29 = vsel %vm1202_vm1, %v2251_v62, %v2252_v6 }
 0x162   :  { %v7822_v61 = vpop.permute.xlu0 %2551  ;;  %v7903_v17 = vcombine.low %v4653_v43, %v7868_v47  ;;  %v3484_v50 = vsel %vm3476_vm3, %v3419_v22, %v6943_v8  ;;  %v3516_v38 = vsel %vm3476_vm3, %v3451_v63, %v7120_v14  ;;  %v2806_v8 = vshll.u32 %v7884_v11, 16 }
 0x163   :  { %v7832_v20 = vpop.permute.xlu1 %2585  ;;  %v2254_v39 = vrot.slane %v4932_v33, 1  ;;  %v2811_v6 = vshll.u32 %v7899_v53, 16  ;;  %v3010_v14 = vshll.u32 %v7894_v48, 16  ;;  %v3549_v15 = vsel %vm3541_vm4, %v3484_v50, %v7276_v40 }
 0x164   :  { %2083 = vrot.lane.b32.xlu0 %v1790_v1, %s5543_s5  ;;  %v3000_v1 = vrot.slane %v2998_v25, 1  ;;  %v2818_v12 = vshll.u32 %v7903_v17, 16  ;;  %v3005_v25 = vrot.slane %v3003_v55, 1  ;;  %v2816_v63 = vshrl.u32 %v7903_v17, 16  ;;  %v4756_v55 = vld [vmem:[%s9176_s0 + $0x15c] sm:$0xe] }
 0x165   :  { %2117 = vrot.lane.b32.xlu1 %v1994_v30, %s5543_s5  ;;  %v3579_v30 = vsel %vm3541_vm4, %v3514_v34, %v7708_v9  ;;  %v2256_v62 = vsel %vm1202_vm1, %v2254_v39, %v2255_v3  ;;  %v2804_v9 = vshrl.u32 %v7884_v11, 16  ;;  %v2808_v39 = vrot.slane %v2806_v8, 1 }
 0x166   :  { %v7849_v41 = vpop.permute.xlu0 %2553  ;;  %v3644_v33 = vsel %vm3606_vm5, %v3579_v30, %v7718_v46  ;;  %v3547_v46 = vsel %vm3541_vm4, %v3482_v4, %v7293_v16  ;;  %v3001_v7 = vor.u32 %v3000_v1, %v2996_v21 }
 0x167   :  { %v3128_v42 = vpop.permute.xlu1 %3127  ;;  %v3709_v28 = vsel %vm3671_vm6, %v3644_v33, %v7766_v44  ;;  %v7933_v44 = vld [vmem:[%s9176_s0 + $0x164] ss:$0 sps:$4 sm:$0x11]   ;;  %v3612_v26 = vsel %vm3606_vm5, %v3547_v46, %v7739_v51 }
 0x168   :  { %2085 = vrot.lane.b32.xlu0 %v1802_v19, %s5543_s5  ;;  %v3774_v35 = vsel %vm3736_vm7, %v3709_v28, %v7801_v27  ;;  %v3677_v2 = vsel %vm3671_vm6, %v3612_v26, %v7779_v36  ;;  %v3012_v36 = vrot.slane %v3010_v14, 1  ;;  %v3015_v31 = vshll.u32 %v7933_v44, 16 }
 0x169   :  { %2371 = vrot.lane.b32.xlu1 %v2301_v32, %s5544_s15  ;;  %v3581_v32 = vsel %vm3541_vm4, %v3516_v38, %v7688_v24  ;;  %v3839_v16 = vsel %vm3801_vm8, %v3774_v35, %v3128_v42  ;;  %v7950_v24 = vld [vmem:[%s9176_s0 + $0x8c] ss:$0 sps:$4 sm:$0x11]   ;;  %v3742_v42 = vsel %vm3736_vm7, %v3677_v2, %v7822_v61  ;;  %v4755_v61 = vld [vmem:[%s9176_s0 + $0x150] sm:$0xe]  ;;  %v3006_v50 = vsel %vm657_vm0, %v3001_v7, %v3005_v25 }
 0x16a   :  { %v3096_v37 = vpop.permute.xlu0 %3095  ;;  %v3646_v27 = vsel %vm3606_vm5, %v3581_v32, %v7744_v18  ;;  %v3008_v18 = vshrl.u32 %v7894_v48, 16  ;;  %v5043_v21 = vcombine.low %v4755_v61, %v7809_v54  ;;  %v3017_v30 = vrot.slane %v3015_v31, 1  ;;  %v4559_v54 = vld [vmem:[%s9176_s0 + $0x15c] sm:$0xf]  ;;  %v8004_v38 = vld [vmem:[%s9176_s0 + $0x160] sm:$0xf] }
 0x16b   :  { %v3130_v58 = vpop.permute.xlu1 %3129  ;;  %v3711_v51 = vsel %vm3671_vm6, %v3646_v27, %v7782_v49  ;;  %v3807_v59 = vsel %vm3801_vm8, %v3742_v42, %v3096_v37  ;;  %v5044_v35 = vcombine.low %v4756_v55, %v7856_v0  ;;  %v3276_v32 = vrot.slane %v7899_v53, 1  ;;  %v8056_v53 = vld [vmem:[%s9176_s0 + $0x8c] ss:$0 sps:$4 sm:$0x11]  }
 0x16c   :  { %2339 = vrot.lane.b32.xlu0 %v2253_v29, %s5544_s15  ;;  %v3776_v22 = vsel %vm3736_vm7, %v3711_v51, %v7832_v20  ;;  %v2820_v29 = vrot.slane %v2818_v12, 1  ;;  %v3013_v4 = vor.u32 %v3012_v36, %v3008_v18  ;;  %v3323_v28 = vrot.slane %v5043_v21, 1  ;;  %v8064_v36 = vld [vmem:[%s9176_s0 + $0x170] ss:$0 sps:$4 sm:$0x11]  }
 0x16d   :  { %2373 = vrot.lane.b32.xlu1 %v2304_v45, %s5544_s15  ;;  %v3841_v3 = vsel %vm3801_vm8, %v3776_v22, %v3130_v58  ;;  %v2809_v45 = vor.u32 %v2808_v39, %v2804_v9  ;;  %v3324_v9 = vrot.slane %v7873_v5, 1  ;;  %v8026_v5 = vld [vmem:[%s9176_s0 + $0x16c] sm:$0xf]  ;;  %v3326_v27 = vrot.slane %v5044_v35, 1  ;;  %v4614_v35 = vld [vmem:[%s9176_s0 + $0x90] sm:$0xe] }
 0x16e   :  { %v3098_v19 = vpop.permute.xlu0 %3097  ;;  %v2821_v33 = vor.u32 %v2820_v29, %v2816_v63  ;;  %v3018_v46 = vsel %vm657_vm0, %v3013_v4, %v3017_v30  ;;  %v3327_v2 = vrot.slane %v7933_v44, 1  ;;  %v3279_v18 = vrot.slane %v7950_v24, 1  ;;  %v4613_v30 = vld [vmem:[%s9176_s0 + $0x84] sm:$0xe] }
 0x16f   :  { %v3384_v43 = vpop.permute.xlu1 %3383  ;;  %v3325_v25 = vsel %vm1202_vm1, %v3323_v28, %v3324_v9  ;;  %v1811_v63 = vshll.u32 %v8056_v53, 16  ;;  %v4630_v9 = vld [vmem:[%s9176_s0 + $0x168] sm:$0xe] }
 0x170   :  { %2341 = vrot.lane.b32.xlu0 %v2256_v62, %s5544_s15  ;;  %v3904_v57 = vsel %vm3866_vm9, %v3839_v16, %v3384_v43 }
 0x171   :  { %2595 = vrot.lane.b32.xlu1 %v7827_v13, %s5545_s14  ;;  %5184 = vmatprep.mubr.msk.bf16.mxu1 %vm3931_vm10, %v3904_v57  ;;  %v3614_v13 = vsel %vm3606_vm5, %v3549_v15, %v7757_v56  ;;  %v2823_v56 = vshll.u32 %v7950_v24, 16  ;;  %v8046_v57 = vld [vmem:[%s9176_s0 + $0x164] ss:$0 sps:$4 sm:$0x11]   ;;  %v1804_v24 = vshrl.u32 %v6728_v60, 16 }
 0x172   :  { %v3352_v49 = vpop.permute.xlu0 %3351  ;;  %v3679_v20 = vsel %vm3671_vm6, %v3614_v13, %v7797_v23  ;;  %v2813_v23 = vrot.slane %v2811_v6, 1  ;;  %v2003_v61 = vshll.u32 %v8046_v57, 16 }
 0x173   :  { %v3872_v52 = vsel %vm3866_vm9, %v3807_v59, %v3352_v49  ;;  %v3386_v40 = vpop.permute.xlu1 %3385  ;;  %v3744_v37 = vsel %vm3736_vm7, %v3679_v20, %v7849_v41  ;;  %v4739_v41 = vld [vmem:[%s9176_s0 + $0x78] sm:$0xe]  ;;  %v2825_v62 = vrot.slane %v2823_v56, 1  ;;  %v3328_v59 = vsel %vm1202_vm1, %v3326_v27, %v3327_v2 }
 0x174   :  { %2563 = vrot.lane.b32.xlu0 %v7884_v11, %s5545_s14  ;;  %5152 = vmatprep.mubr.msk.bf16.mxu0 %vm3931_vm10, %v3872_v52  ;;  %v3906_v34 = vsel %vm3866_vm9, %v3841_v3, %v3386_v40  ;;  %v3809_v11 = vsel %vm3801_vm8, %v3744_v37, %v3098_v19  ;;  %v2814_v8 = vsel %vm657_vm0, %v2809_v45, %v2813_v23  ;;  %v4561_v19 = vld [vmem:[%s9176_s0 + $0x168] sm:$0xf]  ;;  %v2015_v56 = vshll.u32 %v8064_v36, 16  ;;  %v8083_v37 = vld [vmem:[%s9176_s0 + $0x98] ss:$0 sps:$4 sm:$0x11]  }
 0x175   :  { %2597 = vrot.lane.b32.xlu1 %v7894_v48, %s5545_s14  ;;  %5185 = vmatmul.mubr.msk.bf16.gmra.mrb[4].mxu1 %vm3931_vm10, %v3906_v34  ;;  %v5027_v6 = vcombine.low %v4739_v41, %v7844_v10  ;;  %v8029_v10 = vcombine.low %v4559_v54, %v8004_v38  ;;  %v2826_v0 = vsel %vm657_vm0, %v2821_v33, %v2825_v62  ;;  %v9382_v3 = vld [vmem:[#allocation43_spill] sm:$0xff]  ;;  %v2005_v23 = vrot.slane %v2003_v61, 1 }
 0x176   :  { %v3354_v1 = vpop.permute.xlu0 %3353  ;;  %v4886_v16 = vcombine.low %v4561_v19, %v8026_v5  ;;  %v1818_v52 = vshll.u32 %v9382_v3, 16  ;;  %v1813_v41 = vrot.slane %v1811_v63, 1  ;;  %v2017_v55 = vrot.slane %v2015_v56, 1 }
 0x177   :  { %v3874_v58 = vsel %vm3866_vm9, %v3809_v11, %v3354_v1  ;;  %v7993_v48 = vpop.permute.xlu1 %1565  ;;  %v3275_v12 = vrot.slane %v5027_v6, 1  ;;  %v1998_v39 = vshll.u32 %v8029_v10, 16  ;;  %v1996_v49 = vshrl.u32 %v8029_v10, 16  ;;  %v4629_v11 = vld [vmem:[%s9176_s0 + $0x15c] sm:$0xe] }
 0x178   :  { %2565 = vrot.lane.b32.xlu0 %v7903_v17, %s5545_s14  ;;  %5153 = vmatmul.mubr.msk.bf16.gmra.mrb[4].mxu0 %vm3931_vm10, %v3874_v58  ;;  %v4740_v17 = vld [vmem:[%s9176_s0 + $0x84] sm:$0xe]  ;;  %v2010_v15 = vshll.u32 %v4886_v16, 16  ;;  %v2008_v34 = vshrl.u32 %v4886_v16, 16  ;;  %v1816_v1 = vshrl.u32 %v9382_v3, 16  ;;  %v1823_v54 = vshll.u32 %v8083_v37, 16 }
 0x179   :  { %3139 = vrot.lane.b32.xlu1 %v3006_v50, %s5546_s7  ;;  %v5028_v26 = vcombine.low %v4740_v17, %v7868_v47  ;;  %v1806_v47 = vshll.u32 %v6728_v60, 16  ;;  %v3277_v44 = vsel %vm1202_vm1, %v3275_v12, %v3276_v32  ;;  %v2000_v31 = vrot.slane %v1998_v39, 1  ;;  %v4687_v6 = vld [vmem:[%s9176_s0 + $0x168] sm:$0xf]  ;;  %v9383_v3 = vld [vmem:[#allocation25_spill] sm:$0xff] }
 0x17a   :  { %v8013_v14 = vpop.permute.xlu0 %1563  ;;  %v2012_v29 = vrot.slane %v2010_v15, 1  ;;  %v1820_v50 = vrot.slane %v1818_v52, 1  ;;  %v1825_v32 = vrot.slane %v1823_v54, 1  ;;  %v4950_v27 = vcombine.low %v4630_v9, %v8026_v5  ;;  %v4655_v5 = vld [vmem:[%s9176_s0 + $0x90] sm:$0xf]  ;;  %v9384_v52 = vld [vmem:[#allocation6_spill] sm:$0xff] }
 0x17b   :  { %v8031_v7 = vpop.permute.xlu1 %2107  ;;  %v3278_v42 = vrot.slane %v5028_v26, 1  ;;  %v1808_v40 = vrot.slane %v1806_v47, 1  ;;  %v2001_v60 = vor.u32 %v2000_v31, %v1996_v49  ;;  %v2309_v31 = vrot.slane %v8064_v36, 1  ;;  %v8170_v36 = vld [vmem:[%s9176_s0 + $0x170] ss:$0 sps:$4 sm:$0x11]  }
 0x17c   :  { %3107 = vrot.lane.b32.xlu0 %v2814_v8, %s5546_s7  ;;  %v2013_v58 = vor.u32 %v2012_v29, %v2008_v34  ;;  %v4949_v8 = vcombine.low %v4629_v11, %v8004_v38  ;;  %v5538_v38 = vld [vmem:[%s9176_s0 + $0x88] sm:$0xf]  ;;  %v1821_v12 = vor.u32 %v1820_v50, %v1816_v1  ;;  %v2308_v49 = vrot.slane %v4950_v27, 1  ;;  %v9385_v34 = vld [vmem:[#allocation26_spill] sm:$0xff]  ;;  %v9389_v1 = vld [vmem:[#allocation45_spill] sm:$0xff] }
 0x17d   :  { %3141 = vrot.lane.b32.xlu1 %v3018_v46, %s5546_s7  ;;  %v3280_v20 = vsel %vm1202_vm1, %v3278_v42, %v3279_v18  ;;  %v1809_v4 = vor.u32 %v1808_v40, %v1804_v24  ;;  %v2006_v62 = vsel %vm657_vm0, %v2001_v60, %v2005_v23  ;;  %v8114_v46 = vld [vmem:[%s9176_s0 + $0x16c] sm:$0xf]  ;;  %v4933_v17 = vcombine.low %v4613_v30, %v5538_v38  ;;  %v8149_v18 = vld [vmem:[%s9176_s0 + $0x94] sm:$0xf]  ;;  %v9388_v23 = vld [vmem:[#allocation22_spill] sm:$0xff] }
 0x17e   :  { %v8039_v43 = vpop.permute.xlu0 %2075  ;;  %v8132_v2 = vcombine.low %v4687_v6, %v8114_v46  ;;  %v1826_v42 = vsel %vm657_vm0, %v1821_v12, %v1825_v32  ;;  %v3423_v24 = vsel %vm3411_vm2, %v9384_v52, %v9383_v3  ;;  %v9386_v29 = vld [vmem:[#allocation7_spill] sm:$0xff]  ;;  %v9387_v60 = vld [vmem:[#allocation44_spill] sm:$0xff]  ;;  %v8183_v30 = vcombine.low %v4655_v5, %v8149_v18  ;;  %v4657_v9 = vld [vmem:[%s9176_s0 + $0x9c] sm:$0xf] }
 0x17f   :  { %v8049_v51 = vpop.permute.xlu1 %2109  ;;  %v1814_v19 = vsel %vm657_vm0, %v1809_v4, %v1813_v41  ;;  %v3421_v56 = vsel %vm3411_vm2, %v9386_v29, %v9385_v34  ;;  %v3455_v11 = vsel %vm3411_vm2, %v9388_v23, %v9387_v60  ;;  %v9390_v50 = vld [vmem:[#allocation23_spill] sm:$0xff]  ;;  %v8198_v6 = vld [vmem:[%s9176_s0 + $0xa0] sm:$0xf]  ;;  %v2310_v38 = vsel %vm1202_vm1, %v2308_v49, %v2309_v31  ;;  %v9393_v12 = vld [vmem:[#allocation60_spill] sm:$0xff] }
 0x180   :  { %3109 = vrot.lane.b32.xlu0 %v2826_v0, %s5546_s7  ;;  %v2018_v0 = vsel %vm657_vm0, %v2013_v58, %v2017_v55  ;;  %v3022_v61 = vshll.u32 %v8132_v2, 16  ;;  %v3453_v4 = vsel %vm3411_vm2, %v9390_v50, %v9389_v1  ;;  %v9391_v41 = vld [vmem:[#allocation59_spill] sm:$0xff]  ;;  %v9392_v55 = vld [vmem:[#allocation72_spill] sm:$0xff]  ;;  %v3486_v32 = vsel %vm3476_vm3, %v3421_v56, %v9393_v12  ;;  %v8237_v34 = vld [vmem:[%s9176_s0 + $0x17c] ss:$0 sps:$4 sm:$0x11]  }
 0x181   :  { %3395 = vrot.lane.b32.xlu1 %v3325_v25, %s5547_s17  ;;  %v2306_v25 = vrot.slane %v8046_v57, 1  ;;  %v2258_v57 = vrot.slane %v8056_v53, 1  ;;  %v4689_v53 = vld [vmem:[%s9176_s0 + $0x174] sm:$0xf]  ;;  %v3488_v58 = vsel %vm3476_vm3, %v3423_v24, %v9391_v41  ;;  %v3518_v54 = vsel %vm3476_vm3, %v3453_v4, %v9392_v55 }
 0x182   :  { %v8066_v22 = vpop.permute.xlu0 %2077  ;;  %v3583_v27 = vsel %vm3541_vm4, %v3518_v54, %v8013_v14  ;;  %v2830_v49 = vshll.u32 %v8183_v30, 16 }
 0x183   :  { %v8071_v13 = vpop.permute.xlu1 %2363 }
 0x184   :  { %3363 = vrot.lane.b32.xlu0 %v3277_v44, %s5547_s17  ;;  %v2257_v44 = vrot.slane %v4933_v17, 1  ;;  %v2832_v50 = vrot.slane %v2830_v49, 1 }
 0x185   :  { %3397 = vrot.lane.b32.xlu1 %v3328_v59, %s5547_s17 }
 0x186   :  { %v8085_v45 = vpop.permute.xlu0 %2331 }
 0x187   :  { %v8087_v21 = vpop.permute.xlu1 %2365 }
 0x188   :  { %3365 = vrot.lane.b32.xlu0 %v3280_v20, %s5547_s17  ;;  %v8165_v20 = vld [vmem:[%s9176_s0 + $0x178] sm:$0xf] }
 0x189   :  { %1577 = vrot.lane.b32.xlu1 %v4886_v16, %s5542_s20  ;;  %v2305_v16 = vrot.slane %v4949_v8, 1  ;;  %v2261_v8 = vrot.slane %v8083_v37, 1  ;;  %v8202_v17 = vcombine.low %v4689_v53, %v8165_v20  ;;  %v8208_v37 = vld [vmem:[%s9176_s0 + $0x98] ss:$0 sps:$4 sm:$0x11]   ;;  %v4966_v53 = vcombine.low %v4657_v9, %v8198_v6 }
 0x18a   :  { %v8099_v33 = vpop.permute.xlu0 %2333  ;;  %v2835_v24 = vshll.u32 %v8208_v37, 16 }
 0x18b   :  { %v8103_v28 = vpop.permute.xlu1 %2587  ;;  %v2307_v59 = vsel %vm1202_vm1, %v2305_v16, %v2306_v25  ;;  %v9394_v16 = vld [vmem:[#allocation71_spill] sm:$0xff] }
 0x18c   :  { %1575 = vrot.lane.b32.xlu0 %v8029_v10, %s5542_s20  ;;  %v5539_v10 = vld [vmem:[%s9176_s0 + $0x94] sm:$0xf]  ;;  %v3520_v25 = vsel %vm3476_vm3, %v3455_v11, %v9394_v16 }
 0x18d   :  { %2119 = vrot.lane.b32.xlu1 %v2006_v62, %s5543_s5  ;;  %v4934_v39 = vcombine.low %v4614_v35, %v5539_v10  ;;  %v2259_v62 = vsel %vm1202_vm1, %v2257_v44, %v2258_v57  ;;  %v9395_v44 = vld [vmem:[#allocation83_spill] sm:$0xff]  ;;  %v9396_v57 = vld [vmem:[#allocation84_spill] sm:$0xff] }
 0x18e   :  { %v8127_v26 = vpop.permute.xlu0 %2555  ;;  %v3551_v5 = vsel %vm3541_vm4, %v3486_v32, %v9396_v57 }
 0x18f   :  { %v8137_v47 = vpop.permute.xlu1 %2589  ;;  %v2260_v40 = vrot.slane %v4934_v39, 1  ;;  %v3027_v39 = vshll.u32 %v8170_v36, 16  ;;  %v3616_v29 = vsel %vm3606_vm5, %v3551_v5, %v8039_v43  ;;  %v4742_v5 = vld [vmem:[%s9176_s0 + $0x9c] sm:$0xe] }
 0x190   :  { %2087 = vrot.lane.b32.xlu0 %v1814_v19, %s5543_s5  ;;  %v3020_v19 = vshrl.u32 %v8132_v2, 16  ;;  %v3681_v11 = vsel %vm3671_vm6, %v3616_v29, %v8085_v45  ;;  %v8262_v45 = vld [vmem:[%s9176_s0 + $0xa4] ss:$0 sps:$4 sm:$0x11]  }
 0x191   :  { %2121 = vrot.lane.b32.xlu1 %v2018_v0, %s5543_s5  ;;  %v3024_v0 = vrot.slane %v3022_v61, 1  ;;  %v2262_v14 = vsel %vm1202_vm1, %v2260_v40, %v2261_v8  ;;  %v2828_v61 = vshrl.u32 %v8183_v30, 16  ;;  %v3585_v40 = vsel %vm3541_vm4, %v3520_v25, %v7993_v48 }
 0x192   :  { %v8151_v15 = vpop.permute.xlu0 %2557  ;;  %v3029_v60 = vrot.slane %v3027_v39, 1  ;;  %v3650_v23 = vsel %vm3606_vm5, %v3585_v40, %v8049_v51  ;;  %v3746_v43 = vsel %vm3736_vm7, %v3681_v11, %v8127_v26  ;;  %v3032_v51 = vshrl.u32 %v8202_v17, 16  ;;  %v4758_v39 = vld [vmem:[%s9176_s0 + $0x174] sm:$0xe] }
 0x193   :  { %v3132_v63 = vpop.permute.xlu1 %3131  ;;  %v3715_v48 = vsel %vm3671_vm6, %v3650_v23, %v8087_v21  ;;  %v8348_v23 = vld [vmem:[%s9176_s0 + $0x184] sm:$0xf] }
 0x194   :  { %2089 = vrot.lane.b32.xlu0 %v1826_v42, %s5543_s5  ;;  %v3553_v42 = vsel %vm3541_vm4, %v3488_v58, %v9395_v44  ;;  %v3780_v4 = vsel %vm3736_vm7, %v3715_v48, %v8137_v47  ;;  %v3039_v58 = vshll.u32 %v8237_v34, 16  ;;  %v4757_v47 = vld [vmem:[%s9176_s0 + $0x168] sm:$0xe] }
 0x195   :  { %2375 = vrot.lane.b32.xlu1 %v2307_v59, %s5544_s15  ;;  %v3648_v59 = vsel %vm3606_vm5, %v3583_v27, %v8031_v7  ;;  %v3025_v7 = vor.u32 %v3024_v0, %v3020_v19  ;;  %v2840_v0 = vshrl.u32 %v4966_v53, 16  ;;  %v5045_v27 = vcombine.low %v4757_v47, %v8114_v46  ;;  %v4533_v48 = vld [vmem:[%s9176_s0 + $0xa8] sm:$0xf] }
 0x196   :  { %v3100_v35 = vpop.permute.xlu0 %3099  ;;  %v3713_v31 = vsel %vm3671_vm6, %v3648_v59, %v8071_v13  ;;  %v3034_v13 = vshll.u32 %v8202_v17, 16  ;;  %v3041_v25 = vrot.slane %v3039_v58, 1 }
 0x197   :  { %v3134_v10 = vpop.permute.xlu1 %3133  ;;  %v3778_v3 = vsel %vm3736_vm7, %v3713_v31, %v8103_v28  ;;  %v3811_v21 = vsel %vm3801_vm8, %v3746_v43, %v3100_v35  ;;  %v3030_v8 = vsel %vm657_vm0, %v3025_v7, %v3029_v60  ;;  %v2833_v35 = vor.u32 %v2832_v50, %v2828_v61  ;;  %v4563_v61 = vld [vmem:[%s9176_s0 + $0x174] sm:$0xf]  ;;  %v8361_v43 = vld [vmem:[%s9176_s0 + $0xac] sm:$0xf] }
 0x198   :  { %2343 = vrot.lane.b32.xlu0 %v2259_v62, %s5544_s15  ;;  %v3843_v56 = vsel %vm3801_vm8, %v3778_v3, %v3132_v63  ;;  %v2842_v63 = vshll.u32 %v4966_v53, 16  ;;  %v3036_v26 = vrot.slane %v3034_v13, 1  ;;  %v3845_v55 = vsel %vm3801_vm8, %v3780_v4, %v3134_v10 }
 0x199   :  { %2377 = vrot.lane.b32.xlu1 %v2310_v38, %s5544_s15  ;;  %v2837_v38 = vrot.slane %v2835_v24, 1  ;;  %v3329_v31 = vrot.slane %v5045_v27, 1  ;;  %v3282_v7 = vrot.slane %v8208_v37, 1  ;;  %v4565_v37 = vld [vmem:[%s9176_s0 + $0x180] sm:$0xf] }
 0x19a   :  { %v3102_v52 = vpop.permute.xlu0 %3101  ;;  %v2844_v12 = vrot.slane %v2842_v63, 1  ;;  %v3037_v16 = vor.u32 %v3036_v26, %v3032_v51  ;;  %v4872_v26 = vcombine.low %v4533_v48, %v8361_v43  ;;  %v9397_v48 = vld [vmem:[#allocation49_spill] sm:$0xff] }
 0x19b   :  { %v3388_v28 = vpop.permute.xlu1 %3387  ;;  %v2838_v46 = vsel %vm657_vm0, %v2833_v35, %v2837_v38  ;;  %v8397_v38 = vld [vmem:[%s9176_s0 + $0xb0] ss:$0 sps:$4 sm:$0x11]  }
 0x19c   :  { %2345 = vrot.lane.b32.xlu0 %v2262_v14, %s5544_s15  ;;  %v3908_v1 = vsel %vm3866_vm9, %v3843_v56, %v3388_v28  ;;  %v2845_v44 = vor.u32 %v2844_v12, %v2840_v0  ;;  %v3042_v49 = vsel %vm657_vm0, %v3037_v16, %v3041_v25  ;;  %v3330_v14 = vrot.slane %v8170_v36, 1  ;;  %v8338_v28 = vld [vmem:[%s9176_s0 + $0xa0] sm:$0xf] }
 0x19d   :  { %2599 = vrot.lane.b32.xlu1 %v8132_v2, %s5545_s14  ;;  %5188 = vmatprep.mubr.msk.bf16.mxu1 %vm3931_vm10, %v3908_v1  ;;  %v3618_v2 = vsel %vm3606_vm5, %v3553_v42, %v8066_v22  ;;  %v3333_v56 = vrot.slane %v8237_v34, 1  ;;  %v3285_v1 = vrot.slane %v8262_v45, 1 }
 0x19e   :  { %v3356_v41 = vpop.permute.xlu0 %3355  ;;  %v3683_v9 = vsel %vm3671_vm6, %v3618_v2, %v8099_v33  ;;  %v2847_v33 = vshll.u32 %v8262_v45, 16  ;;  %v3331_v40 = vsel %vm1202_vm1, %v3329_v31, %v3330_v14  ;;  %v8370_v45 = vld [vmem:[%s9176_s0 + $0x17c] ss:$0 sps:$4 sm:$0x11]  }
 0x19f   :  { %v3876_v54 = vsel %vm3866_vm9, %v3811_v21, %v3356_v41  ;;  %v3390_v62 = vpop.permute.xlu1 %3389  ;;  %v3748_v19 = vsel %vm3736_vm7, %v3683_v9, %v8151_v15  ;;  %v4741_v15 = vld [vmem:[%s9176_s0 + $0x90] sm:$0xe]  ;;  %v4888_v21 = vcombine.low %v4565_v37, %v8348_v23  ;;  %v2027_v47 = vshll.u32 %v8370_v45, 16  ;;  %v8389_v9 = vld [vmem:[%s9176_s0 + $0x188] ss:$0 sps:$4 sm:$0x11]  }
 0x1a0   :  { %2567 = vrot.lane.b32.xlu0 %v8183_v30, %s5545_s14  ;;  %5156 = vmatprep.mubr.msk.bf16.mxu0 %vm3931_vm10, %v3876_v54  ;;  %v3910_v22 = vsel %vm3866_vm9, %v3845_v55, %v3390_v62  ;;  %v3813_v30 = vsel %vm3801_vm8, %v3748_v19, %v3102_v52  ;;  %v2849_v42 = vrot.slane %v2847_v33, 1  ;;  %v5029_v57 = vcombine.low %v4741_v15, %v8149_v18  ;;  %v8318_v18 = vld [vmem:[%s9176_s0 + $0x178] sm:$0xf]  ;;  %v8381_v54 = vld [vmem:[%s9176_s0 + $0xa4] ss:$0 sps:$4 sm:$0x11]  }
 0x1a1   :  { %2601 = vrot.lane.b32.xlu1 %v8202_v17, %s5545_s14  ;;  %5189 = vmatmul.mubr.msk.bf16.gmra.mrb[8].mxu1 %vm3931_vm10, %v3910_v22  ;;  %v5030_v52 = vcombine.low %v4742_v5, %v8198_v6  ;;  %v4887_v24 = vcombine.low %v4563_v61, %v8318_v18  ;;  %v4531_v6 = vld [vmem:[%s9176_s0 + $0x9c] sm:$0xf]  ;;  %v2034_v22 = vshll.u32 %v4888_v21, 16  ;;  %v1842_v19 = vshll.u32 %v4872_v26, 16  ;;  %v4691_v37 = vld [vmem:[%s9176_s0 + $0x180] sm:$0xf] }
 0x1a2   :  { %v3358_v32 = vpop.permute.xlu0 %3357  ;;  %v2850_v36 = vsel %vm657_vm0, %v2845_v44, %v2849_v42  ;;  %v4871_v50 = vcombine.low %v4531_v6, %v8338_v28  ;;  %v2029_v16 = vrot.slane %v2027_v47, 1  ;;  %v2032_v25 = vshrl.u32 %v4888_v21, 16  ;;  %v9399_v47 = vld [vmem:[#allocation28_spill] sm:$0xff] }
 0x1a3   :  { %v3878_v10 = vsel %vm3866_vm9, %v3813_v30, %v3358_v32  ;;  %v8294_v17 = vpop.permute.xlu1 %1569  ;;  %v3284_v34 = vrot.slane %v5030_v52, 1  ;;  %v2022_v51 = vshll.u32 %v4887_v24, 16  ;;  %v2020_v2 = vshrl.u32 %v4887_v24, 16 }
 0x1a4   :  { %2569 = vrot.lane.b32.xlu0 %v4966_v53, %s5545_s14  ;;  %5157 = vmatmul.mubr.msk.bf16.gmra.mrb[8].mxu0 %vm3931_vm10, %v3878_v10  ;;  %v5046_v53 = vcombine.low %v4758_v39, %v8165_v20  ;;  %v3281_v20 = vrot.slane %v5029_v57, 1  ;;  %v1830_v62 = vshll.u32 %v4871_v50, 16  ;;  %v1828_v12 = vshrl.u32 %v4871_v50, 16  ;;  %v4631_v39 = vld [vmem:[%s9176_s0 + $0x174] sm:$0xe] }
 0x1a5   :  { %3143 = vrot.lane.b32.xlu1 %v3030_v8, %s5546_s7  ;;  %v3286_v58 = vsel %vm1202_vm1, %v3284_v34, %v3285_v1  ;;  %v2024_v55 = vrot.slane %v2022_v51, 1  ;;  %v1835_v30 = vshll.u32 %v8381_v54, 16  ;;  %v2036_v27 = vrot.slane %v2034_v22, 1  ;;  %v8439_v34 = vld [vmem:[%s9176_s0 + $0x184] sm:$0xf]  ;;  %v9400_v22 = vld [vmem:[#allocation8_spill] sm:$0xff] }
 0x1a6   :  { %v8307_v59 = vpop.permute.xlu0 %1567  ;;  %v3332_v29 = vrot.slane %v5046_v53, 1  ;;  %v3283_v11 = vsel %vm1202_vm1, %v3281_v20, %v3282_v7  ;;  %v1832_v33 = vrot.slane %v1830_v62, 1  ;;  %v2039_v15 = vshll.u32 %v8389_v9, 16  ;;  %v4616_v20 = vld [vmem:[%s9176_s0 + $0xa8] sm:$0xe] }
 0x1a7   :  { %v8320_v3 = vpop.permute.xlu1 %2111  ;;  %v2025_v0 = vor.u32 %v2024_v55, %v2020_v2  ;;  %v1844_v44 = vrot.slane %v1842_v19, 1  ;;  %v1847_v42 = vshll.u32 %v8397_v38, 16  ;;  %v1837_v5 = vrot.slane %v1835_v30, 1 }
 0x1a8   :  { %3111 = vrot.lane.b32.xlu0 %v2838_v46, %s5546_s7  ;;  %v3334_v4 = vsel %vm1202_vm1, %v3332_v29, %v3333_v56  ;;  %v1840_v46 = vshrl.u32 %v4872_v26, 16  ;;  %v1833_v57 = vor.u32 %v1832_v33, %v1828_v12  ;;  %v2037_v53 = vor.u32 %v2036_v27, %v2032_v25  ;;  %v9402_v12 = vld [vmem:[#allocation9_spill] sm:$0xff]  ;;  %v4693_v27 = vld [vmem:[%s9176_s0 + $0x18c] sm:$0xf] }
 0x1a9   :  { %3145 = vrot.lane.b32.xlu1 %v3042_v49, %s5546_s7  ;;  %v4615_v49 = vld [vmem:[%s9176_s0 + $0x9c] sm:$0xe]  ;;  %v2030_v14 = vsel %vm657_vm0, %v2025_v0, %v2029_v16  ;;  %v2041_v61 = vrot.slane %v2039_v15, 1  ;;  %v4951_v52 = vcombine.low %v4631_v39, %v8318_v18  ;;  %v4936_v6 = vcombine.low %v4616_v20, %v8361_v43  ;;  %v9404_v15 = vld [vmem:[#allocation47_spill] sm:$0xff]  ;;  %v9405_v39 = vld [vmem:[#allocation24_spill] sm:$0xff] }
 0x1aa   :  { %v8328_v13 = vpop.permute.xlu0 %2079  ;;  %v4935_v29 = vcombine.low %v4615_v49, %v8338_v28  ;;  %v1838_v18 = vsel %vm657_vm0, %v1833_v57, %v1837_v5  ;;  %v2267_v62 = vrot.slane %v8397_v38, 1  ;;  %v3427_v19 = vsel %vm3411_vm2, %v9400_v22, %v9399_v47  ;;  %v9401_v0 = vld [vmem:[#allocation29_spill] sm:$0xff]  ;;  %v8472_v38 = vld [vmem:[%s9176_s0 + $0xac] sm:$0xf]  ;;  %v9407_v57 = vld [vmem:[#allocation62_spill] sm:$0xff] }
 0x1ab   :  { %v8340_v60 = vpop.permute.xlu1 %2113  ;;  %v2042_v28 = vsel %vm657_vm0, %v2037_v53, %v2041_v61  ;;  %v2311_v1 = vrot.slane %v4951_v52, 1  ;;  %v2266_v55 = vrot.slane %v4936_v6, 1  ;;  %v3425_v33 = vsel %vm3411_vm2, %v9402_v12, %v9401_v0  ;;  %v8489_v53 = vld [vmem:[%s9176_s0 + $0x190] sm:$0xf]  ;;  %v4661_v61 = vld [vmem:[%s9176_s0 + $0xb4] sm:$0xf] }
 0x1ac   :  { %3113 = vrot.lane.b32.xlu0 %v2850_v36, %s5546_s7  ;;  %v4632_v36 = vld [vmem:[%s9176_s0 + $0x180] sm:$0xe]  ;;  %v3490_v5 = vsel %vm3476_vm3, %v3425_v33, %v9407_v57  ;;  %v8497_v52 = vld [vmem:[%s9176_s0 + $0xb8] sm:$0xf] }
 0x1ad   :  { %3399 = vrot.lane.b32.xlu1 %v3331_v40, %s5547_s17  ;;  %v1849_v40 = vrot.slane %v1847_v42, 1  ;;  %v4952_v56 = vcombine.low %v4632_v36, %v8348_v23  ;;  %v9398_v23 = vld [vmem:[#allocation27_spill] sm:$0xff]  ;;  %v9408_v36 = vld [vmem:[#allocation73_spill] sm:$0xff] }
 0x1ae   :  { %v8363_v63 = vpop.permute.xlu0 %2081  ;;  %v3457_v43 = vsel %vm3411_vm2, %v9398_v23, %v9397_v48  ;;  %v8523_v48 = vcombine.low %v4661_v61, %v8497_v52 }
 0x1af   :  { %v8372_v41 = vpop.permute.xlu1 %2367  ;;  %v2314_v2 = vrot.slane %v4952_v56, 1 }
 0x1b0   :  { %3367 = vrot.lane.b32.xlu0 %v3283_v11, %s5547_s17 }
 0x1b1   :  { %3401 = vrot.lane.b32.xlu1 %v3334_v4, %s5547_s17 }
 0x1b2   :  { %v8383_v8 = vpop.permute.xlu0 %2335 }
 0x1b3   :  { %v8391_v35 = vpop.permute.xlu1 %2369 }
 0x1b4   :  { %3369 = vrot.lane.b32.xlu0 %v3286_v58, %s5547_s17  ;;  %v8452_v58 = vcombine.low %v4691_v37, %v8439_v34 }
 0x1b5   :  { %1579 = vrot.lane.b32.xlu1 %v4887_v24, %s5542_s20  ;;  %v1845_v24 = vor.u32 %v1844_v44, %v1840_v46  ;;  %v3459_v46 = vsel %vm3411_vm2, %v9405_v39, %v9404_v15  ;;  %v9406_v44 = vld [vmem:[#allocation61_spill] sm:$0xff] }
 0x1b6   :  { %v8401_v32 = vpop.permute.xlu0 %2337  ;;  %v3492_v42 = vsel %vm3476_vm3, %v3427_v19, %v9406_v44  ;;  %v3524_v20 = vsel %vm3476_vm3, %v3459_v46, %v9408_v36  ;;  %v8578_v46 = vld [vmem:[%s9176_s0 + $0xbc] ss:$0 sps:$4 sm:$0x11]  }
 0x1b7   :  { %v8404_v10 = vpop.permute.xlu1 %2591  ;;  %v1850_v4 = vsel %vm657_vm0, %v1845_v24, %v1849_v40  ;;  %v9409_v24 = vld [vmem:[#allocation86_spill] sm:$0xff]  ;;  %v3589_v23 = vsel %vm3541_vm4, %v3524_v20, %v8294_v17  ;;  %v8540_v17 = vld [vmem:[%s9176_s0 + $0xb0] ss:$0 sps:$4 sm:$0x11]   ;;  %v2864_v20 = vshrl.u32 %v8523_v48, 16 }
 0x1b8   :  { %1547 = vrot.lane.b32.xlu0 %v4871_v50, %s5542_s20  ;;  %v2312_v50 = vrot.slane %v8370_v45, 1  ;;  %v2315_v45 = vrot.slane %v8389_v9, 1  ;;  %v4659_v9 = vld [vmem:[%s9176_s0 + $0xa8] sm:$0xf] }
 0x1b9   :  { %1581 = vrot.lane.b32.xlu1 %v4888_v21, %s5542_s20  ;;  %v2263_v21 = vrot.slane %v4935_v29, 1  ;;  %v3046_v29 = vshll.u32 %v8452_v58, 16  ;;  %v4967_v37 = vcombine.low %v4659_v9, %v8472_v38  ;;  %v2859_v9 = vshll.u32 %v8540_v17, 16 }
 0x1ba   :  { %v8415_v31 = vpop.permute.xlu0 %2559  ;;  %v2313_v25 = vsel %vm1202_vm1, %v2311_v1, %v2312_v50  ;;  %v2316_v6 = vsel %vm1202_vm1, %v2314_v2, %v2315_v45  ;;  %v2268_v50 = vsel %vm1202_vm1, %v2266_v55, %v2267_v62  ;;  %v9410_v62 = vld [vmem:[#allocation85_spill] sm:$0xff] }
 0x1bb   :  { %v8425_v7 = vpop.permute.xlu1 %2593  ;;  %v3048_v55 = vrot.slane %v3046_v29, 1  ;;  %v3557_v47 = vsel %vm3541_vm4, %v3492_v42, %v9410_v62  ;;  %v2861_v61 = vrot.slane %v2859_v9, 1  ;;  %v8671_v9 = vld [vmem:[%s9176_s0 + $0xc4] sm:$0xf] }
 0x1bc   :  { %1549 = vrot.lane.b32.xlu0 %v4872_v26, %s5542_s20  ;;  %v2264_v26 = vrot.slane %v8381_v54, 1  ;;  %v9403_v54 = vld [vmem:[#allocation74_spill] sm:$0xff]  ;;  %v3622_v12 = vsel %vm3606_vm5, %v3557_v47, %v8363_v63 }
 0x1bd   :  { %2123 = vrot.lane.b32.xlu1 %v2030_v14, %s5543_s5  ;;  %v3522_v30 = vsel %vm3476_vm3, %v3457_v43, %v9403_v54 }
 0x1be   :  { %v8441_v11 = vpop.permute.xlu0 %2561  ;;  %v3587_v49 = vsel %vm3541_vm4, %v3522_v30, %v8307_v59  ;;  %v3555_v59 = vsel %vm3541_vm4, %v3490_v5, %v9409_v24  ;;  %v2265_v56 = vsel %vm1202_vm1, %v2263_v21, %v2264_v26  ;;  %v3044_v26 = vshrl.u32 %v8452_v58, 16 }
 0x1bf   :  { %v3136_v51 = vpop.permute.xlu1 %3135  ;;  %v3652_v40 = vsel %vm3606_vm5, %v3587_v49, %v8320_v3  ;;  %v3620_v43 = vsel %vm3606_vm5, %v3555_v59, %v8328_v13  ;;  %v2871_v59 = vshll.u32 %v8578_v46, 16 }
 0x1c0   :  { %2091 = vrot.lane.b32.xlu0 %v1838_v18, %s5543_s5  ;;  %v3717_v18 = vsel %vm3671_vm6, %v3652_v40, %v8372_v41  ;;  %v4984_v41 = vcombine.low %v4693_v27, %v8489_v53  ;;  %v3685_v2 = vsel %vm3671_vm6, %v3620_v43, %v8383_v8  ;;  %v2854_v8 = vshll.u32 %v4967_v37, 16  ;;  %v4744_v43 = vld [vmem:[%s9176_s0 + $0xb4] sm:$0xe] }
 0x1c1   :  { %2125 = vrot.lane.b32.xlu1 %v2042_v28, %s5543_s5  ;;  %v8516_v28 = vld [vmem:[%s9176_s0 + $0x188] ss:$0 sps:$4 sm:$0x11]   ;;  %v3782_v3 = vsel %vm3736_vm7, %v3717_v18, %v8404_v10  ;;  %v3654_v10 = vsel %vm3606_vm5, %v3589_v23, %v8340_v60  ;;  %v2866_v27 = vshll.u32 %v8523_v48, 16  ;;  %v3049_v15 = vor.u32 %v3048_v55, %v3044_v26 }
 0x1c2   :  { %v3104_v16 = vpop.permute.xlu0 %3103  ;;  %v3719_v13 = vsel %vm3671_vm6, %v3654_v10, %v8391_v35  ;;  %v3051_v60 = vshll.u32 %v8516_v28, 16  ;;  %v8557_v35 = vld [vmem:[%s9176_s0 + $0x194] ss:$0 sps:$4 sm:$0x11]   ;;  %v2856_v39 = vrot.slane %v2854_v8, 1  ;;  %v3056_v57 = vshrl.u32 %v4984_v41, 16 }
 0x1c3   :  { %v3138_v14 = vpop.permute.xlu1 %3137  ;;  %v3784_v22 = vsel %vm3736_vm7, %v3719_v13, %v8425_v7  ;;  %v3687_v7 = vsel %vm3671_vm6, %v3622_v12, %v8401_v32  ;;  %v2868_v24 = vrot.slane %v2866_v27, 1  ;;  %v2873_v23 = vrot.slane %v2871_v59, 1  ;;  %v8676_v27 = vld [vmem:[%s9176_s0 + $0x194] ss:$0 sps:$4 sm:$0x11]  }
 0x1c4   :  { %2093 = vrot.lane.b32.xlu0 %v1850_v4, %s5543_s5  ;;  %v3847_v4 = vsel %vm3801_vm8, %v3782_v3, %v3136_v51  ;;  %v3750_v51 = vsel %vm3736_vm7, %v3685_v2, %v8415_v31  ;;  %v3058_v31 = vshll.u32 %v4984_v41, 16  ;;  %v3849_v33 = vsel %vm3801_vm8, %v3784_v22, %v3138_v14  ;;  %v4759_v14 = vld [vmem:[%s9176_s0 + $0x180] sm:$0xe]  ;;  %v4567_v2 = vld [vmem:[%s9176_s0 + $0x18c] sm:$0xf] }
 0x1c5   :  { %2379 = vrot.lane.b32.xlu1 %v2313_v25, %s5544_s15  ;;  %v3815_v19 = vsel %vm3801_vm8, %v3750_v51, %v3104_v16  ;;  %v2852_v25 = vshrl.u32 %v4967_v37, 16  ;;  %v3752_v63 = vsel %vm3736_vm7, %v3687_v7, %v8441_v11  ;;  %v3053_v32 = vrot.slane %v3051_v60, 1  ;;  %v8644_v22 = vld [vmem:[%s9176_s0 + $0xb8] sm:$0xf] }
 0x1c6   :  { %v3106_v1 = vpop.permute.xlu0 %3105  ;;  %v3060_v5 = vrot.slane %v3058_v31, 1  ;;  %v3063_v11 = vshll.u32 %v8557_v35, 16  ;;  %v3336_v10 = vrot.slane %v8516_v28, 1  ;;  %v5032_v55 = vcombine.low %v4744_v43, %v8497_v52  ;;  %v4535_v52 = vld [vmem:[%s9176_s0 + $0xb4] sm:$0xf] }
 0x1c7   :  { %v3392_v21 = vpop.permute.xlu1 %3391  ;;  %v3817_v44 = vsel %vm3801_vm8, %v3752_v63, %v3106_v1  ;;  %v2857_v36 = vor.u32 %v2856_v39, %v2852_v25  ;;  %v3054_v29 = vsel %vm657_vm0, %v3049_v15, %v3053_v32  ;;  %v4760_v1 = vld [vmem:[%s9176_s0 + $0x18c] sm:$0xe]  ;;  %v3288_v13 = vrot.slane %v8540_v17, 1  ;;  %v4569_v17 = vld [vmem:[%s9176_s0 + $0x198] sm:$0xf] }
 0x1c8   :  { %2347 = vrot.lane.b32.xlu0 %v2265_v56, %s5544_s15  ;;  %v3912_v45 = vsel %vm3866_vm9, %v3847_v4, %v3392_v21  ;;  %v3061_v18 = vor.u32 %v3060_v5, %v3056_v57  ;;  %v3065_v56 = vrot.slane %v3063_v11, 1  ;;  %v3339_v47 = vrot.slane %v8557_v35, 1  ;;  %v8685_v32 = vld [vmem:[%s9176_s0 + $0xbc] ss:$0 sps:$4 sm:$0x11]  }
 0x1c9   :  { %2381 = vrot.lane.b32.xlu1 %v2316_v6, %s5544_s15  ;;  %5192 = vmatprep.mubr.msk.bf16.mxu1 %vm3931_vm10, %v3912_v45  ;;  %v5047_v6 = vcombine.low %v4759_v14, %v8439_v34  ;;  %v3290_v35 = vrot.slane %v5032_v55, 1  ;;  %v3291_v31 = vrot.slane %v8578_v46, 1  ;;  %v2051_v5 = vshll.u32 %v8676_v27, 16  ;;  %v8695_v11 = vld [vmem:[%s9176_s0 + $0x1a0] ss:$0 sps:$4 sm:$0x11]  }
 0x1ca   :  { %v3360_v0 = vpop.permute.xlu0 %3359  ;;  %v3066_v21 = vsel %vm657_vm0, %v3061_v18, %v3065_v56  ;;  %v8705_v59 = vld [vmem:[%s9176_s0 + $0xc8] ss:$0 sps:$4 sm:$0x11]  }
 0x1cb   :  { %v3880_v54 = vsel %vm3866_vm9, %v3815_v19, %v3360_v0  ;;  %v3394_v30 = vpop.permute.xlu1 %3393  ;;  %v3335_v26 = vrot.slane %v5047_v6, 1  ;;  %v8654_v0 = vld [vmem:[%s9176_s0 + $0x19c] sm:$0xf]  ;;  %v3292_v15 = vsel %vm1202_vm1, %v3290_v35, %v3291_v31  ;;  %v2053_v56 = vrot.slane %v2051_v5, 1  ;;  %v9415_v35 = vld [vmem:[#allocation52_spill] sm:$0xff]  ;;  %v9416_v31 = vld [vmem:[#allocation34_spill] sm:$0xff] }
 0x1cc   :  { %2349 = vrot.lane.b32.xlu0 %v2268_v50, %s5544_s15  ;;  %5160 = vmatprep.mubr.msk.bf16.mxu0 %vm3931_vm10, %v3880_v54  ;;  %v3914_v16 = vsel %vm3866_vm9, %v3849_v33, %v3394_v30  ;;  %v2862_v50 = vsel %vm657_vm0, %v2857_v36, %v2861_v61  ;;  %v4873_v33 = vcombine.low %v4535_v52, %v8644_v22  ;;  %v4537_v54 = vld [vmem:[%s9176_s0 + $0xc0] sm:$0xf]  ;;  %v1859_v61 = vshll.u32 %v8685_v32, 16  ;;  %v9414_v52 = vld [vmem:[#allocation11_spill] sm:$0xff] }
 0x1cd   :  { %2603 = vrot.lane.b32.xlu1 %v8452_v58, %s5545_s14  ;;  %5193 = vmatmul.mubr.msk.bf16.gmra.mrb[12].mxu1 %vm3931_vm10, %v3914_v16  ;;  %v3337_v8 = vsel %vm1202_vm1, %v3335_v26, %v3336_v10  ;;  %v4890_v16 = vcombine.low %v4569_v17, %v8654_v0  ;;  %v4874_v39 = vcombine.low %v4537_v54, %v8671_v9  ;;  %v1871_v26 = vshll.u32 %v8705_v59, 16  ;;  %v4617_v10 = vld [vmem:[%s9176_s0 + $0xb4] sm:$0xe]  ;;  %v9417_v54 = vld [vmem:[#allocation50_spill] sm:$0xff] }
 0x1ce   :  { %v3362_v42 = vpop.permute.xlu0 %3361 }
 0x1cf   :  { %v3882_v49 = vsel %vm3866_vm9, %v3817_v44, %v3362_v42  ;;  %v8583_v58 = vpop.permute.xlu1 %1573  ;;  %v1854_v42 = vshll.u32 %v4873_v33, 16  ;;  %v2056_v6 = vshrl.u32 %v4890_v16, 16  ;;  %v1864_v43 = vshrl.u32 %v4874_v39, 16 }
 0x1d0   :  { %2571 = vrot.lane.b32.xlu0 %v4967_v37, %s5545_s14  ;;  %5161 = vmatmul.mubr.msk.bf16.gmra.mrb[12].mxu0 %vm3931_vm10, %v3882_v49  ;;  %v4743_v37 = vld [vmem:[%s9176_s0 + $0xa8] sm:$0xe]  ;;  %v2058_v49 = vshll.u32 %v4890_v16, 16 }
 0x1d1   :  { %2605 = vrot.lane.b32.xlu1 %v4984_v41, %s5545_s14  ;;  %v2869_v41 = vor.u32 %v2868_v24, %v2864_v20  ;;  %v5031_v34 = vcombine.low %v4743_v37, %v8472_v38  ;;  %v8624_v38 = vld [vmem:[%s9176_s0 + $0x190] sm:$0xf]  ;;  %v1852_v20 = vshrl.u32 %v4873_v33, 16  ;;  %v1856_v24 = vrot.slane %v1854_v42, 1 }
 0x1d2   :  { %v8593_v40 = vpop.permute.xlu0 %1571  ;;  %v4889_v51 = vcombine.low %v4567_v2, %v8624_v38  ;;  %v2060_v37 = vrot.slane %v2058_v49, 1  ;;  %v4937_v42 = vcombine.low %v4617_v10, %v8644_v22  ;;  %v4695_v22 = vld [vmem:[%s9176_s0 + $0x198] sm:$0xf] }
 0x1d3   :  { %v8600_v3 = vpop.permute.xlu1 %2115  ;;  %v2874_v28 = vsel %vm657_vm0, %v2869_v41, %v2873_v23  ;;  %v4633_v41 = vld [vmem:[%s9176_s0 + $0x18c] sm:$0xe]  ;;  %v1861_v23 = vrot.slane %v1859_v61, 1  ;;  %v1873_v61 = vrot.slane %v1871_v26, 1 }
 0x1d4   :  { %2573 = vrot.lane.b32.xlu0 %v8523_v48, %s5545_s14  ;;  %v5048_v48 = vcombine.low %v4760_v1, %v8489_v53  ;;  %v3287_v53 = vrot.slane %v5031_v34, 1  ;;  %v2046_v30 = vshll.u32 %v4889_v51, 16  ;;  %v2044_v46 = vshrl.u32 %v4889_v51, 16 }
 0x1d5   :  { %3147 = vrot.lane.b32.xlu1 %v3054_v29, %s5546_s7  ;;  %v1866_v29 = vshll.u32 %v4874_v39, 16  ;;  %v2063_v1 = vshll.u32 %v8695_v11, 16  ;;  %v1857_v34 = vor.u32 %v1856_v24, %v1852_v20  ;;  %v2061_v55 = vor.u32 %v2060_v37, %v2056_v6  ;;  %v9421_v37 = vld [vmem:[#allocation64_spill] sm:$0xff] }
 0x1d6   :  { %v8613_v4 = vpop.permute.xlu0 %2083  ;;  %v3338_v62 = vrot.slane %v5048_v48, 1  ;;  %v3289_v12 = vsel %vm1202_vm1, %v3287_v53, %v3288_v13  ;;  %v2048_v44 = vrot.slane %v2046_v30, 1  ;;  %v4953_v53 = vcombine.low %v4633_v41, %v8624_v38  ;;  %v4634_v13 = vld [vmem:[%s9176_s0 + $0x198] sm:$0xe]  ;;  %v4618_v38 = vld [vmem:[%s9176_s0 + $0xc0] sm:$0xe] }
 0x1d7   :  { %v8626_v45 = vpop.permute.xlu1 %2117  ;;  %v9418_v30 = vld [vmem:[#allocation30_spill] sm:$0xff]  ;;  %v1862_v5 = vsel %vm657_vm0, %v1857_v34, %v1861_v23  ;;  %v4938_v6 = vcombine.low %v4618_v38, %v8671_v9  ;;  %v9423_v23 = vld [vmem:[#allocation87_spill] sm:$0xff]  ;;  %v2269_v10 = vrot.slane %v4937_v42, 1 }
 0x1d8   :  { %3115 = vrot.lane.b32.xlu0 %v2862_v50, %s5546_s7  ;;  %v3340_v7 = vsel %vm1202_vm1, %v3338_v62, %v3339_v47  ;;  %v2049_v36 = vor.u32 %v2048_v44, %v2044_v46  ;;  %v9413_v47 = vld [vmem:[#allocation32_spill] sm:$0xff] }
 0x1d9   :  { %3149 = vrot.lane.b32.xlu1 %v3066_v21, %s5546_s7  ;;  %v1868_v21 = vrot.slane %v1866_v29, 1  ;;  %v3429_v17 = vsel %vm3411_vm2, %v9414_v52, %v9413_v47  ;;  %v9420_v46 = vld [vmem:[#allocation76_spill] sm:$0xff]  ;;  %v2317_v29 = vrot.slane %v4953_v53, 1 }
 0x1da   :  { %v8634_v60 = vpop.permute.xlu0 %2085  ;;  %v2054_v2 = vsel %vm657_vm0, %v2049_v36, %v2053_v56  ;;  %v4954_v36 = vcombine.low %v4634_v13, %v8654_v0  ;;  %v2318_v56 = vrot.slane %v8676_v27, 1  ;;  %v3494_v0 = vsel %vm3476_vm3, %v3429_v17, %v9421_v37 }
 0x1db   :  { %v8646_v19 = vpop.permute.xlu1 %2371  ;;  %v1869_v49 = vor.u32 %v1868_v21, %v1864_v43  ;;  %v9424_v43 = vld [vmem:[#allocation88_spill] sm:$0xff] }
 0x1dc   :  { %3117 = vrot.lane.b32.xlu0 %v2874_v28, %s5546_s7  ;;  %v2065_v28 = vrot.slane %v2063_v1, 1  ;;  %v9422_v1 = vld [vmem:[#allocation75_spill] sm:$0xff]  ;;  %v3559_v21 = vsel %vm3541_vm4, %v3494_v0, %v9424_v43  ;;  %v5527_v43 = vld [vmem:[%s9176_s0 + $0xd4] ss:$0 sps:$4 sm:$0x11]  }
 0x1dd   :  { %3403 = vrot.lane.b32.xlu1 %v3337_v8, %s5547_s17  ;;  %v9412_v8 = vld [vmem:[#allocation10_spill] sm:$0xff]  ;;  %v8869_v0 = vld [vmem:[%s9176_s0 + $0x1ac] ss:$0 sps:$4 sm:$0x11]  }
 0x1de   :  { %v8664_v25 = vpop.permute.xlu0 %2339  ;;  %v2066_v24 = vsel %vm657_vm0, %v2061_v55, %v2065_v28  ;;  %v1874_v28 = vsel %vm657_vm0, %v1869_v49, %v1873_v61 }
 0x1df   :  { %v8678_v63 = vpop.permute.xlu1 %2373 }
 0x1e0   :  { %3371 = vrot.lane.b32.xlu0 %v3289_v12, %s5547_s17  ;;  %v3461_v12 = vsel %vm3411_vm2, %v9416_v31, %v9415_v35  ;;  %v4697_v35 = vld [vmem:[%s9176_s0 + $0x1a4] sm:$0xf]  ;;  %v8808_v31 = vld [vmem:[%s9176_s0 + $0x1a8] sm:$0xf] }
 0x1e1   :  { %3405 = vrot.lane.b32.xlu1 %v3340_v7, %s5547_s17  ;;  %v3463_v7 = vsel %vm3411_vm2, %v9418_v30, %v9417_v54  ;;  %v3526_v44 = vsel %vm3476_vm3, %v3461_v12, %v9420_v46  ;;  %v8830_v54 = vld [vmem:[%s9176_s0 + $0xd0] sm:$0xf]  ;;  %v8841_v46 = vld [vmem:[%s9176_s0 + $0x1a0] ss:$0 sps:$4 sm:$0x11]  }
 0x1e2   :  { %v8689_v57 = vpop.permute.xlu0 %2341  ;;  %v3528_v41 = vsel %vm3476_vm3, %v3463_v7, %v9422_v1  ;;  %v3591_v9 = vsel %vm3541_vm4, %v3526_v44, %v8593_v40  ;;  %v2320_v40 = vrot.slane %v4954_v36, 1  ;;  %v3075_v37 = vshll.u32 %v8841_v46, 16 }
 0x1e3   :  { %v8697_v14 = vpop.permute.xlu1 %2595  ;;  %v3656_v26 = vsel %vm3606_vm5, %v3591_v9, %v8600_v3  ;;  %v3593_v47 = vsel %vm3541_vm4, %v3528_v41, %v8583_v58 }
 0x1e4   :  { %3373 = vrot.lane.b32.xlu0 %v3292_v15, %s5547_s17  ;;  %v3721_v55 = vsel %vm3671_vm6, %v3656_v26, %v8646_v19  ;;  %v4663_v19 = vld [vmem:[%s9176_s0 + $0xc0] sm:$0xf]  ;;  %v3658_v58 = vsel %vm3606_vm5, %v3593_v47, %v8626_v45 }
 0x1e5   :  { %1583 = vrot.lane.b32.xlu1 %v4889_v51, %s5542_s20  ;;  %v9411_v51 = vld [vmem:[#allocation31_spill] sm:$0xff]  ;;  %v3786_v13 = vsel %vm3736_vm7, %v3721_v55, %v8697_v14  ;;  %v3624_v14 = vsel %vm3606_vm5, %v3559_v21, %v8613_v4 }
 0x1e6   :  { %v8707_v18 = vpop.permute.xlu0 %2563  ;;  %v3431_v62 = vsel %vm3411_vm2, %v9412_v8, %v9411_v51  ;;  %v2319_v51 = vsel %vm1202_vm1, %v2317_v29, %v2318_v56  ;;  %v2321_v8 = vrot.slane %v8695_v11, 1  ;;  %v2273_v11 = vrot.slane %v8705_v59, 1 }
 0x1e7   :  { %v8710_v50 = vpop.permute.xlu1 %2597  ;;  %v3689_v4 = vsel %vm3671_vm6, %v3624_v14, %v8664_v25  ;;  %v4665_v25 = vld [vmem:[%s9176_s0 + $0xcc] sm:$0xf] }
 0x1e8   :  { %1551 = vrot.lane.b32.xlu0 %v4873_v33, %s5542_s20  ;;  %v3754_v38 = vsel %vm3736_vm7, %v3689_v4, %v8707_v18 }
 0x1e9   :  { %1585 = vrot.lane.b32.xlu1 %v4890_v16, %s5542_s20  ;;  %v9419_v16 = vld [vmem:[#allocation63_spill] sm:$0xff] }
 0x1ea   :  { %v8721_v48 = vpop.permute.xlu0 %2565  ;;  %v3496_v15 = vsel %vm3476_vm3, %v3431_v62, %v9419_v16  ;;  %v8794_v62 = vld [vmem:[%s9176_s0 + $0xc4] sm:$0xf]  ;;  %v2322_v16 = vsel %vm1202_vm1, %v2320_v40, %v2321_v8 }
 0x1eb   :  { %v3140_v33 = vpop.permute.xlu1 %3139  ;;  %v3561_v27 = vsel %vm3541_vm4, %v3496_v15, %v9423_v23  ;;  %v4969_v45 = vcombine.low %v4663_v19, %v8794_v62  ;;  %v4986_v15 = vcombine.low %v4697_v35, %v8808_v31 }
 0x1ec   :  { %1553 = vrot.lane.b32.xlu0 %v4874_v39, %s5542_s20  ;;  %v8761_v39 = vld [vmem:[%s9176_s0 + $0x19c] sm:$0xf]  ;;  %v3851_v52 = vsel %vm3801_vm8, %v3786_v13, %v3140_v33  ;;  %v3723_v33 = vsel %vm3671_vm6, %v3658_v58, %v8678_v63  ;;  %v3626_v44 = vsel %vm3606_vm5, %v3561_v27, %v8634_v60  ;;  %v8857_v60 = vld [vmem:[%s9176_s0 + $0xc8] ss:$0 sps:$4 sm:$0x11]  }
 0x1ed   :  { %2127 = vrot.lane.b32.xlu1 %v2054_v2, %s5543_s5  ;;  %v2270_v2 = vrot.slane %v8685_v32, 1  ;;  %v8782_v53 = vcombine.low %v4695_v22, %v8761_v39  ;;  %v2272_v32 = vrot.slane %v4938_v6, 1  ;;  %v3788_v18 = vsel %vm3736_vm7, %v3723_v33, %v8710_v50  ;;  %v4762_v58 = vld [vmem:[%s9176_s0 + $0x1a4] sm:$0xe] }
 0x1ee   :  { %v3108_v20 = vpop.permute.xlu0 %3107  ;;  %v3691_v61 = vsel %vm3671_vm6, %v3626_v44, %v8689_v57  ;;  %v2878_v56 = vshll.u32 %v4969_v45, 16  ;;  %v3082_v1 = vshll.u32 %v4986_v15, 16  ;;  %v2883_v23 = vshll.u32 %v8857_v60, 16 }
 0x1ef   :  { %v3142_v34 = vpop.permute.xlu1 %3141  ;;  %v2271_v59 = vsel %vm1202_vm1, %v2269_v10, %v2270_v2  ;;  %v3070_v63 = vshll.u32 %v8782_v53, 16  ;;  %v3819_v30 = vsel %vm3801_vm8, %v3754_v38, %v3108_v20  ;;  %v2274_v49 = vsel %vm1202_vm1, %v2272_v32, %v2273_v11  ;;  %v4745_v11 = vld [vmem:[%s9176_s0 + $0xc0] sm:$0xe] }
 0x1f0   :  { %2095 = vrot.lane.b32.xlu0 %v1862_v5, %s5543_s5  ;;  %v3853_v42 = vsel %vm3801_vm8, %v3788_v18, %v3142_v34  ;;  %v4970_v20 = vcombine.low %v4665_v25, %v8830_v54  ;;  %v3068_v57 = vshrl.u32 %v8782_v53, 16  ;;  %v2876_v9 = vshrl.u32 %v4969_v45, 16  ;;  %v4746_v18 = vld [vmem:[%s9176_s0 + $0xcc] sm:$0xe] }
 0x1f1   :  { %2129 = vrot.lane.b32.xlu1 %v2066_v24, %s5543_s5  ;;  %v3756_v24 = vsel %vm3736_vm7, %v3691_v61, %v8721_v48  ;;  %v3072_v29 = vrot.slane %v3070_v63, 1  ;;  %v2880_v34 = vrot.slane %v2878_v56, 1  ;;  %v3077_v10 = vrot.slane %v3075_v37, 1 }
 0x1f2   :  { %v3110_v3 = vpop.permute.xlu0 %3109  ;;  %v2890_v21 = vshll.u32 %v4970_v20, 16  ;;  %v3080_v2 = vshrl.u32 %v4986_v15, 16  ;;  %v3084_v55 = vrot.slane %v3082_v1, 1  ;;  %v2885_v13 = vrot.slane %v2883_v23, 1  ;;  %v9428_v23 = vld [vmem:[#allocation35_spill] sm:$0xff] }
 0x1f3   :  { %v3396_v17 = vpop.permute.xlu1 %3395  ;;  %v3821_v6 = vsel %vm3801_vm8, %v3756_v24, %v3110_v3  ;;  %v3073_v27 = vor.u32 %v3072_v29, %v3068_v57  ;;  %v2881_v3 = vor.u32 %v2880_v34, %v2876_v9  ;;  %v2895_v32 = vshll.u32 %v5527_v43, 16  ;;  %v9430_v34 = vld [vmem:[#allocation53_spill] sm:$0xff] }
 0x1f4   :  { %2097 = vrot.lane.b32.xlu0 %v1874_v28, %s5543_s5  ;;  %v3916_v12 = vsel %vm3866_vm9, %v3851_v52, %v3396_v17  ;;  %v3087_v28 = vshll.u32 %v8869_v0, 16  ;;  %v2892_v8 = vrot.slane %v2890_v21, 1  ;;  %v3085_v14 = vor.u32 %v3084_v55, %v3080_v2  ;;  %v9432_v55 = vld [vmem:[#allocation33_spill] sm:$0xff] }
 0x1f5   :  { %2383 = vrot.lane.b32.xlu1 %v2319_v51, %s5544_s15  ;;  %5196 = vmatprep.mubr.msk.bf16.mxu1 %vm3931_vm10, %v3916_v12  ;;  %v2888_v51 = vshrl.u32 %v4970_v20, 16  ;;  %v3078_v47 = vsel %vm657_vm0, %v3073_v27, %v3077_v10  ;;  %v2886_v4 = vsel %vm657_vm0, %v2881_v3, %v2885_v13  ;;  %v3342_v25 = vrot.slane %v8841_v46, 1  ;;  %v9429_v27 = vld [vmem:[#allocation13_spill] sm:$0xff]  ;;  %v9434_v13 = vld [vmem:[#allocation66_spill] sm:$0xff] }
 0x1f6   :  { %v3364_v7 = vpop.permute.xlu0 %3363  ;;  %v3089_v52 = vrot.slane %v3087_v28, 1  ;;  %v5050_v63 = vcombine.low %v4762_v58, %v8808_v31  ;;  %v3297_v61 = vrot.slane %v5527_v43, 1  ;;  %v3433_v9 = vsel %vm3411_vm2, %v9429_v27, %v9428_v23  ;;  %v9431_v43 = vld [vmem:[#allocation36_spill] sm:$0xff] }
 0x1f7   :  { %v3884_v5 = vsel %vm3866_vm9, %v3819_v30, %v3364_v7  ;;  %v3398_v50 = vpop.permute.xlu1 %3397  ;;  %v2893_v12 = vor.u32 %v2892_v8, %v2888_v51  ;;  %v3467_v21 = vsel %vm3411_vm2, %v9431_v43, %v9430_v34  ;;  %v9433_v28 = vld [vmem:[#allocation12_spill] sm:$0xff]  ;;  %v3498_v3 = vsel %vm3476_vm3, %v3433_v9, %v9434_v13  ;;  %v9435_v51 = vld [vmem:[#allocation77_spill] sm:$0xff] }
 0x1f8   :  { %2351 = vrot.lane.b32.xlu0 %v2271_v59, %s5544_s15  ;;  %5164 = vmatprep.mubr.msk.bf16.mxu0 %vm3931_vm10, %v3884_v5  ;;  %v3918_v36 = vsel %vm3866_vm9, %v3853_v42, %v3398_v50  ;;  %v2897_v59 = vrot.slane %v2895_v32, 1  ;;  %v3090_v38 = vsel %vm657_vm0, %v3085_v14, %v3089_v52  ;;  %v3344_v31 = vrot.slane %v5050_v63, 1  ;;  %v9436_v14 = vld [vmem:[#allocation65_spill] sm:$0xff] }
 0x1f9   :  { %2385 = vrot.lane.b32.xlu1 %v2322_v16, %s5544_s15  ;;  %5197 = vmatmul.mubr.msk.bf16.gmra.mrb[16].mxu1 %vm3931_vm10, %v3918_v36  ;;  %v3294_v16 = vrot.slane %v8857_v60, 1  ;;  %v3345_v42 = vrot.slane %v8869_v0, 1  ;;  %v9427_v0 = vld [vmem:[#allocation78_spill] sm:$0xff]  ;;  %v3532_v8 = vsel %vm3476_vm3, %v3467_v21, %v9435_v51 }
 0x1fa   :  { %v3366_v22 = vpop.permute.xlu0 %3365  ;;  %v2898_v7 = vsel %vm657_vm0, %v2893_v12, %v2897_v59  ;;  %v9438_v59 = vld [vmem:[#allocation89_spill] sm:$0xff] }
 0x1fb   :  { %v3886_v48 = vsel %vm3866_vm9, %v3821_v6, %v3366_v22  ;;  %v8872_v41 = vpop.permute.xlu1 %1577  ;;  %v9425_v6 = vld [vmem:[#allocation54_spill] sm:$0xff]  ;;  %v9426_v22 = vld [vmem:[#allocation39_spill] sm:$0xff] }
 0x1fc   :  { %2353 = vrot.lane.b32.xlu0 %v2274_v49, %s5544_s15  ;;  %5165 = vmatmul.mubr.msk.bf16.gmra.mrb[16].mxu0 %vm3931_vm10, %v3886_v48  ;;  %v3465_v37 = vsel %vm3411_vm2, %v9426_v22, %v9425_v6  ;;  %v3597_v58 = vsel %vm3541_vm4, %v3532_v8, %v8872_v41 }
 0x1fd   :  { %2607 = vrot.lane.b32.xlu1 %v8782_v53, %s5545_s14  ;;  %v4761_v53 = vld [vmem:[%s9176_s0 + $0x198] sm:$0xe]  ;;  %v3530_v1 = vsel %vm3476_vm3, %v3465_v37, %v9427_v0 }
 0x1fe   :  { %v8882_v26 = vpop.permute.xlu0 %1575  ;;  %v5049_v17 = vcombine.low %v4761_v53, %v8761_v39  ;;  %v5033_v39 = vcombine.low %v4745_v11, %v8794_v62  ;;  %v3435_v53 = vsel %vm3411_vm2, %v9433_v28, %v9432_v55 }
 0x1ff   :  { %v8885_v40 = vpop.permute.xlu1 %2119  ;;  %v3595_v10 = vsel %vm3541_vm4, %v3530_v1, %v8882_v26  ;;  %v3500_v52 = vsel %vm3476_vm3, %v3435_v53, %v9436_v14 }
 0x200   :  { %2575 = vrot.lane.b32.xlu0 %v4969_v45, %s5545_s14  ;;  %v3341_v45 = vrot.slane %v5049_v17, 1  ;;  %v3293_v62 = vrot.slane %v5033_v39, 1  ;;  %v3660_v32 = vsel %vm3606_vm5, %v3595_v10, %v8885_v40  ;;  %v9437_v17 = vld [vmem:[#allocation90_spill] sm:$0xff]  ;;  %v3565_v40 = vsel %vm3541_vm4, %v3500_v52, %v9438_v59 }
 0x201   :  { %2609 = vrot.lane.b32.xlu1 %v4986_v15, %s5545_s14  ;;  %v5034_v15 = vcombine.low %v4746_v18, %v8830_v54  ;;  %v3563_v11 = vsel %vm3541_vm4, %v3498_v3, %v9437_v17 }
 0x202   :  { %v8892_v19 = vpop.permute.xlu0 %2087  ;;  %v3343_v46 = vsel %vm1202_vm1, %v3341_v45, %v3342_v25  ;;  %v3295_v50 = vsel %vm1202_vm1, %v3293_v62, %v3294_v16 }
 0x203   :  { %v8899_v35 = vpop.permute.xlu1 %2121  ;;  %v3296_v49 = vrot.slane %v5034_v15, 1  ;;  %v3628_v39 = vsel %vm3606_vm5, %v3563_v11, %v8892_v19 }
 0x204   :  { %2577 = vrot.lane.b32.xlu0 %v4970_v20, %s5545_s14  ;;  %v3346_v20 = vsel %vm1202_vm1, %v3344_v31, %v3345_v42 }
 0x205   :  { %3151 = vrot.lane.b32.xlu1 %v3078_v47, %s5546_s7  ;;  %v3298_v54 = vsel %vm1202_vm1, %v3296_v49, %v3297_v61  ;;  %v8954_v47 = vld [vmem:[%s9178_s2] ss:$0 sm:$0xff] }
 0x206   :  { %v2090_v33 = vpop.permute.xlu0 %2089 }
 0x207   :  { %v2376_v30 = vpop.permute.xlu1 %2375  ;;  %v3630_v18 = vsel %vm3606_vm5, %v3565_v40, %v2090_v33 }
 0x208   :  { %3119 = vrot.lane.b32.xlu0 %v2886_v4, %s5546_s7  ;;  %v3725_v4 = vsel %vm3671_vm6, %v3660_v32, %v2376_v30 }
 0x209   :  { %3153 = vrot.lane.b32.xlu1 %v3090_v38, %s5546_s7  ;;  %v3662_v38 = vsel %vm3606_vm5, %v3597_v58, %v8899_v35 }
 0x20a   :  { %v2344_v44 = vpop.permute.xlu0 %2343 }
 0x20b   :  { %v2378_v5 = vpop.permute.xlu1 %2377  ;;  %v3693_v41 = vsel %vm3671_vm6, %v3628_v39, %v2344_v44 }
 0x20c   :  { %3121 = vrot.lane.b32.xlu0 %v2898_v7, %s5546_s7  ;;  %v3727_v15 = vsel %vm3671_vm6, %v3662_v38, %v2378_v5 }
 0x20d   :  { %3407 = vrot.lane.b32.xlu1 %v3343_v46, %s5547_s17 }
 0x20e   :  { %v2346_v36 = vpop.permute.xlu0 %2345 }
 0x20f   :  { %v2600_v60 = vpop.permute.xlu1 %2599  ;;  %v3695_v19 = vsel %vm3671_vm6, %v3630_v18, %v2346_v36  ;;  %v9439_v18 = vld [vmem:[#allocation37_spill] sm:$0xff] }
 0x210   :  { %3375 = vrot.lane.b32.xlu0 %v3295_v50, %s5547_s17  ;;  %v3790_v45 = vsel %vm3736_vm7, %v3725_v4, %v2600_v60 }
 0x211   :  { %3409 = vrot.lane.b32.xlu1 %v3346_v20, %s5547_s17 }
 0x212   :  { %v2568_v24 = vpop.permute.xlu0 %2567 }
 0x213   :  { %v2602_v57 = vpop.permute.xlu1 %2601  ;;  %v3758_v33 = vsel %vm3736_vm7, %v3693_v41, %v2568_v24  ;;  %v9440_v41 = vld [vmem:[#allocation14_spill] sm:$0xff] }
 0x214   :  { %3377 = vrot.lane.b32.xlu0 %v3298_v54, %s5547_s17  ;;  %v3792_v44 = vsel %vm3736_vm7, %v3727_v15, %v2602_v57  ;;  %v9443_v15 = vld [vmem:[#allocation56_spill] sm:$0xff] }
 0x216   :  { %v2570_v29 = vpop.permute.xlu0 %2569 }
 0x217   :  { %v3144_v56 = vpop.permute.xlu1 %3143  ;;  %v3760_v0 = vsel %vm3736_vm7, %v3695_v19, %v2570_v29  ;;  %v9444_v19 = vld [vmem:[#allocation46_spill] sm:$0xff] }
 0x218   :  { %v3855_v30 = vsel %vm3801_vm8, %v3790_v45, %v3144_v56 }
 0x21a   :  { %v3112_v48 = vpop.permute.xlu0 %3111 }
 0x21b   :  { %v3146_v2 = vpop.permute.xlu1 %3145  ;;  %v3823_v5 = vsel %vm3801_vm8, %v3758_v33, %v3112_v48 }
 0x21c   :  { %v5182_v26 = vpop.f32.mrb[0].mxu1  ;;  %v3857_v36 = vsel %vm3801_vm8, %v3792_v44, %v3146_v2  ;;  %v9447_v44 = vld [vmem:[#allocation67_spill] sm:$0xff] }
 0x21d   :  { %v4230_v12 = vpop.f32.mrb[1].mxu1  ;;  %v4239_v35 = vadd.f32 %v5182_v26, %v8954_v47 }
 0x21e   :  { %v3114_v25 = vpop.permute.xlu0 %3113  ;;  %v5183_v63 = vpop.f32.mrb[2].mxu1  ;;  %v4231_v62 = vadd.f32 %v8954_v47, %v4230_v12 }
 0x21f   :  { %v5150_v7 = vpop.f32.mrb[0].mxu0  ;;  %v3400_v16 = vpop.permute.xlu1 %3399  ;;  %v4242_v60 = vadd.f32 %v5183_v63, %v8954_v47  ;;  %v4391_v1 = vmax.f32 %v4239_v35, 0.0  ;;  %v3825_v43 = vsel %vm3801_vm8, %v3760_v0, %v3114_v25  ;;  %v3469_v35 = vsel %vm3411_vm2, %v9444_v19, %v9443_v15 }
 0x220   :  { %v4102_v46 = vpop.f32.mrb[1].mxu0  ;;  %v3920_v31 = vsel %vm3866_vm9, %v3855_v30, %v3400_v16  ;;  %v4233_v42 = vpop.f32.mrb[3].mxu1  ;;  %v4111_v20 = vadd.f32 %v5150_v7, %v8954_v47  ;;  %v4389_v24 = vmax.f32 %v4231_v62, 0.0  ;;  %v3439_v30 = vsel %vm3411_vm2, %v9440_v41, %v9439_v18  ;;  %v9441_v7 = vld [vmem:[#allocation38_spill] sm:$0xff]  ;;  %v9442_v62 = vld [vmem:[#allocation15_spill] sm:$0xff] }
 0x221   :  { %v4103_v50 = vadd.f32 %v8954_v47, %v4102_v46  ;;  %v5151_v49 = vpop.f32.mrb[2].mxu0  ;;  %v4234_v61 = vadd.f32 %v8954_v47, %v4233_v42  ;;  %5200 = vmatprep.mubr.msk.bf16.mxu1 %vm3931_vm10, %v3920_v31  ;;  %v4392_v21 = vmax.f32 %v4242_v60, 0.0  ;;  %v3437_v16 = vsel %vm3411_vm2, %v9442_v62, %v9441_v7  ;;  %v9445_v31 = vld [vmem:[#allocation55_spill] sm:$0xff]  ;;  %v9446_v42 = vld [vmem:[#allocation42_spill] sm:$0xff] }
 0x222   :  { %v4105_v54 = vpop.f32.mrb[3].mxu0  ;;  %v3368_v56 = vpop.permute.xlu0 %3367  ;;  %v4114_v27 = vadd.f32 %v5151_v49, %v8954_v47  ;;  %v4359_v2 = vmax.f32 %v4111_v20, 0.0  ;;  %v3471_v33 = vsel %vm3411_vm2, %v9446_v42, %v9445_v31  ;;  %v9448_v49 = vld [vmem:[#allocation68_spill] sm:$0xff]  ;;  %v9450_v60 = vld [vmem:[#allocation79_spill] sm:$0xff] }
 0x223   :  { %v4106_v57 = vadd.f32 %v8954_v47, %v4105_v54  ;;  %v4390_v6 = vmax.f32 %v4234_v61, 0.0  ;;  %v3888_v22 = vsel %vm3866_vm9, %v3823_v5, %v3368_v56  ;;  %v3402_v37 = vpop.permute.xlu1 %3401  ;;  %v4357_v23 = vmax.f32 %v4103_v50, 0.0  ;;  %v9449_v5 = vld [vmem:[#allocation80_spill] sm:$0xff] }
 0x224   :  { %5168 = vmatprep.mubr.msk.bf16.mxu0 %vm3931_vm10, %v3888_v22  ;;  %v3922_v48 = vsel %vm3866_vm9, %v3857_v36, %v3402_v37  ;;  %v4360_v13 = vmax.f32 %v4114_v27, 0.0  ;;  %v3504_v50 = vsel %vm3476_vm3, %v3439_v30, %v9447_v44  ;;  %v3502_v61 = vsel %vm3476_vm3, %v3437_v16, %v9448_v49 }
 0x225   :  { %v4358_v9 = vmax.f32 %v4106_v57, 0.0  ;;  %v4458_v34 = vadd.f32 %v4390_v6, %v4389_v24  ;;  %5201 = vmatmul.mubr.msk.bf16.gmra.mrb[20].mxu1 %vm3931_vm10, %v3922_v48  ;;  %v3534_v36 = vsel %vm3476_vm3, %v3469_v35, %v9449_v5  ;;  %v3536_v54 = vsel %vm3476_vm3, %v3471_v33, %v9450_v60 }
 0x226   :  { %v3370_v10 = vpop.permute.xlu0 %3369 }
 0x227   :  { %v4421_v55 = vadd.f32 %v4358_v9, %v4357_v23  ;;  %v4459_v28 = vadd.f32 %v4458_v34, %v4391_v1  ;;  %v3890_v29 = vsel %vm3866_vm9, %v3825_v43, %v3370_v10  ;;  %v1580_v53 = vpop.permute.xlu1 %1579 }
 0x228   :  { %5169 = vmatmul.mubr.msk.bf16.gmra.mrb[20].mxu0 %vm3931_vm10, %v3890_v29  ;;  %v3599_v56 = vsel %vm3541_vm4, %v3534_v36, %v1580_v53 }
 0x229   :  { %v4422_v3 = vadd.f32 %v4421_v55, %v4359_v2  ;;  %v4460_v51 = vadd.f32 %v4459_v28, %v4392_v21 }
 0x22a   :  { %v1548_v8 = vpop.permute.xlu0 %1547 }
 0x22b   :  { %v1582_v32 = vpop.permute.xlu1 %1581  ;;  %v8997_v26 = vadd.f32 %v4422_v3, %v4360_v13  ;;  %v3567_v24 = vsel %vm3541_vm4, %v3502_v61, %v1548_v8 }
 0x22c   :  { %v3601_v37 = vsel %vm3541_vm4, %v3536_v54, %v1582_v32 }
 0x22e   :  { %v1550_v14 = vpop.permute.xlu0 %1549 }
 0x22f   :  { %v2124_v52 = vpop.permute.xlu1 %2123  ;;  %v3569_v0 = vsel %vm3541_vm4, %v3504_v50, %v1550_v14 }
 0x230   :  { %v3664_v1 = vsel %vm3606_vm5, %v3599_v56, %v2124_v52 }
 0x232   :  { %v2092_v17 = vpop.permute.xlu0 %2091 }
 0x233   :  { %v2126_v11 = vpop.permute.xlu1 %2125  ;;  %v3632_v48 = vsel %vm3606_vm5, %v3567_v24, %v2092_v17 }
 0x234   :  { %v3666_v9 = vsel %vm3606_vm5, %v3601_v37, %v2126_v11 }
 0x236   :  { %v8999_v58 = vpop.permute.xlu0 %2093 }
 0x237   :  { %v2380_v4 = vpop.permute.xlu1 %2379  ;;  %v3634_v15 = vsel %vm3606_vm5, %v3569_v0, %v8999_v58 }
 0x238   :  { %v3729_v34 = vsel %vm3671_vm6, %v3664_v1, %v2380_v4 }
 0x23a   :  { %v2348_v12 = vpop.permute.xlu0 %2347 }
 0x23b   :  { %v2382_v59 = vpop.permute.xlu1 %2381  ;;  %v3697_v55 = vsel %vm3671_vm6, %v3632_v48, %v2348_v12 }
 0x23c   :  { %v3731_v3 = vsel %vm3671_vm6, %v3666_v9, %v2382_v59 }
 0x23e   :  { %v9001_v40 = vpop.permute.xlu0 %2349 }
 0x23f   :  { %v2604_v39 = vpop.permute.xlu1 %2603  ;;  %v3699_v44 = vsel %vm3671_vm6, %v3634_v15, %v9001_v40 }
 0x240   :  { %v3794_v28 = vsel %vm3736_vm7, %v3729_v34, %v2604_v39 }
 0x242   :  { %v2572_v38 = vpop.permute.xlu0 %2571 }
 0x243   :  { %v2606_v45 = vpop.permute.xlu1 %2605  ;;  %v3762_v41 = vsel %vm3736_vm7, %v3697_v55, %v2572_v38 }
 0x244   :  { %v3796_v30 = vsel %vm3736_vm7, %v3731_v3, %v2606_v45  ;;  %v9454_v3 = vld [vmem:[#allocation17_spill] sm:$0xff] }
 0x246   :  { %v9003_v25 = vpop.permute.xlu0 %2573 }
 0x247   :  { %v3148_v63 = vpop.permute.xlu1 %3147  ;;  %v3764_v58 = vsel %vm3736_vm7, %v3699_v44, %v9003_v25 }
 0x248   :  { %v5186_v46 = vpop.f32.mrb[4].mxu1  ;;  %v3859_v8 = vsel %vm3801_vm8, %v3794_v28, %v3148_v63 }
 0x249   :  { %v4246_v20 = vpop.f32.mrb[5].mxu1  ;;  %v4255_v43 = vadd.f32 %v5186_v46, %v8954_v47 }
 0x24a   :  { %v3116_v57 = vpop.permute.xlu0 %3115  ;;  %v4247_v6 = vadd.f32 %v8954_v47, %v4246_v20  ;;  %v5187_v22 = vpop.f32.mrb[6].mxu1 }
 0x24b   :  { %v5154_v23 = vpop.f32.mrb[4].mxu0  ;;  %v3150_v27 = vpop.permute.xlu1 %3149  ;;  %v4258_v14 = vadd.f32 %v5187_v22, %v8954_v47  ;;  %v4395_v7 = vmax.f32 %v4255_v43, 0.0  ;;  %v3827_v19 = vsel %vm3801_vm8, %v3762_v41, %v3116_v57 }
 0x24c   :  { %v4118_v21 = vpop.f32.mrb[5].mxu0  ;;  %v4393_v10 = vmax.f32 %v4247_v6, 0.0  ;;  %v4249_v2 = vpop.f32.mrb[7].mxu1  ;;  %v4127_v11 = vadd.f32 %v5154_v23, %v8954_v47  ;;  %v3861_v38 = vsel %vm3801_vm8, %v3796_v30, %v3150_v27 }
 0x24d   :  { %v4119_v29 = vadd.f32 %v8954_v47, %v4118_v21  ;;  %v5155_v53 = vpop.f32.mrb[6].mxu0  ;;  %v4250_v13 = vadd.f32 %v8954_v47, %v4249_v2  ;;  %v4396_v35 = vmax.f32 %v4258_v14, 0.0  ;;  %v9452_v2 = vld [vmem:[#allocation51_spill] sm:$0xff] }
 0x24e   :  { %v4461_v32 = vadd.f32 %v4460_v51, %v4393_v10  ;;  %v4121_v52 = vpop.f32.mrb[7].mxu0  ;;  %v3118_v17 = vpop.permute.xlu0 %3117  ;;  %v4130_v63 = vadd.f32 %v5155_v53, %v8954_v47  ;;  %v4363_v46 = vmax.f32 %v4127_v11, 0.0  ;;  %v9451_v10 = vld [vmem:[#allocation58_spill] sm:$0xff]  ;;  %v9456_v11 = vld [vmem:[#allocation57_spill] sm:$0xff] }
 0x24f   :  { %v4361_v4 = vmax.f32 %v4119_v29, 0.0  ;;  %v4122_v12 = vadd.f32 %v8954_v47, %v4121_v52  ;;  %v4394_v39 = vmax.f32 %v4250_v13, 0.0  ;;  %v3404_v18 = vpop.permute.xlu1 %3403  ;;  %v3829_v36 = vsel %vm3801_vm8, %v3764_v58, %v3118_v17  ;;  %v9453_v13 = vld [vmem:[#allocation41_spill] sm:$0xff] }
 0x250   :  { %v3924_v59 = vsel %vm3866_vm9, %v3859_v8, %v3404_v18  ;;  %v4364_v49 = vmax.f32 %v4130_v63, 0.0  ;;  %v3473_v55 = vsel %vm3411_vm2, %v9452_v2, %v9451_v10  ;;  %v3441_v8 = vsel %vm3411_vm2, %v9454_v3, %v9453_v13  ;;  %v9462_v13 = vld [vmem:[#allocation69_spill] sm:$0xff] }
 0x251   :  { %v4424_v51 = vadd.f32 %v8997_v26, %v4361_v4  ;;  %v4362_v62 = vmax.f32 %v4122_v12, 0.0  ;;  %v4462_v16 = vadd.f32 %v4461_v32, %v4394_v39  ;;  %5204 = vmatprep.mubr.msk.bf16.mxu1 %vm3931_vm10, %v3924_v59  ;;  %v9455_v32 = vld [vmem:[#allocation82_spill] sm:$0xff]  ;;  %v9457_v4 = vld [vmem:[#allocation48_spill] sm:$0xff] }
 0x252   :  { %v3372_v45 = vpop.permute.xlu0 %3371  ;;  %v3538_v14 = vsel %vm3476_vm3, %v3473_v55, %v9455_v32  ;;  %v3475_v12 = vsel %vm3411_vm2, %v9457_v4, %v9456_v11  ;;  %v9458_v59 = vld [vmem:[#allocation70_spill] sm:$0xff] }
 0x253   :  { %v4425_v31 = vadd.f32 %v4424_v51, %v4362_v62  ;;  %v4463_v42 = vadd.f32 %v4462_v16, %v4395_v7  ;;  %v3892_v26 = vsel %vm3866_vm9, %v3827_v19, %v3372_v45  ;;  %v3406_v33 = vpop.permute.xlu1 %3405  ;;  %v3506_v51 = vsel %vm3476_vm3, %v3441_v8, %v9458_v59  ;;  %v9459_v19 = vld [vmem:[#allocation81_spill] sm:$0xff] }
 0x254   :  { %5172 = vmatprep.mubr.msk.bf16.mxu0 %vm3931_vm10, %v3892_v26  ;;  %v3926_v50 = vsel %vm3866_vm9, %v3861_v38, %v3406_v33 }
 0x255   :  { %v4426_v61 = vadd.f32 %v4425_v31, %v4363_v46  ;;  %5205 = vmatmul.mubr.msk.bf16.gmra.mrb[24].mxu1 %vm3931_vm10, %v3926_v50  ;;  %v4464_v5 = vadd.f32 %v4463_v42, %v4396_v35  ;;  %v3540_v35 = vsel %vm3476_vm3, %v3475_v12, %v9459_v19 }
 0x256   :  { %v3374_v20 = vpop.permute.xlu0 %3373 }
 0x257   :  { %v3894_v60 = vsel %vm3866_vm9, %v3829_v36, %v3374_v20  ;;  %v1584_v54 = vpop.permute.xlu1 %1583  ;;  %v4427_v56 = vadd.f32 %v4426_v61, %v4364_v49 }
 0x258   :  { %5173 = vmatmul.mubr.msk.bf16.gmra.mrb[24].mxu0 %vm3931_vm10, %v3894_v60  ;;  %v3603_v39 = vsel %vm3541_vm4, %v3538_v14, %v1584_v54 }
 0x25a   :  { %v1552_v40 = vpop.permute.xlu0 %1551 }
 0x25b   :  { %v1586_v24 = vpop.permute.xlu1 %1585  ;;  %v3571_v49 = vsel %vm3541_vm4, %v3506_v51, %v1552_v40 }
 0x25c   :  { %v3605_v61 = vsel %vm3541_vm4, %v3540_v35, %v1586_v24 }
 0x25e   :  { %v9065_v57 = vpop.permute.xlu0 %1553 }
 0x25f   :  { %v2128_v6 = vpop.permute.xlu1 %2127 }
 0x260   :  { %v3668_v63 = vsel %vm3606_vm5, %v3603_v39, %v2128_v6 }
 0x262   :  { %v2096_v25 = vpop.permute.xlu0 %2095 }
 0x263   :  { %v2130_v22 = vpop.permute.xlu1 %2129  ;;  %v3636_v10 = vsel %vm3606_vm5, %v3571_v49, %v2096_v25 }
 0x264   :  { %v3670_v2 = vsel %vm3606_vm5, %v3605_v61, %v2130_v22 }
 0x266   :  { %v9067_v37 = vpop.permute.xlu0 %2097 }
 0x267   :  { %v2384_v0 = vpop.permute.xlu1 %2383 }
 0x268   :  { %v3733_v38 = vsel %vm3671_vm6, %v3668_v63, %v2384_v0  ;;  %v9460_v0 = vld [vmem:[#allocation40_spill] sm:$0xff] }
 0x26a   :  { %v2352_v1 = vpop.permute.xlu0 %2351 }
 0x26b   :  { %v2386_v48 = vpop.permute.xlu1 %2385  ;;  %v3701_v8 = vsel %vm3671_vm6, %v3636_v10, %v2352_v1 }
 0x26c   :  { %v3735_v32 = vsel %vm3671_vm6, %v3670_v2, %v2386_v48 }
 0x26e   :  { %v9069_v23 = vpop.permute.xlu0 %2353 }
 0x26f   :  { %v2608_v27 = vpop.permute.xlu1 %2607 }
 0x270   :  { %v3798_v36 = vsel %vm3736_vm7, %v3733_v38, %v2608_v27 }
 0x272   :  { %v2576_v9 = vpop.permute.xlu0 %2575 }
 0x273   :  { %v2610_v34 = vpop.permute.xlu1 %2609  ;;  %v3766_v25 = vsel %vm3736_vm7, %v3701_v8, %v2576_v9 }
 0x274   :  { %v5190_v43 = vpop.f32.mrb[8].mxu1  ;;  %v3800_v4 = vsel %vm3736_vm7, %v3735_v32, %v2610_v34 }
 0x275   :  { %v4262_v21 = vpop.f32.mrb[9].mxu1  ;;  %v4271_v18 = vadd.f32 %v5190_v43, %v8954_v47  ;;  %v9461_v43 = vld [vmem:[#allocation16_spill] sm:$0xff] }
 0x276   :  { %v9074_v28 = vpop.permute.xlu0 %2577  ;;  %v4263_v29 = vadd.f32 %v8954_v47, %v4262_v21  ;;  %v5191_v53 = vpop.f32.mrb[10].mxu1  ;;  %v3443_v21 = vsel %vm3411_vm2, %v9461_v43, %v9460_v0 }
 0x277   :  { %v5158_v52 = vpop.f32.mrb[8].mxu0  ;;  %v3152_v17 = vpop.permute.xlu1 %3151  ;;  %v4274_v46 = vadd.f32 %v5191_v53, %v8954_v47  ;;  %v4399_v20 = vmax.f32 %v4271_v18, 0.0  ;;  %v3508_v3 = vsel %vm3476_vm3, %v3443_v21, %v9462_v13 }
 0x278   :  { %v4134_v41 = vpop.f32.mrb[9].mxu0  ;;  %v4397_v30 = vmax.f32 %v4263_v29, 0.0  ;;  %v4265_v7 = vpop.f32.mrb[11].mxu1  ;;  %v4143_v26 = vadd.f32 %v5158_v52, %v8954_v47  ;;  %v3863_v40 = vsel %vm3801_vm8, %v3798_v36, %v3152_v17  ;;  %v3573_v11 = vsel %vm3541_vm4, %v3508_v3, %v9065_v57 }
 0x279   :  { %v4135_v62 = vadd.f32 %v8954_v47, %v4134_v41  ;;  %v5159_v16 = vpop.f32.mrb[10].mxu0  ;;  %v4266_v15 = vadd.f32 %v8954_v47, %v4265_v7  ;;  %v4400_v29 = vmax.f32 %v4274_v46, 0.0  ;;  %v3638_v1 = vsel %vm3606_vm5, %v3573_v11, %v9067_v37 }
 0x27a   :  { %v4465_v45 = vadd.f32 %v4464_v5, %v4397_v30  ;;  %v4137_v31 = vpop.f32.mrb[11].mxu0  ;;  %v3120_v42 = vpop.permute.xlu0 %3119  ;;  %v4146_v5 = vadd.f32 %v5159_v16, %v8954_v47  ;;  %v4367_v24 = vmax.f32 %v4143_v26, 0.0  ;;  %v3703_v30 = vsel %vm3671_vm6, %v3638_v1, %v9069_v23 }
 0x27b   :  { %v4365_v33 = vmax.f32 %v4135_v62, 0.0  ;;  %v4138_v44 = vadd.f32 %v8954_v47, %v4137_v31  ;;  %v4398_v50 = vmax.f32 %v4266_v15, 0.0  ;;  %v3154_v58 = vpop.permute.xlu1 %3153  ;;  %v3831_v12 = vsel %vm3801_vm8, %v3766_v25, %v3120_v42 }
 0x27c   :  { %v4368_v22 = vmax.f32 %v4146_v5, 0.0  ;;  %v3865_v48 = vsel %vm3801_vm8, %v3800_v4, %v3154_v58  ;;  %v3768_v34 = vsel %vm3736_vm7, %v3703_v30, %v9074_v28 }
 0x27d   :  { %v4428_v60 = vadd.f32 %v4427_v56, %v4365_v33  ;;  %v4366_v54 = vmax.f32 %v4138_v44, 0.0  ;;  %v4466_v6 = vadd.f32 %v4465_v45, %v4398_v50 }
 0x27e   :  { %v3122_v55 = vpop.permute.xlu0 %3121 }
 0x27f   :  { %v4429_v27 = vadd.f32 %v4428_v60, %v4366_v54  ;;  %v4467_v53 = vadd.f32 %v4466_v6, %v4399_v20  ;;  %v3408_v56 = vpop.permute.xlu1 %3407  ;;  %v3833_v37 = vsel %vm3801_vm8, %v3768_v34, %v3122_v55 }
 0x280   :  { %v3928_v14 = vsel %vm3866_vm9, %v3863_v40, %v3408_v56 }
 0x281   :  { %v4430_v52 = vadd.f32 %v4429_v27, %v4367_v24  ;;  %5208 = vmatprep.mubr.msk.bf16.mxu1 %vm3931_vm10, %v3928_v14  ;;  %v4468_v17 = vadd.f32 %v4467_v53, %v4400_v29 }
 0x282   :  { %v3376_v39 = vpop.permute.xlu0 %3375 }
 0x283   :  { %v3896_v9 = vsel %vm3866_vm9, %v3831_v12, %v3376_v39  ;;  %v3410_v18 = vpop.permute.xlu1 %3409  ;;  %v4431_v41 = vadd.f32 %v4430_v52, %v4368_v22 }
 0x284   :  { %5176 = vmatprep.mubr.msk.bf16.mxu0 %vm3931_vm10, %v3896_v9  ;;  %v3930_v57 = vsel %vm3866_vm9, %v3865_v48, %v3410_v18 }
 0x285   :  { %5209 = vmatmul.mubr.msk.bf16.gmra.mrb[28].mxu1 %vm3931_vm10, %v3930_v57 }
 0x286   :  { %v3378_v7 = vpop.permute.xlu0 %3377 }
 0x287   :  { %v3898_v59 = vsel %vm3866_vm9, %v3833_v37, %v3378_v7 }
 0x288   :  { %5177 = vmatmul.mubr.msk.bf16.gmra.mrb[28].mxu0 %vm3931_vm10, %v3898_v59 }
 0x2a0   :  { %v5194_v51 = vpop.f32.mrb[12].mxu1 }
 0x2a1   :  { %v4278_v63 = vpop.f32.mrb[13].mxu1  ;;  %v4287_v19 = vadd.f32 %v5194_v51, %v8954_v47 }
 0x2a2   :  { %v4279_v23 = vadd.f32 %v8954_v47, %v4278_v63  ;;  %v5195_v62 = vpop.f32.mrb[14].mxu1 }
 0x2a3   :  { %v5162_v16 = vpop.f32.mrb[12].mxu0  ;;  %v4281_v15 = vpop.f32.mrb[15].mxu1  ;;  %v4290_v42 = vadd.f32 %v5195_v62, %v8954_v47  ;;  %v4403_v49 = vmax.f32 %v4287_v19, 0.0 }
 0x2a4   :  { %v4150_v35 = vpop.f32.mrb[13].mxu0  ;;  %v4401_v28 = vmax.f32 %v4279_v23, 0.0  ;;  %v4282_v38 = vadd.f32 %v8954_v47, %v4281_v15  ;;  %v4159_v44 = vadd.f32 %v5162_v16, %v8954_v47 }
 0x2a5   :  { %v4151_v45 = vadd.f32 %v8954_v47, %v4150_v35  ;;  %v5163_v46 = vpop.f32.mrb[14].mxu0  ;;  %v4404_v5 = vmax.f32 %v4290_v42, 0.0 }
 0x2a6   :  { %v4469_v31 = vadd.f32 %v4468_v17, %v4401_v28  ;;  %v4153_v26 = vpop.f32.mrb[15].mxu0  ;;  %v4402_v33 = vmax.f32 %v4282_v38, 0.0  ;;  %v4162_v20 = vadd.f32 %v5163_v46, %v8954_v47  ;;  %v4371_v6 = vmax.f32 %v4159_v44, 0.0 }
 0x2a7   :  { %v4369_v50 = vmax.f32 %v4151_v45, 0.0  ;;  %v4154_v58 = vadd.f32 %v8954_v47, %v4153_v26 }
 0x2a8   :  { %v4470_v61 = vadd.f32 %v4469_v31, %v4402_v33  ;;  %v4372_v21 = vmax.f32 %v4162_v20, 0.0 }
 0x2a9   :  { %v4432_v36 = vadd.f32 %v4431_v41, %v4369_v50  ;;  %v4370_v60 = vmax.f32 %v4154_v58, 0.0 }
 0x2aa   :  { %v4471_v54 = vadd.f32 %v4470_v61, %v4403_v49 }
 0x2ab   :  { %v4433_v0 = vadd.f32 %v4432_v36, %v4370_v60 }
 0x2ac   :  { %v4472_v43 = vadd.f32 %v4471_v54, %v4404_v5 }
 0x2ad   :  { %v4434_v10 = vadd.f32 %v4433_v0, %v4371_v6 }
 0x2af   :  { %v4435_v2 = vadd.f32 %v4434_v10, %v4372_v21 }
 0x2cc   :  { %v5198_v40 = vpop.f32.mrb[16].mxu1 }
 0x2cd   :  { %v4294_v55 = vpop.f32.mrb[17].mxu1  ;;  %v4303_v56 = vadd.f32 %v5198_v40, %v8954_v47 }
 0x2ce   :  { %v4295_v24 = vadd.f32 %v8954_v47, %v4294_v55  ;;  %v5199_v29 = vpop.f32.mrb[18].mxu1 }
 0x2cf   :  { %v5166_v27 = vpop.f32.mrb[16].mxu0  ;;  %v4297_v53 = vpop.f32.mrb[19].mxu1  ;;  %v4306_v22 = vadd.f32 %v5199_v29, %v8954_v47  ;;  %v4407_v39 = vmax.f32 %v4303_v56, 0.0 }
 0x2d0   :  { %v4166_v13 = vpop.f32.mrb[17].mxu0  ;;  %v4405_v3 = vmax.f32 %v4295_v24, 0.0  ;;  %v4298_v8 = vadd.f32 %v8954_v47, %v4297_v53  ;;  %v4175_v11 = vadd.f32 %v5166_v27, %v8954_v47 }
 0x2d1   :  { %v4167_v32 = vadd.f32 %v8954_v47, %v4166_v13  ;;  %v5167_v14 = vpop.f32.mrb[18].mxu0  ;;  %v4408_v41 = vmax.f32 %v4306_v22, 0.0 }
 0x2d2   :  { %v4473_v25 = vadd.f32 %v4472_v43, %v4405_v3  ;;  %v4169_v52 = vpop.f32.mrb[19].mxu0  ;;  %v4406_v17 = vmax.f32 %v4298_v8, 0.0  ;;  %v4178_v9 = vadd.f32 %v5167_v14, %v8954_v47  ;;  %v4375_v57 = vmax.f32 %v4175_v11, 0.0 }
 0x2d3   :  { %v4373_v4 = vmax.f32 %v4167_v32, 0.0  ;;  %v4170_v12 = vadd.f32 %v8954_v47, %v4169_v52 }
 0x2d4   :  { %v4474_v1 = vadd.f32 %v4473_v25, %v4406_v17  ;;  %v4376_v7 = vmax.f32 %v4178_v9, 0.0 }
 0x2d5   :  { %v4436_v48 = vadd.f32 %v4435_v2, %v4373_v4  ;;  %v4374_v18 = vmax.f32 %v4170_v12, 0.0 }
 0x2d6   :  { %v4475_v30 = vadd.f32 %v4474_v1, %v4407_v39 }
 0x2d7   :  { %v4437_v34 = vadd.f32 %v4436_v48, %v4374_v18 }
 0x2d8   :  { %v4476_v37 = vadd.f32 %v4475_v30, %v4408_v41 }
 0x2d9   :  { %v4438_v59 = vadd.f32 %v4437_v34, %v4375_v57 }
 0x2db   :  { %v4439_v51 = vadd.f32 %v4438_v59, %v4376_v7 }
 0x2f8   :  { %v5202_v63 = vpop.f32.mrb[20].mxu1 }
 0x2f9   :  { %v4310_v23 = vpop.f32.mrb[21].mxu1  ;;  %v4319_v35 = vadd.f32 %v5202_v63, %v8954_v47 }
 0x2fa   :  { %v4311_v62 = vadd.f32 %v8954_v47, %v4310_v23  ;;  %v5203_v16 = vpop.f32.mrb[22].mxu1 }
 0x2fb   :  { %v5170_v15 = vpop.f32.mrb[20].mxu0  ;;  %v4313_v19 = vpop.f32.mrb[23].mxu1  ;;  %v4322_v26 = vadd.f32 %v5203_v16, %v8954_v47  ;;  %v4411_v61 = vmax.f32 %v4319_v35, 0.0 }
 0x2fc   :  { %v4182_v28 = vpop.f32.mrb[21].mxu0  ;;  %v4409_v38 = vmax.f32 %v4311_v62, 0.0  ;;  %v4314_v45 = vadd.f32 %v8954_v47, %v4313_v19  ;;  %v4191_v50 = vadd.f32 %v5170_v15, %v8954_v47 }
 0x2fd   :  { %v4183_v46 = vadd.f32 %v8954_v47, %v4182_v28  ;;  %v5171_v31 = vpop.f32.mrb[22].mxu0  ;;  %v4412_v54 = vmax.f32 %v4322_v26, 0.0 }
 0x2fe   :  { %v4477_v42 = vadd.f32 %v4476_v37, %v4409_v38  ;;  %v4185_v33 = vpop.f32.mrb[23].mxu0  ;;  %v4410_v44 = vmax.f32 %v4314_v45, 0.0  ;;  %v4194_v60 = vadd.f32 %v5171_v31, %v8954_v47  ;;  %v4379_v0 = vmax.f32 %v4191_v50, 0.0 }
 0x2ff   :  { %v4377_v58 = vmax.f32 %v4183_v46, 0.0  ;;  %v4186_v49 = vadd.f32 %v8954_v47, %v4185_v33 }
 0x300   :  { %v4478_v36 = vadd.f32 %v4477_v42, %v4410_v44  ;;  %v4380_v10 = vmax.f32 %v4194_v60, 0.0 }
 0x301   :  { %v4440_v20 = vadd.f32 %v4439_v51, %v4377_v58  ;;  %v4378_v5 = vmax.f32 %v4186_v49, 0.0 }
 0x302   :  { %v4479_v6 = vadd.f32 %v4478_v36, %v4411_v61 }
 0x303   :  { %v4441_v43 = vadd.f32 %v4440_v20, %v4378_v5 }
 0x304   :  { %v4480_v21 = vadd.f32 %v4479_v6, %v4412_v54 }
 0x305   :  { %v4442_v2 = vadd.f32 %v4441_v43, %v4379_v0 }
 0x307   :  { %v4443_v40 = vadd.f32 %v4442_v2, %v4380_v10 }
 0x328   :  { %v5206_v55 = vpop.f32.mrb[24].mxu1 }
 0x329   :  { %v4326_v24 = vpop.f32.mrb[25].mxu1  ;;  %v4335_v13 = vadd.f32 %v5206_v55, %v8954_v47 }
 0x32a   :  { %v4327_v29 = vadd.f32 %v8954_v47, %v4326_v24  ;;  %v5207_v27 = vpop.f32.mrb[26].mxu1 }
 0x32b   :  { %v5174_v53 = vpop.f32.mrb[24].mxu0  ;;  %v4329_v56 = vpop.f32.mrb[27].mxu1  ;;  %v4338_v52 = vadd.f32 %v5207_v27, %v8954_v47  ;;  %v4415_v1 = vmax.f32 %v4335_v13, 0.0 }
 0x32c   :  { %v4198_v3 = vpop.f32.mrb[25].mxu0  ;;  %v4413_v8 = vmax.f32 %v4327_v29, 0.0  ;;  %v4330_v32 = vadd.f32 %v8954_v47, %v4329_v56  ;;  %v4207_v4 = vadd.f32 %v5174_v53, %v8954_v47 }
 0x32d   :  { %v4199_v14 = vadd.f32 %v8954_v47, %v4198_v3  ;;  %v5175_v25 = vpop.f32.mrb[26].mxu0  ;;  %v4416_v30 = vmax.f32 %v4338_v52, 0.0 }
 0x32e   :  { %v4481_v22 = vadd.f32 %v4480_v21, %v4413_v8  ;;  %v4201_v17 = vpop.f32.mrb[27].mxu0  ;;  %v4414_v11 = vmax.f32 %v4330_v32, 0.0  ;;  %v4210_v18 = vadd.f32 %v5175_v25, %v8954_v47  ;;  %v4383_v34 = vmax.f32 %v4207_v4, 0.0 }
 0x32f   :  { %v4381_v12 = vmax.f32 %v4199_v14, 0.0  ;;  %v4202_v39 = vadd.f32 %v8954_v47, %v4201_v17 }
 0x330   :  { %v4482_v48 = vadd.f32 %v4481_v22, %v4414_v11  ;;  %v4384_v59 = vmax.f32 %v4210_v18, 0.0 }
 0x331   :  { %v4444_v9 = vadd.f32 %v4443_v40, %v4381_v12  ;;  %v4382_v41 = vmax.f32 %v4202_v39, 0.0 }
 0x332   :  { %v4483_v57 = vadd.f32 %v4482_v48, %v4415_v1 }
 0x333   :  { %v4445_v37 = vadd.f32 %v4444_v9, %v4382_v41 }
 0x334   :  { %v4484_v7 = vadd.f32 %v4483_v57, %v4416_v30 }
 0x335   :  { %v4446_v51 = vadd.f32 %v4445_v37, %v4383_v34 }
 0x337   :  { %v4447_v63 = vadd.f32 %v4446_v51, %v4384_v59 }
 0x358   :  { %v5210_v23 = vpop.f32.mrb[28].mxu1 }
 0x359   :  { %v4342_v62 = vpop.f32.mrb[29].mxu1  ;;  %v4351_v28 = vadd.f32 %v5210_v23, %v8954_v47 }
 0x35a   :  { %v4343_v16 = vadd.f32 %v8954_v47, %v4342_v62  ;;  %v5211_v15 = vpop.f32.mrb[30].mxu1 }
 0x35b   :  { %v5178_v19 = vpop.f32.mrb[28].mxu0  ;;  %v4345_v35 = vpop.f32.mrb[31].mxu1  ;;  %v4354_v33 = vadd.f32 %v5211_v15, %v8954_v47  ;;  %v4419_v36 = vmax.f32 %v4351_v28, 0.0 }
 0x35c   :  { %v4214_v38 = vpop.f32.mrb[29].mxu0  ;;  %v4417_v45 = vmax.f32 %v4343_v16, 0.0  ;;  %v4346_v46 = vadd.f32 %v8954_v47, %v4345_v35  ;;  %v4223_v58 = vadd.f32 %v5178_v19, %v8954_v47 }
 0x35d   :  { %v4215_v31 = vadd.f32 %v8954_v47, %v4214_v38  ;;  %v5179_v42 = vpop.f32.mrb[30].mxu0  ;;  %v4420_v6 = vmax.f32 %v4354_v33, 0.0 }
 0x35e   :  { %v4485_v26 = vadd.f32 %v4484_v7, %v4417_v45  ;;  %v4217_v44 = vpop.f32.mrb[31].mxu0  ;;  %v4418_v50 = vmax.f32 %v4346_v46, 0.0  ;;  %v4226_v5 = vadd.f32 %v5179_v42, %v8954_v47  ;;  %v4387_v43 = vmax.f32 %v4223_v58, 0.0 }
 0x35f   :  { %v4385_v49 = vmax.f32 %v4215_v31, 0.0  ;;  %v4218_v61 = vadd.f32 %v8954_v47, %v4217_v44 }
 0x360   :  { %v4486_v20 = vadd.f32 %v4485_v26, %v4418_v50  ;;  %v4388_v2 = vmax.f32 %v4226_v5, 0.0 }
 0x361   :  { %v4448_v60 = vadd.f32 %v4447_v63, %v4385_v49  ;;  %v4386_v54 = vmax.f32 %v4218_v61, 0.0 }
 0x362   :  { %v4487_v0 = vadd.f32 %v4486_v20, %v4419_v36 }
 0x363   :  { %v4449_v21 = vadd.f32 %v4448_v60, %v4386_v54 }
 0x364   :  { %v4488_v10 = vadd.f32 %v4487_v0, %v4420_v6 }
 0x365   :  { %v4450_v40 = vadd.f32 %v4449_v21, %v4387_v43 }
 0x366   :  { %v4489_v55 = vrot.slane %v4488_v10, 4 }
 0x367   :  { %v4451_v24 = vadd.f32 %v4450_v40, %v4388_v2 }
 0x368   :  { %v4490_v29 = vadd.f32 %v4489_v55, %v4488_v10 }
 0x369   :  { %v4452_v27 = vrot.slane %v4451_v24, 4 }
 0x36a   :  { %v4491_v53 = vrot.slane %v4490_v29, 2 }
 0x36b   :  { %v4453_v56 = vadd.f32 %v4452_v27, %v4451_v24 }
 0x36c   :  { %v4492_v13 = vadd.f32 %v4491_v53, %v4490_v29 }
 0x36d   :  { %v4454_v3 = vrot.slane %v4453_v56, 2 }
 0x36e   :  { %v4493_v8 = vrot.slane %v4492_v13, 1 }
 0x36f   :  { %v4455_v32 = vadd.f32 %v4454_v3, %v4453_v56 }
 0x370   :  { %v4494_v14 = vadd.f32 %v4493_v8, %v4492_v13 }
 0x371   :  { %v4456_v47 = vrot.slane %v4455_v32, 1 }
 0x372   :  { %v4496_v22 = vmul.f32 0.00390625, %v4494_v14 }
 0x373   :  { %v4457_v25 = vadd.f32 %v4456_v47, %v4455_v32 }
 0x375   :  { %v4495_v52 = vmul.f32 0.00390625, %v4457_v25 }
 0x377   :  { %v4500_v17 = vsel %vm4499_vm11, %v4496_v22, %v4495_v52 }
 0x378   :  { %4502 = vst [vmem:[%s9179_s3] sm:$0x3] %v4500_v17 }

</bundles_post_ra>
